<compile_context>
chip_gen: v7x
topology: tpu7x:2x2x1
jax: 0.10.0
libtpu: 0.0.40
codegen_flags: <defaults>
</compile_context>

<pallas_src>
import math
import functools

import jax
import jax.numpy as jnp
from jax.experimental import pallas as pl
from jax.experimental.pallas import tpu as pltpu


# --------------------------------------------------------------------------
# Kernel
# --------------------------------------------------------------------------
def _encoder_kernel(x_ref, w_in_ref, b_in_ref, w_out_ref, b_out_ref,
                    em_ref, gsum_ref, gbc_ref,
                    g1_ref, be1_ref, g2_ref, be2_ref,
                    w1_ref, b1_ref, w2_ref, b2_ref,
                    o_ref, *, num_heads, eps):
    Bb, T, D = x_ref.shape
    H = num_heads
    dh = D // H
    R = Bb * T              # rows (tokens) handled in this grid step
    E = H * T               # packed (head, key) lane axis for the scores
    scale = 1.0 / math.sqrt(dh)

    x_f32 = x_ref[...].astype(jnp.float32).reshape(R, D)     # merge leading dims
    x_bf = x_f32.astype(jnp.bfloat16)

    # ---- fused QKV projection (weights pre-permuted to [Q | K | V], head-major)
    qkv = jnp.dot(x_bf, w_in_ref[...], preferred_element_type=jnp.float32)
    qkv = qkv + b_in_ref[...].astype(jnp.float32)            # (R, 3D) f32

    q = (qkv[:, :D] * scale).astype(jnp.bfloat16).reshape(Bb, T, D)   # scale folded in
    k = qkv[:, D:2 * D].astype(jnp.bfloat16).reshape(Bb, T, D)
    v = qkv[:, 2 * D:].astype(jnp.bfloat16).reshape(Bb, T, D)

    # ---- host-precomputed constants -----------------------------------------
    em = em_ref[...]                         # (E, D) bf16 0/1 block-diag expansion
    gsum = gsum_ref[...]                     # (E, H) f32  group membership
    gbc = gbc_ref[...]                       # (H, E) f32  its transpose (broadcast)

    # ---- multi-head attention, all heads batched along lanes, all examples
    #      batched along the einsum batch dim (no Python unroll / concat) -----
    kx = jnp.tile(k, (1, H, 1)) * em         # (Bb, E, D) bf16
    vx = jnp.tile(v, (1, H, 1)) * em         # (Bb, E, D) bf16

    # All heads' scores as one lane-dense batched matmul (contract over D).
    s = jnp.einsum('btd,bed->bte', q, kx,
                   preferred_element_type=jnp.float32)       # (Bb, T, E) f32

    # Shared per-row max (exact; see header note about extreme logit spreads).
    s = s - jnp.max(s, axis=-1, keepdims=True)
    p = jnp.exp(s)                                           # (Bb, T, E) f32

    # Per-head denominator from f32 probabilities (tiny matmul), approx
    # reciprocal on the EUP plus one Newton step for accuracy.
    p2 = p.reshape(R, E)
    denom = jnp.dot(p2, gsum, preferred_element_type=jnp.float32)     # (R, H)
    denom = jnp.maximum(denom, jnp.float32(1e-30))
    inv = pl.reciprocal(denom, approx=True)
    inv = inv * (2.0 - denom * inv)                          # Newton refinement

    # Fold per-head normalisation into p before the PV matmul (broadcast of
    # inv over each head's T-lane group via a tiny exact 0/1 matmul).
    scale_e = jnp.dot(inv, gbc, preferred_element_type=jnp.float32)   # (R, E)
    p_n = (p2 * scale_e).astype(jnp.bfloat16).reshape(Bb, T, E)

    ctx = jnp.einsum('bte,bed->btd', p_n, vx,
                     preferred_element_type=jnp.float32)     # (Bb, T, D) f32
    ctx = ctx.reshape(R, D)

    attn = jnp.dot(ctx.astype(jnp.bfloat16), w_out_ref[...],
                   preferred_element_type=jnp.float32) + b_out_ref[...].astype(jnp.float32)

    # ---- residual + LayerNorm1 (f32) ----------------------------------------
    x1 = x_f32 + attn
    mu = jnp.mean(x1, axis=-1, keepdims=True)
    var = jnp.mean(jnp.square(x1 - mu), axis=-1, keepdims=True)
    x1 = (x1 - mu) * jax.lax.rsqrt(var + eps) * g1_ref[...].astype(jnp.float32) \
         + be1_ref[...].astype(jnp.float32)

    # ---- MLP: Linear -> exact GELU -> Linear --------------------------------
    h1 = jnp.dot(x1.astype(jnp.bfloat16), w1_ref[...],
                 preferred_element_type=jnp.float32) + b1_ref[...].astype(jnp.float32)
    h1 = 0.5 * h1 * (1.0 + jax.lax.erf(h1 * (1.0 / math.sqrt(2.0))))
    h2 = jnp.dot(h1.astype(jnp.bfloat16), w2_ref[...],
                 preferred_element_type=jnp.float32) + b2_ref[...].astype(jnp.float32)

    # ---- residual + LayerNorm2 ----------------------------------------------
    x2 = x1 + h2
    mu2 = jnp.mean(x2, axis=-1, keepdims=True)
    var2 = jnp.mean(jnp.square(x2 - mu2), axis=-1, keepdims=True)
    out = (x2 - mu2) * jax.lax.rsqrt(var2 + eps) * g2_ref[...].astype(jnp.float32) \
          + be2_ref[...].astype(jnp.float32)

    o_ref[...] = out.reshape(Bb, T, D).astype(o_ref.dtype)


# --------------------------------------------------------------------------
# Host-side helpers
# --------------------------------------------------------------------------
def _permute_qkv_weights(w_in, b_in, num_heads):
    """Permute fused-QKV columns from per-head-interleaved [q_h|k_h|v_h]
    (PyTorch chunk layout) to [Q_all | K_all | V_all], each head-major."""
    D = w_in.shape[0]
    dh = D // num_heads
    cols = jnp.arange(3 * D).reshape(num_heads, 3, dh)     # [h, part, d]
    perm = jnp.transpose(cols, (1, 0, 2)).reshape(-1)      # [part, h, d]
    return w_in[:, perm], b_in[:, perm]


def _build_head_constants(num_heads, T, D):
    """Block-diagonal head-expansion mask and per-head group-sum matrices."""
    dh = D // num_heads
    E = num_heads * T
    row_head = jnp.arange(E)[:, None] // T                       # (E, 1)
    col_head = jnp.arange(D)[None, :] // dh                      # (1, D)
    em = (row_head == col_head).astype(jnp.bfloat16)             # (E, D)
    gsum = (row_head == jnp.arange(num_heads)[None, :]).astype(jnp.float32)  # (E, H)
    gbc = jnp.asarray(gsum.T)                                     # (H, E)
    return em, gsum, gbc


def _tpu_generation_config():
    """Per-generation knobs: 2-TC grid rule (v7x), MXU-row target, VMEM limit."""
    kind = ""
    try:
        kind = jax.devices()[0].device_kind.lower()
    except Exception:
        pass
    is_v7 = ("v7" in kind) or ("tpu7" in kind) or ("7x" in kind)
    is_v5e = ("v5e" in kind) or ("v5 lite" in kind) or ("v5lite" in kind)
    vmem_cap = 64 * 1024 * 1024 if is_v7 else 128 * 1024 * 1024
    try:
        vmem_cap = int(pltpu.get_tpu_info().vmem_capacity_bytes)
    except Exception:
        pass
    two_tc = is_v7
    target_rows = 128 if is_v5e else 256
    if is_v7:
        vmem_limit = min(56 * 1024 * 1024, vmem_cap - 8 * 1024 * 1024)
    else:
        vmem_limit = min(100 * 1024 * 1024, vmem_cap - 16 * 1024 * 1024)
    vmem_limit = max(int(vmem_limit), 32 * 1024 * 1024)
    return two_tc, target_rows, vmem_limit


def _estimate_vmem_bytes(block_b, T, D, hidden, H):
    """Rough per-grid-step VMEM footprint (tiles + single-buffered weights +
    major intermediates), used to bound block_b."""
    R = block_b * T
    E = H * T
    io = 2 * (block_b * T * D * 4) * 2                         # x/out, double-buffered
    weights = ((D * 3 * D + D * D + D * hidden + hidden * D) * 2   # bf16 matrices
               + (3 * D + 7 * D + hidden) * 4                      # f32 bias/LN vectors
               + E * D * 2 + 2 * E * H * 4)                        # masks
    inter = (R * 3 * D * 4 + 3 * R * D * 2                     # qkv, q/k/v
             + 2 * block_b * E * D * 2                          # kx, vx
             + 2 * R * E * 4 + R * E * 4 + R * E * 2            # s, p, scale_e, p_n
             + 2 * R * D * 4 + 2 * R * hidden * 4 + 4 * R * D * 4)
    return int(1.3 * (io + weights + inter))


def _pick_block_b(B, T, D, hidden, H, target_rows, two_tc, vmem_budget):
    """Largest batch block with block_b*T <= target_rows that fits the VMEM
    budget; on 2-TC chips (v7x) also keep at least two grid steps."""
    best = 1
    for cand in range(1, B + 1):
        if B % cand:
            continue
        if cand * T > max(target_rows, T):
            continue
        if two_tc and B >= 2 and (B // cand) < 2:
            continue
        if _estimate_vmem_bytes(cand, T, D, hidden, H) > vmem_budget:
            continue
        best = cand
    return best


# --------------------------------------------------------------------------
# Wrapper
# --------------------------------------------------------------------------
def encoder_forward(x, params, *, num_heads=16, eps=1e-12, block_b=None):
    B, T, D = x.shape
    assert D % num_heads == 0
    hidden = params['w1'].shape[1]

    two_tc, target_rows, vmem_limit = _tpu_generation_config()
    if block_b is None:
        block_b = _pick_block_b(B, T, D, hidden, num_heads, target_rows, two_tc,
                                int(0.75 * vmem_limit))
    assert B % block_b == 0
    grid = (B // block_b,)

    # Host-side prep: permute fused QKV to [Q|K|V] head-major, build the
    # head-expansion constants, cast matmul weights to bf16.
    w_in_p, b_in_p = _permute_qkv_weights(params['w_in'], params['b_in'], num_heads)
    em, gsum, gbc = _build_head_constants(num_heads, T, D)
    f32 = lambda a: a.astype(jnp.float32)
    bf16 = lambda a: a.astype(jnp.bfloat16)

    args = (x,
            bf16(w_in_p), f32(b_in_p),
            bf16(params['w_out']), f32(params['b_out']),
            em, gsum, gbc,
            f32(params['g1']), f32(params['be1']),
            f32(params['g2']), f32(params['be2']),
            bf16(params['w1']), f32(params['b1']),
            bf16(params['w2']), f32(params['b2']))

    kernel = functools.partial(_encoder_kernel, num_heads=num_heads, eps=eps)
    E = num_heads * T

    def build(single_buffer_weights, limit):
        def const(shape):
            if single_buffer_weights:
                return pl.BlockSpec(shape, lambda b: (0, 0),
                                    pipeline_mode=pl.Buffered(1))
            return pl.BlockSpec(shape, lambda b: (0, 0))

        in_specs = [
            pl.BlockSpec((block_b, T, D), lambda b: (b, 0, 0)),   # x
            const((D, 3 * D)), const((1, 3 * D)),                 # w_in, b_in
            const((D, D)), const((1, D)),                         # w_out, b_out
            const((E, D)), const((E, num_heads)), const((num_heads, E)),  # masks
            const((1, D)), const((1, D)),                         # LN1 gamma/beta
            const((1, D)), const((1, D)),                         # LN2 gamma/beta
            const((D, hidden)), const((1, hidden)),               # MLP w1, b1
            const((hidden, D)), const((1, D)),                    # MLP w2, b2
        ]
        return pl.pallas_call(
            kernel,
            out_shape=jax.ShapeDtypeStruct((B, T, D), x.dtype),
            grid=grid,
            in_specs=in_specs,
            out_specs=pl.BlockSpec((block_b, T, D), lambda b: (b, 0, 0)),
            compiler_params=pltpu.CompilerParams(
                dimension_semantics=("parallel",),
                vmem_limit_bytes=int(limit)),
        )

    try:
        out = build(True, vmem_limit)(*args)
        jax.block_until_ready(out)
        return out
    except Exception:
        # Fallback: default (double-buffered) constant blocks, conservative VMEM.
        out = build(False, min(vmem_limit, 48 * 1024 * 1024))(*args)
        return out


# ---------------- plain-JAX reference (f32, PyTorch semantics) --------------
def _layernorm(x, g, b, eps):
    mu = jnp.mean(x, axis=-1, keepdims=True)
    var = jnp.mean(jnp.square(x - mu), axis=-1, keepdims=True)
    return (x - mu) * jax.lax.rsqrt(var + eps) * g + b


def encoder_ref(x, p, *, num_heads=16, eps=1e-12):
    B, T, D = x.shape
    dh = D // num_heads
    qkv = x @ p['w_in'] + p['b_in']                           # (B, T, 3D)
    qkv = qkv.reshape(B, T, num_heads, 3 * dh).transpose(0, 2, 1, 3)
    q, k, v = qkv[..., :dh], qkv[..., dh:2 * dh], qkv[..., 2 * dh:]
    s = jnp.einsum('bhtd,bhsd->bhts', q, k) / math.sqrt(dh)
    a = jax.nn.softmax(s, axis=-1)
    o = jnp.einsum('bhts,bhsd->bhtd', a, v).transpose(0, 2, 1, 3).reshape(B, T, D)
    o = o @ p['w_out'] + p['b_out']
    x1 = _layernorm(x + o, p['g1'], p['be1'], eps)
    h = jax.nn.gelu(x1 @ p['w1'] + p['b1'], approximate=False)
    h = h @ p['w2'] + p['b2']
    return _layernorm(x1 + h, p['g2'], p['be2'], eps)


if __name__ == "__main__":
    B, T, D, H, HID = 4, 16, 128, 16, 256   # D divisible by 16 heads and by 128
    key = jax.random.PRNGKey(0)
    keys = jax.random.split(key, 9)

    def init(k, shape):
        return jax.random.normal(k, shape, jnp.float32) * 0.02

    params = dict(
        w_in=init(keys[0], (D, 3 * D)), b_in=init(keys[1], (1, 3 * D)),
        w_out=init(keys[2], (D, D)),    b_out=init(keys[3], (1, D)),
        g1=jnp.ones((1, D), jnp.float32), be1=jnp.zeros((1, D), jnp.float32),
        g2=jnp.ones((1, D), jnp.float32), be2=jnp.zeros((1, D), jnp.float32),
        w1=init(keys[4], (D, HID)), b1=init(keys[5], (1, HID)),
        w2=init(keys[6], (HID, D)), b2=init(keys[7], (1, D)),
    )
    x = jax.random.normal(keys[8], (B, T, D), jnp.float32)

    out = encoder_forward(x, params, num_heads=H)
    jax.block_until_ready(out)

    ref = encoder_ref(x, params, num_heads=H)
    max_err = float(jnp.max(jnp.abs(out - ref)))
    # bf16 matmul operands -> compare with a loose tolerance.
    assert jnp.allclose(out, ref, atol=3e-2, rtol=3e-2), max_err

    print("KERNEL_OK")
</pallas_src>

<mosaic_0001>
module attributes {stable_mosaic.version = 11 : i64} {
  func.func @_encoder_kernel(%arg0: i32, %arg1: memref<4x16x128xf32, #tpu.memory_space<vmem>>, %arg2: memref<128x384xbf16, #tpu.memory_space<vmem>>, %arg3: memref<1x384xf32, #tpu.memory_space<vmem>>, %arg4: memref<128x128xbf16, #tpu.memory_space<vmem>>, %arg5: memref<1x128xf32, #tpu.memory_space<vmem>>, %arg6: memref<256x128xbf16, #tpu.memory_space<vmem>>, %arg7: memref<256x16xf32, #tpu.memory_space<vmem>>, %arg8: memref<16x256xf32, #tpu.memory_space<vmem>>, %arg9: memref<1x128xf32, #tpu.memory_space<vmem>>, %arg10: memref<1x128xf32, #tpu.memory_space<vmem>>, %arg11: memref<1x128xf32, #tpu.memory_space<vmem>>, %arg12: memref<1x128xf32, #tpu.memory_space<vmem>>, %arg13: memref<128x256xbf16, #tpu.memory_space<vmem>>, %arg14: memref<1x256xf32, #tpu.memory_space<vmem>>, %arg15: memref<256x128xbf16, #tpu.memory_space<vmem>>, %arg16: memref<1x128xf32, #tpu.memory_space<vmem>>, %arg17: memref<4x16x128xf32, #tpu.memory_space<vmem>>) attributes {dimension_semantics = [#tpu.dimension_semantics<parallel>], iteration_bounds = array<i64: 1>, scalar_prefetch = 0 : i64, scratch_operands = 0 : i64, tpu.core_type = #tpu.core_type<tc>, window_params = [{transform_indices = @transform_0, window_bounds = array<i64: 4, 16, 128>}, {pipeline_mode = #tpu.pipeline_mode<synchronous>, transform_indices = @transform_1, window_bounds = array<i64: 128, 384>}, {pipeline_mode = #tpu.pipeline_mode<synchronous>, transform_indices = @transform_2, window_bounds = array<i64: 1, 384>}, {pipeline_mode = #tpu.pipeline_mode<synchronous>, transform_indices = @transform_3, window_bounds = array<i64: 128, 128>}, {pipeline_mode = #tpu.pipeline_mode<synchronous>, transform_indices = @transform_4, window_bounds = array<i64: 1, 128>}, {pipeline_mode = #tpu.pipeline_mode<synchronous>, transform_indices = @transform_5, window_bounds = array<i64: 256, 128>}, {pipeline_mode = #tpu.pipeline_mode<synchronous>, transform_indices = @transform_6, window_bounds = array<i64: 256, 16>}, {pipeline_mode = #tpu.pipeline_mode<synchronous>, transform_indices = @transform_7, window_bounds = array<i64: 16, 256>}, {pipeline_mode = #tpu.pipeline_mode<synchronous>, transform_indices = @transform_8, window_bounds = array<i64: 1, 128>}, {pipeline_mode = #tpu.pipeline_mode<synchronous>, transform_indices = @transform_9, window_bounds = array<i64: 1, 128>}, {pipeline_mode = #tpu.pipeline_mode<synchronous>, transform_indices = @transform_10, window_bounds = array<i64: 1, 128>}, {pipeline_mode = #tpu.pipeline_mode<synchronous>, transform_indices = @transform_11, window_bounds = array<i64: 1, 128>}, {pipeline_mode = #tpu.pipeline_mode<synchronous>, transform_indices = @transform_12, window_bounds = array<i64: 128, 256>}, {pipeline_mode = #tpu.pipeline_mode<synchronous>, transform_indices = @transform_13, window_bounds = array<i64: 1, 256>}, {pipeline_mode = #tpu.pipeline_mode<synchronous>, transform_indices = @transform_14, window_bounds = array<i64: 256, 128>}, {pipeline_mode = #tpu.pipeline_mode<synchronous>, transform_indices = @transform_15, window_bounds = array<i64: 1, 128>}, {transform_indices = @transform_16, window_bounds = array<i64: 4, 16, 128>}]} {
    %c0 = arith.constant 0 : index
    %c0_0 = arith.constant 0 : index
    %c0_1 = arith.constant 0 : index
    %0 = vector.load %arg1[%c0, %c0_0, %c0_1] : memref<4x16x128xf32, #tpu.memory_space<vmem>>, vector<4x16x128xf32>
    %1 = vector.shape_cast %0 : vector<4x16x128xf32> to vector<64x128xf32>
    %2 = arith.truncf %1 : vector<64x128xf32> to vector<64x128xbf16>
    %c0_2 = arith.constant 0 : index
    %c0_3 = arith.constant 0 : index
    %3 = vector.load %arg2[%c0_2, %c0_3] : memref<128x384xbf16, #tpu.memory_space<vmem>>, vector<128x384xbf16>
    %cst = arith.constant dense<0.000000e+00> : vector<64x384xf32>
    %4 = tpu.matmul %2, %3, %cst {dimension_numbers = #tpu.dot_dimension_numbers<[1], [0], [0], [1], [0, 0, 1, 1], [], []>} : vector<64x128xbf16>, vector<128x384xbf16>, vector<64x384xf32> -> vector<64x384xf32>
    %c0_4 = arith.constant 0 : index
    %c0_5 = arith.constant 0 : index
    %5 = vector.load %arg3[%c0_4, %c0_5] : memref<1x384xf32, #tpu.memory_space<vmem>>, vector<1x384xf32>
    %6 = vector.broadcast %5 : vector<1x384xf32> to vector<64x384xf32>
    %7 = arith.addf %4, %6 : vector<64x384xf32>
    %8 = vector.extract_strided_slice %7 {offsets = [0, 0], sizes = [64, 128], strides = [1, 1]} : vector<64x384xf32> to vector<64x128xf32>
    %cst_6 = arith.constant 0.353553385 : f32
    %9 = vector.broadcast %cst_6 : f32 to vector<64x128xf32>
    %10 = arith.mulf %8, %9 : vector<64x128xf32>
    %11 = arith.truncf %10 : vector<64x128xf32> to vector<64x128xbf16>
    %12 = vector.shape_cast %11 : vector<64x128xbf16> to vector<4x16x128xbf16>
    %13 = vector.extract_strided_slice %7 {offsets = [0, 128], sizes = [64, 128], strides = [1, 1]} : vector<64x384xf32> to vector<64x128xf32>
    %14 = arith.truncf %13 : vector<64x128xf32> to vector<64x128xbf16>
    %15 = vector.shape_cast %14 : vector<64x128xbf16> to vector<4x16x128xbf16>
    %16 = vector.extract_strided_slice %7 {offsets = [0, 256], sizes = [64, 128], strides = [1, 1]} : vector<64x384xf32> to vector<64x128xf32>
    %17 = arith.truncf %16 : vector<64x128xf32> to vector<64x128xbf16>
    %18 = vector.shape_cast %17 : vector<64x128xbf16> to vector<4x16x128xbf16>
    %c0_7 = arith.constant 0 : index
    %c0_8 = arith.constant 0 : index
    %19 = vector.load %arg6[%c0_7, %c0_8] : memref<256x128xbf16, #tpu.memory_space<vmem>>, vector<256x128xbf16>
    %c0_9 = arith.constant 0 : index
    %c0_10 = arith.constant 0 : index
    %20 = vector.load %arg7[%c0_9, %c0_10] : memref<256x16xf32, #tpu.memory_space<vmem>>, vector<256x16xf32>
    %c0_11 = arith.constant 0 : index
    %c0_12 = arith.constant 0 : index
    %21 = vector.load %arg8[%c0_11, %c0_12] : memref<16x256xf32, #tpu.memory_space<vmem>>, vector<16x256xf32>
    %22 = tpu.concatenate %15, %15, %15, %15, %15, %15, %15, %15, %15, %15, %15, %15, %15, %15, %15, %15 in 1 : vector<4x16x128xbf16>, vector<4x16x128xbf16>, vector<4x16x128xbf16>, vector<4x16x128xbf16>, vector<4x16x128xbf16>, vector<4x16x128xbf16>, vector<4x16x128xbf16>, vector<4x16x128xbf16>, vector<4x16x128xbf16>, vector<4x16x128xbf16>, vector<4x16x128xbf16>, vector<4x16x128xbf16>, vector<4x16x128xbf16>, vector<4x16x128xbf16>, vector<4x16x128xbf16>, vector<4x16x128xbf16> -> vector<4x256x128xbf16>
    %23 = vector.shape_cast %19 : vector<256x128xbf16> to vector<1x256x128xbf16>
    %24 = vector.broadcast %23 : vector<1x256x128xbf16> to vector<4x256x128xbf16>
    %25 = arith.mulf %22, %24 : vector<4x256x128xbf16>
    %26 = tpu.concatenate %18, %18, %18, %18, %18, %18, %18, %18, %18, %18, %18, %18, %18, %18, %18, %18 in 1 : vector<4x16x128xbf16>, vector<4x16x128xbf16>, vector<4x16x128xbf16>, vector<4x16x128xbf16>, vector<4x16x128xbf16>, vector<4x16x128xbf16>, vector<4x16x128xbf16>, vector<4x16x128xbf16>, vector<4x16x128xbf16>, vector<4x16x128xbf16>, vector<4x16x128xbf16>, vector<4x16x128xbf16>, vector<4x16x128xbf16>, vector<4x16x128xbf16>, vector<4x16x128xbf16>, vector<4x16x128xbf16> -> vector<4x256x128xbf16>
    %27 = vector.shape_cast %19 : vector<256x128xbf16> to vector<1x256x128xbf16>
    %28 = vector.broadcast %27 : vector<1x256x128xbf16> to vector<4x256x128xbf16>
    %29 = arith.mulf %26, %28 : vector<4x256x128xbf16>
    "tpu.trace_start"() <{level = 10 : i32, message = "btd,bed->bte"}> : () -> ()
    %cst_13 = arith.constant dense<0.000000e+00> : vector<4x16x256xf32>
    %30 = tpu.matmul %12, %25, %cst_13 {dimension_numbers = #tpu.dot_dimension_numbers<[2], [2], [1], [1], [0, 0, 0, 1, 1, 1], [0], [0]>} : vector<4x16x128xbf16>, vector<4x256x128xbf16>, vector<4x16x256xf32> -> vector<4x16x256xf32>
    "tpu.trace_stop"() : () -> ()
    %cst_14 = arith.constant dense<0xFF800000> : vector<4x16xf32>
    %31 = vector.multi_reduction <maximumf>, %30, %cst_14 [2] : vector<4x16x256xf32> to vector<4x16xf32>
    %32 = vector.shape_cast %31 : vector<4x16xf32> to vector<4x16x1xf32>
    %33 = vector.broadcast %32 : vector<4x16x1xf32> to vector<4x16x256xf32>
    %34 = arith.subf %30, %33 : vector<4x16x256xf32>
    %35 = math.exp %34 : vector<4x16x256xf32>
    %36 = vector.shape_cast %35 : vector<4x16x256xf32> to vector<64x256xf32>
    %cst_15 = arith.constant dense<0.000000e+00> : vector<64x16xf32>
    %37 = tpu.matmul %36, %20, %cst_15 {dimension_numbers = #tpu.dot_dimension_numbers<[1], [0], [0], [1], [0, 0, 1, 1], [], []>} : vector<64x256xf32>, vector<256x16xf32>, vector<64x16xf32> -> vector<64x16xf32>
    %cst_16 = arith.constant 1.000000e-30 : f32
    %38 = vector.broadcast %cst_16 : f32 to vector<64x16xf32>
    %39 = arith.maximumf %37, %38 : vector<64x16xf32>
    %40 = tpu.reciprocal %39 {approx = true} : vector<64x16xf32> -> vector<64x16xf32>
    %41 = arith.mulf %39, %40 : vector<64x16xf32>
    %cst_17 = arith.constant 2.000000e+00 : f32
    %42 = vector.broadcast %cst_17 : f32 to vector<64x16xf32>
    %43 = arith.subf %42, %41 : vector<64x16xf32>
    %44 = arith.mulf %40, %43 : vector<64x16xf32>
    %cst_18 = arith.constant dense<0.000000e+00> : vector<64x256xf32>
    %45 = tpu.matmul %44, %21, %cst_18 {dimension_numbers = #tpu.dot_dimension_numbers<[1], [0], [0], [1], [0, 0, 1, 1], [], []>} : vector<64x16xf32>, vector<16x256xf32>, vector<64x256xf32> -> vector<64x256xf32>
    %46 = arith.mulf %36, %45 : vector<64x256xf32>
    %47 = arith.truncf %46 : vector<64x256xf32> to vector<64x256xbf16>
    %48 = vector.shape_cast %47 : vector<64x256xbf16> to vector<4x16x256xbf16>
    "tpu.trace_start"() <{level = 10 : i32, message = "bte,bed->btd"}> : () -> ()
    %cst_19 = arith.constant dense<0.000000e+00> : vector<4x16x128xf32>
    %49 = tpu.matmul %48, %29, %cst_19 {dimension_numbers = #tpu.dot_dimension_numbers<[2], [1], [1], [2], [0, 0, 0, 1, 1, 2], [0], [0]>} : vector<4x16x256xbf16>, vector<4x256x128xbf16>, vector<4x16x128xf32> -> vector<4x16x128xf32>
    "tpu.trace_stop"() : () -> ()
    %50 = vector.shape_cast %49 : vector<4x16x128xf32> to vector<64x128xf32>
    %51 = arith.truncf %50 : vector<64x128xf32> to vector<64x128xbf16>
    %c0_20 = arith.constant 0 : index
    %c0_21 = arith.constant 0 : index
    %52 = vector.load %arg4[%c0_20, %c0_21] : memref<128x128xbf16, #tpu.memory_space<vmem>>, vector<128x128xbf16>
    %cst_22 = arith.constant dense<0.000000e+00> : vector<64x128xf32>
    %53 = tpu.matmul %51, %52, %cst_22 {dimension_numbers = #tpu.dot_dimension_numbers<[1], [0], [0], [1], [0, 0, 1, 1], [], []>} : vector<64x128xbf16>, vector<128x128xbf16>, vector<64x128xf32> -> vector<64x128xf32>
    %c0_23 = arith.constant 0 : index
    %c0_24 = arith.constant 0 : index
    %54 = vector.load %arg5[%c0_23, %c0_24] : memref<1x128xf32, #tpu.memory_space<vmem>>, vector<1x128xf32>
    %55 = vector.broadcast %54 : vector<1x128xf32> to vector<64x128xf32>
    %56 = arith.addf %53, %55 : vector<64x128xf32>
    %57 = arith.addf %1, %56 : vector<64x128xf32>
    %cst_25 = arith.constant dense<0.000000e+00> : vector<64xf32>
    %58 = vector.multi_reduction <add>, %57, %cst_25 [1] : vector<64x128xf32> to vector<64xf32>
    %59 = vector.shape_cast %58 : vector<64xf32> to vector<64x1xf32>
    %cst_26 = arith.constant 1.280000e+02 : f32
    %60 = vector.broadcast %cst_26 : f32 to vector<64x1xf32>
    %61 = arith.divf %59, %60 : vector<64x1xf32>
    %62 = vector.broadcast %61 : vector<64x1xf32> to vector<64x128xf32>
    %63 = arith.subf %57, %62 : vector<64x128xf32>
    %64 = arith.mulf %63, %63 : vector<64x128xf32>
    %cst_27 = arith.constant dense<0.000000e+00> : vector<64xf32>
    %65 = vector.multi_reduction <add>, %64, %cst_27 [1] : vector<64x128xf32> to vector<64xf32>
    %66 = vector.shape_cast %65 : vector<64xf32> to vector<64x1xf32>
    %cst_28 = arith.constant 1.280000e+02 : f32
    %67 = vector.broadcast %cst_28 : f32 to vector<64x1xf32>
    %68 = arith.divf %66, %67 : vector<64x1xf32>
    %69 = vector.broadcast %61 : vector<64x1xf32> to vector<64x128xf32>
    %70 = arith.subf %57, %69 : vector<64x128xf32>
    %cst_29 = arith.constant 9.99999996E-13 : f32
    %71 = vector.broadcast %cst_29 : f32 to vector<64x1xf32>
    %72 = arith.addf %68, %71 : vector<64x1xf32>
    %73 = math.rsqrt %72 : vector<64x1xf32>
    %74 = vector.broadcast %73 : vector<64x1xf32> to vector<64x128xf32>
    %75 = arith.mulf %70, %74 : vector<64x128xf32>
    %c0_30 = arith.constant 0 : index
    %c0_31 = arith.constant 0 : index
    %76 = vector.load %arg9[%c0_30, %c0_31] : memref<1x128xf32, #tpu.memory_space<vmem>>, vector<1x128xf32>
    %77 = vector.broadcast %76 : vector<1x128xf32> to vector<64x128xf32>
    %78 = arith.mulf %75, %77 : vector<64x128xf32>
    %c0_32 = arith.constant 0 : index
    %c0_33 = arith.constant 0 : index
    %79 = vector.load %arg10[%c0_32, %c0_33] : memref<1x128xf32, #tpu.memory_space<vmem>>, vector<1x128xf32>
    %80 = vector.broadcast %79 : vector<1x128xf32> to vector<64x128xf32>
    %81 = arith.addf %78, %80 : vector<64x128xf32>
    %82 = arith.truncf %81 : vector<64x128xf32> to vector<64x128xbf16>
    %c0_34 = arith.constant 0 : index
    %c0_35 = arith.constant 0 : index
    %83 = vector.load %arg13[%c0_34, %c0_35] : memref<128x256xbf16, #tpu.memory_space<vmem>>, vector<128x256xbf16>
    %cst_36 = arith.constant dense<0.000000e+00> : vector<64x256xf32>
    %84 = tpu.matmul %82, %83, %cst_36 {dimension_numbers = #tpu.dot_dimension_numbers<[1], [0], [0], [1], [0, 0, 1, 1], [], []>} : vector<64x128xbf16>, vector<128x256xbf16>, vector<64x256xf32> -> vector<64x256xf32>
    %c0_37 = arith.constant 0 : index
    %c0_38 = arith.constant 0 : index
    %85 = vector.load %arg14[%c0_37, %c0_38] : memref<1x256xf32, #tpu.memory_space<vmem>>, vector<1x256xf32>
    %86 = vector.broadcast %85 : vector<1x256xf32> to vector<64x256xf32>
    %87 = arith.addf %84, %86 : vector<64x256xf32>
    %cst_39 = arith.constant 5.000000e-01 : f32
    %88 = vector.broadcast %cst_39 : f32 to vector<64x256xf32>
    %89 = arith.mulf %88, %87 : vector<64x256xf32>
    %cst_40 = arith.constant 0.707106769 : f32
    %90 = vector.broadcast %cst_40 : f32 to vector<64x256xf32>
    %91 = arith.mulf %87, %90 : vector<64x256xf32>
    %92 = math.erf %91 : vector<64x256xf32>
    %cst_41 = arith.constant 1.000000e+00 : f32
    %93 = vector.broadcast %cst_41 : f32 to vector<64x256xf32>
    %94 = arith.addf %93, %92 : vector<64x256xf32>
    %95 = arith.mulf %89, %94 : vector<64x256xf32>
    %96 = arith.truncf %95 : vector<64x256xf32> to vector<64x256xbf16>
    %c0_42 = arith.constant 0 : index
    %c0_43 = arith.constant 0 : index
    %97 = vector.load %arg15[%c0_42, %c0_43] : memref<256x128xbf16, #tpu.memory_space<vmem>>, vector<256x128xbf16>
    %cst_44 = arith.constant dense<0.000000e+00> : vector<64x128xf32>
    %98 = tpu.matmul %96, %97, %cst_44 {dimension_numbers = #tpu.dot_dimension_numbers<[1], [0], [0], [1], [0, 0, 1, 1], [], []>} : vector<64x256xbf16>, vector<256x128xbf16>, vector<64x128xf32> -> vector<64x128xf32>
    %c0_45 = arith.constant 0 : index
    %c0_46 = arith.constant 0 : index
    %99 = vector.load %arg16[%c0_45, %c0_46] : memref<1x128xf32, #tpu.memory_space<vmem>>, vector<1x128xf32>
    %100 = vector.broadcast %99 : vector<1x128xf32> to vector<64x128xf32>
    %101 = arith.addf %98, %100 : vector<64x128xf32>
    %102 = arith.addf %81, %101 : vector<64x128xf32>
    %cst_47 = arith.constant dense<0.000000e+00> : vector<64xf32>
    %103 = vector.multi_reduction <add>, %102, %cst_47 [1] : vector<64x128xf32> to vector<64xf32>
    %104 = vector.shape_cast %103 : vector<64xf32> to vector<64x1xf32>
    %cst_48 = arith.constant 1.280000e+02 : f32
    %105 = vector.broadcast %cst_48 : f32 to vector<64x1xf32>
    %106 = arith.divf %104, %105 : vector<64x1xf32>
    %107 = vector.broadcast %106 : vector<64x1xf32> to vector<64x128xf32>
    %108 = arith.subf %102, %107 : vector<64x128xf32>
    %109 = arith.mulf %108, %108 : vector<64x128xf32>
    %cst_49 = arith.constant dense<0.000000e+00> : vector<64xf32>
    %110 = vector.multi_reduction <add>, %109, %cst_49 [1] : vector<64x128xf32> to vector<64xf32>
    %111 = vector.shape_cast %110 : vector<64xf32> to vector<64x1xf32>
    %cst_50 = arith.constant 1.280000e+02 : f32
    %112 = vector.broadcast %cst_50 : f32 to vector<64x1xf32>
    %113 = arith.divf %111, %112 : vector<64x1xf32>
    %114 = vector.broadcast %106 : vector<64x1xf32> to vector<64x128xf32>
    %115 = arith.subf %102, %114 : vector<64x128xf32>
    %cst_51 = arith.constant 9.99999996E-13 : f32
    %116 = vector.broadcast %cst_51 : f32 to vector<64x1xf32>
    %117 = arith.addf %113, %116 : vector<64x1xf32>
    %118 = math.rsqrt %117 : vector<64x1xf32>
    %119 = vector.broadcast %118 : vector<64x1xf32> to vector<64x128xf32>
    %120 = arith.mulf %115, %119 : vector<64x128xf32>
    %c0_52 = arith.constant 0 : index
    %c0_53 = arith.constant 0 : index
    %121 = vector.load %arg11[%c0_52, %c0_53] : memref<1x128xf32, #tpu.memory_space<vmem>>, vector<1x128xf32>
    %122 = vector.broadcast %121 : vector<1x128xf32> to vector<64x128xf32>
    %123 = arith.mulf %120, %122 : vector<64x128xf32>
    %c0_54 = arith.constant 0 : index
    %c0_55 = arith.constant 0 : index
    %124 = vector.load %arg12[%c0_54, %c0_55] : memref<1x128xf32, #tpu.memory_space<vmem>>, vector<1x128xf32>
    %125 = vector.broadcast %124 : vector<1x128xf32> to vector<64x128xf32>
    %126 = arith.addf %123, %125 : vector<64x128xf32>
    %127 = vector.shape_cast %126 : vector<64x128xf32> to vector<4x16x128xf32>
    %c0_56 = arith.constant 0 : index
    %c0_57 = arith.constant 0 : index
    %c0_58 = arith.constant 0 : index
    %128 = vector.load %arg17[%c0_56, %c0_57, %c0_58] : memref<4x16x128xf32, #tpu.memory_space<vmem>>, vector<4x16x128xf32>
    tpu.vector_store %arg17[%c0_56, %c0_57, %c0_58], %127 {strides = array<i32>} : memref<4x16x128xf32, #tpu.memory_space<vmem>>, vector<4x16x128xf32>,
    return
  }
  func.func @transform_0(%arg0: i32) -> (i32, i32, i32) {
    %c0_i32 = arith.constant 0 : i32
    %c0_i32_0 = arith.constant 0 : i32
    %c0_i32_1 = arith.constant 0 : i32
    return %arg0, %c0_i32, %c0_i32_0 : i32, i32, i32
  }
  func.func @transform_1(%arg0: i32) -> (i32, i32) {
    %c0_i32 = arith.constant 0 : i32
    %c0_i32_0 = arith.constant 0 : i32
    %c0_i32_1 = arith.constant 0 : i32
    return %c0_i32, %c0_i32_0 : i32, i32
  }
  func.func @transform_2(%arg0: i32) -> (i32, i32) {
    %c0_i32 = arith.constant 0 : i32
    %c0_i32_0 = arith.constant 0 : i32
    %c0_i32_1 = arith.constant 0 : i32
    return %c0_i32, %c0_i32_0 : i32, i32
  }
  func.func @transform_3(%arg0: i32) -> (i32, i32) {
    %c0_i32 = arith.constant 0 : i32
    %c0_i32_0 = arith.constant 0 : i32
    %c0_i32_1 = arith.constant 0 : i32
    return %c0_i32, %c0_i32_0 : i32, i32
  }
  func.func @transform_4(%arg0: i32) -> (i32, i32) {
    %c0_i32 = arith.constant 0 : i32
    %c0_i32_0 = arith.constant 0 : i32
    %c0_i32_1 = arith.constant 0 : i32
    return %c0_i32, %c0_i32_0 : i32, i32
  }
  func.func @transform_5(%arg0: i32) -> (i32, i32) {
    %c0_i32 = arith.constant 0 : i32
    %c0_i32_0 = arith.constant 0 : i32
    %c0_i32_1 = arith.constant 0 : i32
    return %c0_i32, %c0_i32_0 : i32, i32
  }
  func.func @transform_6(%arg0: i32) -> (i32, i32) {
    %c0_i32 = arith.constant 0 : i32
    %c0_i32_0 = arith.constant 0 : i32
    %c0_i32_1 = arith.constant 0 : i32
    return %c0_i32, %c0_i32_0 : i32, i32
  }
  func.func @transform_7(%arg0: i32) -> (i32, i32) {
    %c0_i32 = arith.constant 0 : i32
    %c0_i32_0 = arith.constant 0 : i32
    %c0_i32_1 = arith.constant 0 : i32
    return %c0_i32, %c0_i32_0 : i32, i32
  }
  func.func @transform_8(%arg0: i32) -> (i32, i32) {
    %c0_i32 = arith.constant 0 : i32
    %c0_i32_0 = arith.constant 0 : i32
    %c0_i32_1 = arith.constant 0 : i32
    return %c0_i32, %c0_i32_0 : i32, i32
  }
  func.func @transform_9(%arg0: i32) -> (i32, i32) {
    %c0_i32 = arith.constant 0 : i32
    %c0_i32_0 = arith.constant 0 : i32
    %c0_i32_1 = arith.constant 0 : i32
    return %c0_i32, %c0_i32_0 : i32, i32
  }
  func.func @transform_10(%arg0: i32) -> (i32, i32) {
    %c0_i32 = arith.constant 0 : i32
    %c0_i32_0 = arith.constant 0 : i32
    %c0_i32_1 = arith.constant 0 : i32
    return %c0_i32, %c0_i32_0 : i32, i32
  }
  func.func @transform_11(%arg0: i32) -> (i32, i32) {
    %c0_i32 = arith.constant 0 : i32
    %c0_i32_0 = arith.constant 0 : i32
    %c0_i32_1 = arith.constant 0 : i32
    return %c0_i32, %c0_i32_0 : i32, i32
  }
  func.func @transform_12(%arg0: i32) -> (i32, i32) {
    %c0_i32 = arith.constant 0 : i32
    %c0_i32_0 = arith.constant 0 : i32
    %c0_i32_1 = arith.constant 0 : i32
    return %c0_i32, %c0_i32_0 : i32, i32
  }
  func.func @transform_13(%arg0: i32) -> (i32, i32) {
    %c0_i32 = arith.constant 0 : i32
    %c0_i32_0 = arith.constant 0 : i32
    %c0_i32_1 = arith.constant 0 : i32
    return %c0_i32, %c0_i32_0 : i32, i32
  }
  func.func @transform_14(%arg0: i32) -> (i32, i32) {
    %c0_i32 = arith.constant 0 : i32
    %c0_i32_0 = arith.constant 0 : i32
    %c0_i32_1 = arith.constant 0 : i32
    return %c0_i32, %c0_i32_0 : i32, i32
  }
  func.func @transform_15(%arg0: i32) -> (i32, i32) {
    %c0_i32 = arith.constant 0 : i32
    %c0_i32_0 = arith.constant 0 : i32
    %c0_i32_1 = arith.constant 0 : i32
    return %c0_i32, %c0_i32_0 : i32, i32
  }
  func.func @transform_16(%arg0: i32) -> (i32, i32, i32) {
    %c0_i32 = arith.constant 0 : i32
    %c0_i32_0 = arith.constant 0 : i32
    %c0_i32_1 = arith.constant 0 : i32
    return %arg0, %c0_i32, %c0_i32_0 : i32, i32, i32
  }
}

module attributes {stable_mosaic.version = 11 : i64} {
  func.func @_encoder_kernel(%arg0: i32, %arg1: memref<4x16x128xf32, #tpu.memory_space<vmem>>, %arg2: memref<128x384xbf16, #tpu.memory_space<vmem>>, %arg3: memref<1x384xf32, #tpu.memory_space<vmem>>, %arg4: memref<128x128xbf16, #tpu.memory_space<vmem>>, %arg5: memref<1x128xf32, #tpu.memory_space<vmem>>, %arg6: memref<256x128xbf16, #tpu.memory_space<vmem>>, %arg7: memref<256x16xf32, #tpu.memory_space<vmem>>, %arg8: memref<16x256xf32, #tpu.memory_space<vmem>>, %arg9: memref<1x128xf32, #tpu.memory_space<vmem>>, %arg10: memref<1x128xf32, #tpu.memory_space<vmem>>, %arg11: memref<1x128xf32, #tpu.memory_space<vmem>>, %arg12: memref<1x128xf32, #tpu.memory_space<vmem>>, %arg13: memref<128x256xbf16, #tpu.memory_space<vmem>>, %arg14: memref<1x256xf32, #tpu.memory_space<vmem>>, %arg15: memref<256x128xbf16, #tpu.memory_space<vmem>>, %arg16: memref<1x128xf32, #tpu.memory_space<vmem>>, %arg17: memref<4x16x128xf32, #tpu.memory_space<vmem>>) attributes {dimension_semantics = [#tpu.dimension_semantics<parallel>], iteration_bounds = array<i64: 1>, scalar_prefetch = 0 : i64, scratch_operands = 0 : i64, tpu.core_type = #tpu.core_type<tc>, window_params = [{transform_indices = @transform_0, window_bounds = array<i64: 4, 16, 128>}, {pipeline_mode = #tpu.pipeline_mode<synchronous>, transform_indices = @transform_1, window_bounds = array<i64: 128, 384>}, {pipeline_mode = #tpu.pipeline_mode<synchronous>, transform_indices = @transform_2, window_bounds = array<i64: 1, 384>}, {pipeline_mode = #tpu.pipeline_mode<synchronous>, transform_indices = @transform_3, window_bounds = array<i64: 128, 128>}, {pipeline_mode = #tpu.pipeline_mode<synchronous>, transform_indices = @transform_4, window_bounds = array<i64: 1, 128>}, {pipeline_mode = #tpu.pipeline_mode<synchronous>, transform_indices = @transform_5, window_bounds = array<i64: 256, 128>}, {pipeline_mode = #tpu.pipeline_mode<synchronous>, transform_indices = @transform_6, window_bounds = array<i64: 256, 16>}, {pipeline_mode = #tpu.pipeline_mode<synchronous>, transform_indices = @transform_7, window_bounds = array<i64: 16, 256>}, {pipeline_mode = #tpu.pipeline_mode<synchronous>, transform_indices = @transform_8, window_bounds = array<i64: 1, 128>}, {pipeline_mode = #tpu.pipeline_mode<synchronous>, transform_indices = @transform_9, window_bounds = array<i64: 1, 128>}, {pipeline_mode = #tpu.pipeline_mode<synchronous>, transform_indices = @transform_10, window_bounds = array<i64: 1, 128>}, {pipeline_mode = #tpu.pipeline_mode<synchronous>, transform_indices = @transform_11, window_bounds = array<i64: 1, 128>}, {pipeline_mode = #tpu.pipeline_mode<synchronous>, transform_indices = @transform_12, window_bounds = array<i64: 128, 256>}, {pipeline_mode = #tpu.pipeline_mode<synchronous>, transform_indices = @transform_13, window_bounds = array<i64: 1, 256>}, {pipeline_mode = #tpu.pipeline_mode<synchronous>, transform_indices = @transform_14, window_bounds = array<i64: 256, 128>}, {pipeline_mode = #tpu.pipeline_mode<synchronous>, transform_indices = @transform_15, window_bounds = array<i64: 1, 128>}, {transform_indices = @transform_16, window_bounds = array<i64: 4, 16, 128>}]} {
    %c0 = arith.constant 0 : index
    %c0_0 = arith.constant 0 : index
    %c0_1 = arith.constant 0 : index
    %0 = vector.load %arg1[%c0, %c0_0, %c0_1] : memref<4x16x128xf32, #tpu.memory_space<vmem>>, vector<4x16x128xf32>
    %1 = vector.shape_cast %0 : vector<4x16x128xf32> to vector<64x128xf32>
    %2 = arith.truncf %1 : vector<64x128xf32> to vector<64x128xbf16>
    %c0_2 = arith.constant 0 : index
    %c0_3 = arith.constant 0 : index
    %3 = vector.load %arg2[%c0_2, %c0_3] : memref<128x384xbf16, #tpu.memory_space<vmem>>, vector<128x384xbf16>
    %cst = arith.constant dense<0.000000e+00> : vector<64x384xf32>
    %4 = tpu.matmul %2, %3, %cst {dimension_numbers = #tpu.dot_dimension_numbers<[1], [0], [0], [1], [0, 0, 1, 1], [], []>} : vector<64x128xbf16>, vector<128x384xbf16>, vector<64x384xf32> -> vector<64x384xf32>
    %c0_4 = arith.constant 0 : index
    %c0_5 = arith.constant 0 : index
    %5 = vector.load %arg3[%c0_4, %c0_5] : memref<1x384xf32, #tpu.memory_space<vmem>>, vector<1x384xf32>
    %6 = vector.broadcast %5 : vector<1x384xf32> to vector<64x384xf32>
    %7 = arith.addf %4, %6 : vector<64x384xf32>
    %8 = vector.extract_strided_slice %7 {offsets = [0, 0], sizes = [64, 128], strides = [1, 1]} : vector<64x384xf32> to vector<64x128xf32>
    %cst_6 = arith.constant 0.353553385 : f32
    %9 = vector.broadcast %cst_6 : f32 to vector<64x128xf32>
    %10 = arith.mulf %8, %9 : vector<64x128xf32>
    %11 = arith.truncf %10 : vector<64x128xf32> to vector<64x128xbf16>
    %12 = vector.shape_cast %11 : vector<64x128xbf16> to vector<4x16x128xbf16>
    %13 = vector.extract_strided_slice %7 {offsets = [0, 128], sizes = [64, 128], strides = [1, 1]} : vector<64x384xf32> to vector<64x128xf32>
    %14 = arith.truncf %13 : vector<64x128xf32> to vector<64x128xbf16>
    %15 = vector.shape_cast %14 : vector<64x128xbf16> to vector<4x16x128xbf16>
    %16 = vector.extract_strided_slice %7 {offsets = [0, 256], sizes = [64, 128], strides = [1, 1]} : vector<64x384xf32> to vector<64x128xf32>
    %17 = arith.truncf %16 : vector<64x128xf32> to vector<64x128xbf16>
    %18 = vector.shape_cast %17 : vector<64x128xbf16> to vector<4x16x128xbf16>
    %c0_7 = arith.constant 0 : index
    %c0_8 = arith.constant 0 : index
    %19 = vector.load %arg6[%c0_7, %c0_8] : memref<256x128xbf16, #tpu.memory_space<vmem>>, vector<256x128xbf16>
    %c0_9 = arith.constant 0 : index
    %c0_10 = arith.constant 0 : index
    %20 = vector.load %arg7[%c0_9, %c0_10] : memref<256x16xf32, #tpu.memory_space<vmem>>, vector<256x16xf32>
    %c0_11 = arith.constant 0 : index
    %c0_12 = arith.constant 0 : index
    %21 = vector.load %arg8[%c0_11, %c0_12] : memref<16x256xf32, #tpu.memory_space<vmem>>, vector<16x256xf32>
    %22 = tpu.concatenate %15, %15, %15, %15, %15, %15, %15, %15, %15, %15, %15, %15, %15, %15, %15, %15 in 1 : vector<4x16x128xbf16>, vector<4x16x128xbf16>, vector<4x16x128xbf16>, vector<4x16x128xbf16>, vector<4x16x128xbf16>, vector<4x16x128xbf16>, vector<4x16x128xbf16>, vector<4x16x128xbf16>, vector<4x16x128xbf16>, vector<4x16x128xbf16>, vector<4x16x128xbf16>, vector<4x16x128xbf16>, vector<4x16x128xbf16>, vector<4x16x128xbf16>, vector<4x16x128xbf16>, vector<4x16x128xbf16> -> vector<4x256x128xbf16>
    %23 = vector.shape_cast %19 : vector<256x128xbf16> to vector<1x256x128xbf16>
    %24 = vector.broadcast %23 : vector<1x256x128xbf16> to vector<4x256x128xbf16>
    %25 = arith.mulf %22, %24 : vector<4x256x128xbf16>
    %26 = tpu.concatenate %18, %18, %18, %18, %18, %18, %18, %18, %18, %18, %18, %18, %18, %18, %18, %18 in 1 : vector<4x16x128xbf16>, vector<4x16x128xbf16>, vector<4x16x128xbf16>, vector<4x16x128xbf16>, vector<4x16x128xbf16>, vector<4x16x128xbf16>, vector<4x16x128xbf16>, vector<4x16x128xbf16>, vector<4x16x128xbf16>, vector<4x16x128xbf16>, vector<4x16x128xbf16>, vector<4x16x128xbf16>, vector<4x16x128xbf16>, vector<4x16x128xbf16>, vector<4x16x128xbf16>, vector<4x16x128xbf16> -> vector<4x256x128xbf16>
    %27 = vector.shape_cast %19 : vector<256x128xbf16> to vector<1x256x128xbf16>
    %28 = vector.broadcast %27 : vector<1x256x128xbf16> to vector<4x256x128xbf16>
    %29 = arith.mulf %26, %28 : vector<4x256x128xbf16>
    "tpu.trace_start"() <{level = 10 : i32, message = "btd,bed->bte"}> : () -> ()
    %cst_13 = arith.constant dense<0.000000e+00> : vector<4x16x256xf32>
    %30 = tpu.matmul %12, %25, %cst_13 {dimension_numbers = #tpu.dot_dimension_numbers<[2], [2], [1], [1], [0, 0, 0, 1, 1, 1], [0], [0]>} : vector<4x16x128xbf16>, vector<4x256x128xbf16>, vector<4x16x256xf32> -> vector<4x16x256xf32>
    "tpu.trace_stop"() : () -> ()
    %cst_14 = arith.constant dense<0xFF800000> : vector<4x16xf32>
    %31 = vector.multi_reduction <maximumf>, %30, %cst_14 [2] : vector<4x16x256xf32> to vector<4x16xf32>
    %32 = vector.shape_cast %31 : vector<4x16xf32> to vector<4x16x1xf32>
    %33 = vector.broadcast %32 : vector<4x16x1xf32> to vector<4x16x256xf32>
    %34 = arith.subf %30, %33 : vector<4x16x256xf32>
    %35 = math.exp %34 : vector<4x16x256xf32>
    %36 = vector.shape_cast %35 : vector<4x16x256xf32> to vector<64x256xf32>
    %cst_15 = arith.constant dense<0.000000e+00> : vector<64x16xf32>
    %37 = tpu.matmul %36, %20, %cst_15 {dimension_numbers = #tpu.dot_dimension_numbers<[1], [0], [0], [1], [0, 0, 1, 1], [], []>} : vector<64x256xf32>, vector<256x16xf32>, vector<64x16xf32> -> vector<64x16xf32>
    %cst_16 = arith.constant 1.000000e-30 : f32
    %38 = vector.broadcast %cst_16 : f32 to vector<64x16xf32>
    %39 = arith.maximumf %37, %38 : vector<64x16xf32>
    %40 = tpu.reciprocal %39 {approx = true} : vector<64x16xf32> -> vector<64x16xf32>
    %41 = arith.mulf %39, %40 : vector<64x16xf32>
    %cst_17 = arith.constant 2.000000e+00 : f32
    %42 = vector.broadcast %cst_17 : f32 to vector<64x16xf32>
    %43 = arith.subf %42, %41 : vector<64x16xf32>
    %44 = arith.mulf %40, %43 : vector<64x16xf32>
    %cst_18 = arith.constant dense<0.000000e+00> : vector<64x256xf32>
    %45 = tpu.matmul %44, %21, %cst_18 {dimension_numbers = #tpu.dot_dimension_numbers<[1], [0], [0], [1], [0, 0, 1, 1], [], []>} : vector<64x16xf32>, vector<16x256xf32>, vector<64x256xf32> -> vector<64x256xf32>
    %46 = arith.mulf %36, %45 : vector<64x256xf32>
    %47 = arith.truncf %46 : vector<64x256xf32> to vector<64x256xbf16>
    %48 = vector.shape_cast %47 : vector<64x256xbf16> to vector<4x16x256xbf16>
    "tpu.trace_start"() <{level = 10 : i32, message = "bte,bed->btd"}> : () -> ()
    %cst_19 = arith.constant dense<0.000000e+00> : vector<4x16x128xf32>
    %49 = tpu.matmul %48, %29, %cst_19 {dimension_numbers = #tpu.dot_dimension_numbers<[2], [1], [1], [2], [0, 0, 0, 1, 1, 2], [0], [0]>} : vector<4x16x256xbf16>, vector<4x256x128xbf16>, vector<4x16x128xf32> -> vector<4x16x128xf32>
    "tpu.trace_stop"() : () -> ()
    %50 = vector.shape_cast %49 : vector<4x16x128xf32> to vector<64x128xf32>
    %51 = arith.truncf %50 : vector<64x128xf32> to vector<64x128xbf16>
    %c0_20 = arith.constant 0 : index
    %c0_21 = arith.constant 0 : index
    %52 = vector.load %arg4[%c0_20, %c0_21] : memref<128x128xbf16, #tpu.memory_space<vmem>>, vector<128x128xbf16>
    %cst_22 = arith.constant dense<0.000000e+00> : vector<64x128xf32>
    %53 = tpu.matmul %51, %52, %cst_22 {dimension_numbers = #tpu.dot_dimension_numbers<[1], [0], [0], [1], [0, 0, 1, 1], [], []>} : vector<64x128xbf16>, vector<128x128xbf16>, vector<64x128xf32> -> vector<64x128xf32>
    %c0_23 = arith.constant 0 : index
    %c0_24 = arith.constant 0 : index
    %54 = vector.load %arg5[%c0_23, %c0_24] : memref<1x128xf32, #tpu.memory_space<vmem>>, vector<1x128xf32>
    %55 = vector.broadcast %54 : vector<1x128xf32> to vector<64x128xf32>
    %56 = arith.addf %53, %55 : vector<64x128xf32>
    %57 = arith.addf %1, %56 : vector<64x128xf32>
    %cst_25 = arith.constant dense<0.000000e+00> : vector<64xf32>
    %58 = vector.multi_reduction <add>, %57, %cst_25 [1] : vector<64x128xf32> to vector<64xf32>
    %59 = vector.shape_cast %58 : vector<64xf32> to vector<64x1xf32>
    %cst_26 = arith.constant 1.280000e+02 : f32
    %60 = vector.broadcast %cst_26 : f32 to vector<64x1xf32>
    %61 = arith.divf %59, %60 : vector<64x1xf32>
    %62 = vector.broadcast %61 : vector<64x1xf32> to vector<64x128xf32>
    %63 = arith.subf %57, %62 : vector<64x128xf32>
    %64 = arith.mulf %63, %63 : vector<64x128xf32>
    %cst_27 = arith.constant dense<0.000000e+00> : vector<64xf32>
    %65 = vector.multi_reduction <add>, %64, %cst_27 [1] : vector<64x128xf32> to vector<64xf32>
    %66 = vector.shape_cast %65 : vector<64xf32> to vector<64x1xf32>
    %cst_28 = arith.constant 1.280000e+02 : f32
    %67 = vector.broadcast %cst_28 : f32 to vector<64x1xf32>
    %68 = arith.divf %66, %67 : vector<64x1xf32>
    %69 = vector.broadcast %61 : vector<64x1xf32> to vector<64x128xf32>
    %70 = arith.subf %57, %69 : vector<64x128xf32>
    %cst_29 = arith.constant 9.99999996E-13 : f32
    %71 = vector.broadcast %cst_29 : f32 to vector<64x1xf32>
    %72 = arith.addf %68, %71 : vector<64x1xf32>
    %73 = math.rsqrt %72 : vector<64x1xf32>
    %74 = vector.broadcast %73 : vector<64x1xf32> to vector<64x128xf32>
    %75 = arith.mulf %70, %74 : vector<64x128xf32>
    %c0_30 = arith.constant 0 : index
    %c0_31 = arith.constant 0 : index
    %76 = vector.load %arg9[%c0_30, %c0_31] : memref<1x128xf32, #tpu.memory_space<vmem>>, vector<1x128xf32>
    %77 = vector.broadcast %76 : vector<1x128xf32> to vector<64x128xf32>
    %78 = arith.mulf %75, %77 : vector<64x128xf32>
    %c0_32 = arith.constant 0 : index
    %c0_33 = arith.constant 0 : index
    %79 = vector.load %arg10[%c0_32, %c0_33] : memref<1x128xf32, #tpu.memory_space<vmem>>, vector<1x128xf32>
    %80 = vector.broadcast %79 : vector<1x128xf32> to vector<64x128xf32>
    %81 = arith.addf %78, %80 : vector<64x128xf32>
    %82 = arith.truncf %81 : vector<64x128xf32> to vector<64x128xbf16>
    %c0_34 = arith.constant 0 : index
    %c0_35 = arith.constant 0 : index
    %83 = vector.load %arg13[%c0_34, %c0_35] : memref<128x256xbf16, #tpu.memory_space<vmem>>, vector<128x256xbf16>
    %cst_36 = arith.constant dense<0.000000e+00> : vector<64x256xf32>
    %84 = tpu.matmul %82, %83, %cst_36 {dimension_numbers = #tpu.dot_dimension_numbers<[1], [0], [0], [1], [0, 0, 1, 1], [], []>} : vector<64x128xbf16>, vector<128x256xbf16>, vector<64x256xf32> -> vector<64x256xf32>
    %c0_37 = arith.constant 0 : index
    %c0_38 = arith.constant 0 : index
    %85 = vector.load %arg14[%c0_37, %c0_38] : memref<1x256xf32, #tpu.memory_space<vmem>>, vector<1x256xf32>
    %86 = vector.broadcast %85 : vector<1x256xf32> to vector<64x256xf32>
    %87 = arith.addf %84, %86 : vector<64x256xf32>
    %cst_39 = arith.constant 5.000000e-01 : f32
    %88 = vector.broadcast %cst_39 : f32 to vector<64x256xf32>
    %89 = arith.mulf %88, %87 : vector<64x256xf32>
    %cst_40 = arith.constant 0.707106769 : f32
    %90 = vector.broadcast %cst_40 : f32 to vector<64x256xf32>
    %91 = arith.mulf %87, %90 : vector<64x256xf32>
    %92 = math.erf %91 : vector<64x256xf32>
    %cst_41 = arith.constant 1.000000e+00 : f32
    %93 = vector.broadcast %cst_41 : f32 to vector<64x256xf32>
    %94 = arith.addf %93, %92 : vector<64x256xf32>
    %95 = arith.mulf %89, %94 : vector<64x256xf32>
    %96 = arith.truncf %95 : vector<64x256xf32> to vector<64x256xbf16>
    %c0_42 = arith.constant 0 : index
    %c0_43 = arith.constant 0 : index
    %97 = vector.load %arg15[%c0_42, %c0_43] : memref<256x128xbf16, #tpu.memory_space<vmem>>, vector<256x128xbf16>
    %cst_44 = arith.constant dense<0.000000e+00> : vector<64x128xf32>
    %98 = tpu.matmul %96, %97, %cst_44 {dimension_numbers = #tpu.dot_dimension_numbers<[1], [0], [0], [1], [0, 0, 1, 1], [], []>} : vector<64x256xbf16>, vector<256x128xbf16>, vector<64x128xf32> -> vector<64x128xf32>
    %c0_45 = arith.constant 0 : index
    %c0_46 = arith.constant 0 : index
    %99 = vector.load %arg16[%c0_45, %c0_46] : memref<1x128xf32, #tpu.memory_space<vmem>>, vector<1x128xf32>
    %100 = vector.broadcast %99 : vector<1x128xf32> to vector<64x128xf32>
    %101 = arith.addf %98, %100 : vector<64x128xf32>
    %102 = arith.addf %81, %101 : vector<64x128xf32>
    %cst_47 = arith.constant dense<0.000000e+00> : vector<64xf32>
    %103 = vector.multi_reduction <add>, %102, %cst_47 [1] : vector<64x128xf32> to vector<64xf32>
    %104 = vector.shape_cast %103 : vector<64xf32> to vector<64x1xf32>
    %cst_48 = arith.constant 1.280000e+02 : f32
    %105 = vector.broadcast %cst_48 : f32 to vector<64x1xf32>
    %106 = arith.divf %104, %105 : vector<64x1xf32>
    %107 = vector.broadcast %106 : vector<64x1xf32> to vector<64x128xf32>
    %108 = arith.subf %102, %107 : vector<64x128xf32>
    %109 = arith.mulf %108, %108 : vector<64x128xf32>
    %cst_49 = arith.constant dense<0.000000e+00> : vector<64xf32>
    %110 = vector.multi_reduction <add>, %109, %cst_49 [1] : vector<64x128xf32> to vector<64xf32>
    %111 = vector.shape_cast %110 : vector<64xf32> to vector<64x1xf32>
    %cst_50 = arith.constant 1.280000e+02 : f32
    %112 = vector.broadcast %cst_50 : f32 to vector<64x1xf32>
    %113 = arith.divf %111, %112 : vector<64x1xf32>
    %114 = vector.broadcast %106 : vector<64x1xf32> to vector<64x128xf32>
    %115 = arith.subf %102, %114 : vector<64x128xf32>
    %cst_51 = arith.constant 9.99999996E-13 : f32
    %116 = vector.broadcast %cst_51 : f32 to vector<64x1xf32>
    %117 = arith.addf %113, %116 : vector<64x1xf32>
    %118 = math.rsqrt %117 : vector<64x1xf32>
    %119 = vector.broadcast %118 : vector<64x1xf32> to vector<64x128xf32>
    %120 = arith.mulf %115, %119 : vector<64x128xf32>
    %c0_52 = arith.constant 0 : index
    %c0_53 = arith.constant 0 : index
    %121 = vector.load %arg11[%c0_52, %c0_53] : memref<1x128xf32, #tpu.memory_space<vmem>>, vector<1x128xf32>
    %122 = vector.broadcast %121 : vector<1x128xf32> to vector<64x128xf32>
    %123 = arith.mulf %120, %122 : vector<64x128xf32>
    %c0_54 = arith.constant 0 : index
    %c0_55 = arith.constant 0 : index
    %124 = vector.load %arg12[%c0_54, %c0_55] : memref<1x128xf32, #tpu.memory_space<vmem>>, vector<1x128xf32>
    %125 = vector.broadcast %124 : vector<1x128xf32> to vector<64x128xf32>
    %126 = arith.addf %123, %125 : vector<64x128xf32>
    %127 = vector.shape_cast %126 : vector<64x128xf32> to vector<4x16x128xf32>
    %c0_56 = arith.constant 0 : index
    %c0_57 = arith.constant 0 : index
    %c0_58 = arith.constant 0 : index
    %128 = vector.load %arg17[%c0_56, %c0_57, %c0_58] : memref<4x16x128xf32, #tpu.memory_space<vmem>>, vector<4x16x128xf32>
    tpu.vector_store %arg17[%c0_56, %c0_57, %c0_58], %127 {strides = array<i32>} : memref<4x16x128xf32, #tpu.memory_space<vmem>>, vector<4x16x128xf32>,
    return
  }
  func.func @transform_0(%arg0: i32) -> (i32, i32, i32) {
    %c0_i32 = arith.constant 0 : i32
    %c0_i32_0 = arith.constant 0 : i32
    %c0_i32_1 = arith.constant 0 : i32
    return %arg0, %c0_i32, %c0_i32_0 : i32, i32, i32
  }
  func.func @transform_1(%arg0: i32) -> (i32, i32) {
    %c0_i32 = arith.constant 0 : i32
    %c0_i32_0 = arith.constant 0 : i32
    %c0_i32_1 = arith.constant 0 : i32
    return %c0_i32, %c0_i32_0 : i32, i32
  }
  func.func @transform_2(%arg0: i32) -> (i32, i32) {
    %c0_i32 = arith.constant 0 : i32
    %c0_i32_0 = arith.constant 0 : i32
    %c0_i32_1 = arith.constant 0 : i32
    return %c0_i32, %c0_i32_0 : i32, i32
  }
  func.func @transform_3(%arg0: i32) -> (i32, i32) {
    %c0_i32 = arith.constant 0 : i32
    %c0_i32_0 = arith.constant 0 : i32
    %c0_i32_1 = arith.constant 0 : i32
    return %c0_i32, %c0_i32_0 : i32, i32
  }
  func.func @transform_4(%arg0: i32) -> (i32, i32) {
    %c0_i32 = arith.constant 0 : i32
    %c0_i32_0 = arith.constant 0 : i32
    %c0_i32_1 = arith.constant 0 : i32
    return %c0_i32, %c0_i32_0 : i32, i32
  }
  func.func @transform_5(%arg0: i32) -> (i32, i32) {
    %c0_i32 = arith.constant 0 : i32
    %c0_i32_0 = arith.constant 0 : i32
    %c0_i32_1 = arith.constant 0 : i32
    return %c0_i32, %c0_i32_0 : i32, i32
  }
  func.func @transform_6(%arg0: i32) -> (i32, i32) {
    %c0_i32 = arith.constant 0 : i32
    %c0_i32_0 = arith.constant 0 : i32
    %c0_i32_1 = arith.constant 0 : i32
    return %c0_i32, %c0_i32_0 : i32, i32
  }
  func.func @transform_7(%arg0: i32) -> (i32, i32) {
    %c0_i32 = arith.constant 0 : i32
    %c0_i32_0 = arith.constant 0 : i32
    %c0_i32_1 = arith.constant 0 : i32
    return %c0_i32, %c0_i32_0 : i32, i32
  }
  func.func @transform_8(%arg0: i32) -> (i32, i32) {
    %c0_i32 = arith.constant 0 : i32
    %c0_i32_0 = arith.constant 0 : i32
    %c0_i32_1 = arith.constant 0 : i32
    return %c0_i32, %c0_i32_0 : i32, i32
  }
  func.func @transform_9(%arg0: i32) -> (i32, i32) {
    %c0_i32 = arith.constant 0 : i32
    %c0_i32_0 = arith.constant 0 : i32
    %c0_i32_1 = arith.constant 0 : i32
    return %c0_i32, %c0_i32_0 : i32, i32
  }
  func.func @transform_10(%arg0: i32) -> (i32, i32) {
    %c0_i32 = arith.constant 0 : i32
    %c0_i32_0 = arith.constant 0 : i32
    %c0_i32_1 = arith.constant 0 : i32
    return %c0_i32, %c0_i32_0 : i32, i32
  }
  func.func @transform_11(%arg0: i32) -> (i32, i32) {
    %c0_i32 = arith.constant 0 : i32
    %c0_i32_0 = arith.constant 0 : i32
    %c0_i32_1 = arith.constant 0 : i32
    return %c0_i32, %c0_i32_0 : i32, i32
  }
  func.func @transform_12(%arg0: i32) -> (i32, i32) {
    %c0_i32 = arith.constant 0 : i32
    %c0_i32_0 = arith.constant 0 : i32
    %c0_i32_1 = arith.constant 0 : i32
    return %c0_i32, %c0_i32_0 : i32, i32
  }
  func.func @transform_13(%arg0: i32) -> (i32, i32) {
    %c0_i32 = arith.constant 0 : i32
    %c0_i32_0 = arith.constant 0 : i32
    %c0_i32_1 = arith.constant 0 : i32
    return %c0_i32, %c0_i32_0 : i32, i32
  }
  func.func @transform_14(%arg0: i32) -> (i32, i32) {
    %c0_i32 = arith.constant 0 : i32
    %c0_i32_0 = arith.constant 0 : i32
    %c0_i32_1 = arith.constant 0 : i32
    return %c0_i32, %c0_i32_0 : i32, i32
  }
  func.func @transform_15(%arg0: i32) -> (i32, i32) {
    %c0_i32 = arith.constant 0 : i32
    %c0_i32_0 = arith.constant 0 : i32
    %c0_i32_1 = arith.constant 0 : i32
    return %c0_i32, %c0_i32_0 : i32, i32
  }
  func.func @transform_16(%arg0: i32) -> (i32, i32, i32) {
    %c0_i32 = arith.constant 0 : i32
    %c0_i32_0 = arith.constant 0 : i32
    %c0_i32_1 = arith.constant 0 : i32
    return %arg0, %c0_i32, %c0_i32_0 : i32, i32, i32
  }
}

</mosaic_0001>

<bundles_post_ra>
// kernel: tpu_custom_call.1
= control target key start
LH: loop header
LB: loop body
LE: loop exit
PB: predicated region body
PF: predicated region fallthrough
CT: control target
= control target key end

     0   :  { %s4566_s0 = inlined_call_operand.hbm [shape: f32[4,16,128], index: 0, kind: input, shape index: {}]   ;;  %s4567_s1 = inlined_call_operand.hbm [shape: bf16[128,384], index: 1, kind: input, shape index: {}]   ;;  %s4568_s2 = inlined_call_operand.hbm [shape: f32[1,384], index: 2, kind: input, shape index: {}]   ;;  %s4569_s3 = inlined_call_operand.hbm [shape: bf16[128,128], index: 3, kind: input, shape index: {}]   ;;  %s4570_s4 = inlined_call_operand.hbm [shape: f32[1,128], index: 4, kind: input, shape index: {}]   ;;  %s4571_s5 = inlined_call_operand.hbm [shape: bf16[256,128], index: 5, kind: input, shape index: {}]   ;;  %s4572_s6 = inlined_call_operand.hbm [shape: f32[256,16], index: 6, kind: input, shape index: {}]   ;;  %s4573_s7 = inlined_call_operand.hbm [shape: f32[16,256], index: 7, kind: input, shape index: {}]   ;;  %s4574_s8 = inlined_call_operand.hbm [shape: f32[1,128], index: 8, kind: input, shape index: {}]   ;;  %s4575_s9 = inlined_call_operand.hbm [shape: f32[1,128], index: 9, kind: input, shape index: {}]   ;;  %s4576_s10 = inlined_call_operand.hbm [shape: f32[1,128], index: 10, kind: input, shape index: {}]   ;;  %s4577_s11 = inlined_call_operand.hbm [shape: f32[1,128], index: 11, kind: input, shape index: {}]   ;;  %s4578_s12 = inlined_call_operand.hbm [shape: bf16[128,256], index: 12, kind: input, shape index: {}]   ;;  %s4579_s13 = inlined_call_operand.hbm [shape: f32[1,256], index: 13, kind: input, shape index: {}]   ;;  %s4580_s14 = inlined_call_operand.hbm [shape: bf16[256,128], index: 14, kind: input, shape index: {}]   ;;  %s4581_s15 = inlined_call_operand.hbm [shape: f32[1,128], index: 15, kind: input, shape index: {}]   ;;  %s4582_s16 = inlined_call_operand.hbm [shape: f32[4,16,128], index: 16, kind: output, shape index: {}]  }
   0x1   :  { %4584 = sst [smem:[#allocation39_spill]] %s4566_s0 }
   0x2   :  { %21 = vsyncpa [#allocation3], 0 }
   0x3   :  { %22 = vsyncpa [#allocation6], 0 }
   0x4   :  { %23 = vsyncpa [#allocation9], 0 }
   0x5   :  { %24 = vsyncpa [#allocation12], 0 }
   0x6   :  { %25 = vsyncpa [#allocation15], 0 }
   0x7   :  { %26 = vsyncpa [#allocation18], 0 }
   0x8   :  { %27 = vsyncpa [#allocation21], 0 }
   0x9   :  { %28 = vsyncpa [#allocation24], 0 }
   0xa   :  { %29 = vsyncpa [#allocation27], 0 }
   0xb   :  { %30 = vsyncpa [#allocation4], 0  ;;  %s3620_s21 = smov [#allocation5]   ;;  %s3226_s25 = scalar_lea.hbm %s4567_s1, 3072 }
   0xc   :  { %s48_s22 = sshll.u32 %s3620_s21, 4  ;;  %p3227_p0 = scmp.ne.s32.totalorder %s4567_s1, %s3226_s25  ;;  %s49_s22 = int_to_ptr.vmem [resolvable:$true] %s48_s22 }
   0xd   :  { %p3230_p1 = scmp.lt.u32.totalorder %s3226_s25, %s4567_s1 }
   0xf   :  { %p3232_p2 = pnand %p3230_p1, %p3227_p0 }
  0x11   :  { %3235 = shalt.err (!%p3232_p2)
}
  0x12   :  { %s3236_s30 = scalar_lea.vmem %s49_s22, 3072  ;;  %p3241_p4 = scmp.lt.s32.totalorder %s49_s22, %s49_s22 }
  0x13   :  { %p3237_p3 = scmp.ne.s32.totalorder %s49_s22, %s3236_s30  ;;  %p3242_p5 = scmp.lt.s32.totalorder %s3236_s30, %s3236_s30 }
  0x15   :  { %p3243_p6 = por %p3242_p5, %p3241_p4 }
  0x17   :  { %p3244_p7 = pnand %p3243_p6, %p3237_p3 }
  0x19   :  { %3247 = shalt.err (!%p3244_p7)
}
  0x1a   :  { %s3621_s0 = smov 192   ;;  %s3622_s17 = smov 12  }
  0x1b   :  { %54 = dma.hbm_to_vmem [thread:$0]  %s4567_s1, 3072, %s49_s22, [#allocation6], %s3621_s0, %s3621_s0, %s3622_s17  }
  0x1c   :  { %s3623_s20 = smov [#allocation8]   ;;  %s3248_s25 = scalar_lea.hbm %s4569_s3, 1024 }
  0x1d   :  { %s70_s21 = sshll.u32 %s3623_s20, 4  ;;  %p3249_p8 = scmp.ne.s32.totalorder %s4569_s3, %s3248_s25  ;;  %s71_s21 = int_to_ptr.vmem [resolvable:$true] %s70_s21 }
  0x1e   :  { %p3252_p9 = scmp.lt.u32.totalorder %s3248_s25, %s4569_s3 }
  0x20   :  { %p3254_p10 = pnand %p3252_p9, %p3249_p8 }
  0x22   :  { %3257 = shalt.err (!%p3254_p10)
}
  0x23   :  { %s3258_s30 = scalar_lea.vmem %s71_s21, 1024  ;;  %p3263_p12 = scmp.lt.s32.totalorder %s71_s21, %s71_s21 }
  0x24   :  { %p3259_p11 = scmp.ne.s32.totalorder %s71_s21, %s3258_s30  ;;  %p3264_p13 = scmp.lt.s32.totalorder %s3258_s30, %s3258_s30 }
  0x26   :  { %p3265_p0 = por %p3264_p13, %p3263_p12 }
  0x28   :  { %p3266_p1 = pnand %p3265_p0, %p3259_p11 }
  0x2a   :  { %3269 = shalt.err (!%p3266_p1)
}
  0x2b   :  { %s3624_s1 = smov 64   ;;  %s3625_s22 = smov 4  }
  0x2c   :  { %76 = dma.hbm_to_vmem [thread:$0]  %s4569_s3, 1024, %s71_s21, [#allocation9], %s3624_s1, %s3624_s1, %s3625_s22  }
  0x2d   :  { %s3626_s18 = smov [#allocation11]   ;;  %s3627_s20 = smov [#allocation14]  }
  0x2e   :  { %s92_s19 = sshll.u32 %s3626_s18, 4  ;;  %s116_s23 = sshll.u32 %s3627_s20, 4  ;;  %s93_s19 = int_to_ptr.vmem [resolvable:$true] %s92_s19  ;;  %s3759_s23 = int_to_ptr.vmem [resolvable:$true] %s116_s23 }
  0x2f   :  { %s3270_s26 = scalar_lea.hbm %s4571_s5, 2048 }
  0x30   :  { %p3271_p2 = scmp.ne.s32.totalorder %s4571_s5, %s3270_s26  ;;  %p3274_p3 = scmp.lt.u32.totalorder %s3270_s26, %s4571_s5 }
  0x32   :  { %p3276_p4 = pnand %p3274_p3, %p3271_p2 }
  0x34   :  { %3279 = shalt.err (!%p3276_p4)
}
  0x35   :  { %s3280_s3 = scalar_lea.vmem %s93_s19, 2048  ;;  %p3285_p6 = scmp.lt.s32.totalorder %s93_s19, %s93_s19 }
  0x36   :  { %p3281_p5 = scmp.ne.s32.totalorder %s93_s19, %s3280_s3  ;;  %p3286_p7 = scmp.lt.s32.totalorder %s3280_s3, %s3280_s3 }
  0x38   :  { %p3287_p8 = por %p3286_p7, %p3285_p6 }
  0x3a   :  { %p3288_p9 = pnand %p3287_p8, %p3281_p5 }
  0x3c   :  { %3291 = shalt.err (!%p3288_p9)
}
  0x3d   :  { %98 = dma.hbm_to_vmem [thread:$0]  %s4571_s5, 2048, %s93_s19, [#allocation12], %s3624_s1, %s3624_s1, %s3625_s22  }
  0x3e   :  { %s3292_s20 = scalar_lea.hbm %s4573_s7, 512 }
  0x3f   :  { %p3293_p10 = scmp.ne.s32.totalorder %s4573_s7, %s3292_s20  ;;  %p3296_p11 = scmp.lt.u32.totalorder %s3292_s20, %s4573_s7 }
  0x41   :  { %p3298_p12 = pnand %p3296_p11, %p3293_p10 }
  0x43   :  { %3301 = shalt.err (!%p3298_p12)
}
  0x44   :  { %s3302_s28 = scalar_lea.vmem %s3759_s23, 512  ;;  %p3307_p0 = scmp.lt.s32.totalorder %s3759_s23, %s3759_s23 }
  0x45   :  { %p3303_p13 = scmp.ne.s32.totalorder %s3759_s23, %s3302_s28  ;;  %p3308_p1 = scmp.lt.s32.totalorder %s3302_s28, %s3302_s28 }
  0x47   :  { %p3309_p2 = por %p3308_p1, %p3307_p0 }
  0x49   :  { %p3310_p3 = pnand %p3309_p2, %p3303_p13 }
  0x4b   :  { %3313 = shalt.err (!%p3310_p3)
}
  0x4c   :  { %s3628_s5 = smov 256   ;;  %s3629_s19 = smov 16  }
  0x4d   :  { %122 = dma.hbm_to_vmem [thread:$0]  %s4573_s7, 512, %s3759_s23, [#allocation15], %s3628_s5, %s3628_s5, %s3629_s19  }
  0x4e   :  { %s3630_s3 = smov [#allocation17]   ;;  %s3631_s0 = smov [#allocation20]  }
  0x4f   :  { %s139_s21 = sshll.u32 %s3630_s3, 4  ;;  %s159_s17 = sshll.u32 %s3631_s0, 4  ;;  %s140_s21 = int_to_ptr.vmem [resolvable:$true] %s139_s21  ;;  %s160_s17 = int_to_ptr.vmem [resolvable:$true] %s159_s17 }
  0x50   :  { %s3314_s24 = scalar_lea.hbm %s4575_s9, 16 }
  0x51   :  { %p3315_p4 = scmp.ne.s32.totalorder %s4575_s9, %s3314_s24  ;;  %p3318_p5 = scmp.lt.u32.totalorder %s3314_s24, %s4575_s9 }
  0x53   :  { %p3320_p6 = pnand %p3318_p5, %p3315_p4 }
  0x55   :  { %3323 = shalt.err (!%p3320_p6)
}
  0x56   :  { %s3324_s7 = scalar_lea.vmem %s140_s21, 16  ;;  %s3328_s23 = scalar_lea.vmem %s140_s21, 32 }
  0x57   :  { %p3325_p7 = scmp.ne.s32.totalorder %s140_s21, %s3324_s7  ;;  %p3329_p8 = scmp.lt.s32.totalorder %s140_s21, %s140_s21 }
  0x58   :  { %p3330_p9 = scmp.lt.s32.totalorder %s3328_s23, %s3324_s7 }
  0x5a   :  { %p3331_p10 = por %p3330_p9, %p3329_p8 }
  0x5c   :  { %p3332_p11 = pnand %p3331_p10, %p3325_p7 }
  0x5e   :  { %3335 = shalt.err (!%p3332_p11)
}
  0x5f   :  { %142 = dma.hbm_to_vmem [thread:$0]  %s4575_s9, 16, %s140_s21, [#allocation18]  }
  0x60   :  { %s3336_s3 = scalar_lea.hbm %s4577_s11, 16 }
  0x61   :  { %p3337_p12 = scmp.ne.s32.totalorder %s4577_s11, %s3336_s3  ;;  %p3340_p13 = scmp.lt.u32.totalorder %s3336_s3, %s4577_s11 }
  0x63   :  { %p3342_p0 = pnand %p3340_p13, %p3337_p12 }
  0x65   :  { %3345 = shalt.err (!%p3342_p0)
}
  0x66   :  { %s3346_s25 = scalar_lea.vmem %s160_s17, 16  ;;  %s3350_s26 = scalar_lea.vmem %s160_s17, 32 }
  0x67   :  { %p3347_p1 = scmp.ne.s32.totalorder %s160_s17, %s3346_s25  ;;  %p3351_p2 = scmp.lt.s32.totalorder %s160_s17, %s160_s17 }
  0x68   :  { %p3352_p3 = scmp.lt.s32.totalorder %s3350_s26, %s3346_s25 }
  0x6a   :  { %p3353_p4 = por %p3352_p3, %p3351_p2 }
  0x6c   :  { %p3354_p5 = pnand %p3353_p4, %p3347_p1 }
  0x6e   :  { %3357 = shalt.err (!%p3354_p5)
}
  0x6f   :  { %162 = dma.hbm_to_vmem [thread:$0]  %s4577_s11, 16, %s160_s17, [#allocation21]  }
  0x70   :  { %s3632_s27 = smov [#allocation23]   ;;  %s3633_s7 = smov [#allocation2]  }
  0x71   :  { %s181_s28 = sshll.u32 %s3632_s27, 4  ;;  %s36_s23 = sshll.u32 %s3633_s7, 4  ;;  %s182_s28 = int_to_ptr.vmem [resolvable:$true] %s181_s28  ;;  %s3817_s23 = int_to_ptr.vmem [resolvable:$true] %s36_s23 }
  0x72   :  { %s3358_s29 = scalar_lea.hbm %s4579_s13, 32 }
  0x73   :  { %p3359_p6 = scmp.ne.s32.totalorder %s4579_s13, %s3358_s29  ;;  %p3362_p7 = scmp.lt.u32.totalorder %s3358_s29, %s4579_s13 }
  0x75   :  { %p3364_p8 = pnand %p3362_p7, %p3359_p6 }
  0x77   :  { %3367 = shalt.err (!%p3364_p8)
}
  0x78   :  { %s3368_s11 = scalar_lea.vmem %s182_s28, 32  ;;  %p3373_p10 = scmp.lt.s32.totalorder %s182_s28, %s182_s28 }
  0x79   :  { %p3369_p9 = scmp.ne.s32.totalorder %s182_s28, %s3368_s11  ;;  %p3374_p11 = scmp.lt.s32.totalorder %s3368_s11, %s3368_s11 }
  0x7b   :  { %p3375_p12 = por %p3374_p11, %p3373_p10 }
  0x7d   :  { %p3376_p13 = pnand %p3375_p12, %p3369_p9 }
  0x7f   :  { %3379 = shalt.err (!%p3376_p13)
}
  0x80   :  { %184 = dma.hbm_to_vmem [thread:$0]  %s4579_s13, 32, %s182_s28, [#allocation24]  }
  0x81   :  { %s4585_s26 = sld [smem:[#allocation39_spill]] }
  0x87   :  { %s3380_s9 = scalar_lea.hbm %s4585_s26, 1024 }
  0x88   :  { %p3381_p0 = scmp.ne.s32.totalorder %s4585_s26, %s3380_s9  ;;  %p3384_p1 = scmp.lt.u32.totalorder %s3380_s9, %s4585_s26 }
  0x8a   :  { %p3386_p2 = pnand %p3384_p1, %p3381_p0 }
  0x8c   :  { %3389 = shalt.err (!%p3386_p2)
}
  0x8d   :  { %s3390_s19 = scalar_lea.vmem %s3817_s23, 1024  ;;  %p3395_p4 = scmp.lt.s32.totalorder %s3817_s23, %s3817_s23 }
  0x8e   :  { %p3391_p3 = scmp.ne.s32.totalorder %s3817_s23, %s3390_s19  ;;  %p3396_p5 = scmp.lt.s32.totalorder %s3390_s19, %s3390_s19 }
  0x90   :  { %p3397_p6 = por %p3396_p5, %p3395_p4 }
  0x92   :  { %p3398_p7 = pnand %p3397_p6, %p3391_p3 }
  0x94   :  { %3401 = shalt.err (!%p3398_p7)
}
  0x95   :  { %s3634_s13 = smov 128   ;;  %s3635_s28 = smov 8  }
  0x96   :  { %42 = dma.hbm_to_vmem [thread:$0]  %s4585_s26, 1024, %s3817_s23, [#allocation3], %s3634_s13, %s3634_s13, %s3635_s28  }
  0x97   :  { %s3636_s3 = smov [#allocation7]   ;;  %s3637_s18 = smov [#allocation10]  }
  0x98   :  { %s61_s0 = sshll.u32 %s3636_s3, 4  ;;  %s83_s11 = sshll.u32 %s3637_s18, 4  ;;  %s62_s0 = int_to_ptr.vmem [resolvable:$true] %s61_s0  ;;  %s84_s11 = int_to_ptr.vmem [resolvable:$true] %s83_s11 }
  0x99   :  { %s3402_s24 = scalar_lea.hbm %s4568_s2, 48 }
  0x9a   :  { %p3403_p8 = scmp.ne.s32.totalorder %s4568_s2, %s3402_s24  ;;  %p3406_p9 = scmp.lt.u32.totalorder %s3402_s24, %s4568_s2 }
  0x9c   :  { %p3408_p10 = pnand %p3406_p9, %p3403_p8 }
  0x9e   :  { %3411 = shalt.err (!%p3408_p10)
}
  0x9f   :  { %s3412_s23 = scalar_lea.vmem %s62_s0, 48  ;;  %s3416_s26 = scalar_lea.vmem %s62_s0, 64 }
  0xa0   :  { %p3413_p11 = scmp.ne.s32.totalorder %s62_s0, %s3412_s23  ;;  %p3417_p12 = scmp.lt.s32.totalorder %s62_s0, %s62_s0 }
  0xa1   :  { %p3418_p13 = scmp.lt.s32.totalorder %s3416_s26, %s3412_s23 }
  0xa3   :  { %p3419_p0 = por %p3418_p13, %p3417_p12 }
  0xa5   :  { %p3420_p1 = pnand %p3419_p0, %p3413_p11 }
  0xa7   :  { %3423 = shalt.err (!%p3420_p1)
}
  0xa8   :  { %64 = dma.hbm_to_vmem [thread:$0]  %s4568_s2, 48, %s62_s0, [#allocation6]  }
  0xa9   :  { %s3424_s30 = scalar_lea.hbm %s4570_s4, 16 }
  0xaa   :  { %p3425_p2 = scmp.ne.s32.totalorder %s4570_s4, %s3424_s30  ;;  %p3428_p3 = scmp.lt.u32.totalorder %s3424_s30, %s4570_s4 }
  0xac   :  { %p3430_p4 = pnand %p3428_p3, %p3425_p2 }
  0xae   :  { %3433 = shalt.err (!%p3430_p4)
}
  0xaf   :  { %s3434_s24 = scalar_lea.vmem %s84_s11, 16  ;;  %s3438_s25 = scalar_lea.vmem %s84_s11, 32 }
  0xb0   :  { %p3435_p5 = scmp.ne.s32.totalorder %s84_s11, %s3434_s24  ;;  %p3439_p6 = scmp.lt.s32.totalorder %s84_s11, %s84_s11 }
  0xb1   :  { %p3440_p7 = scmp.lt.s32.totalorder %s3438_s25, %s3434_s24 }
  0xb3   :  { %p3441_p8 = por %p3440_p7, %p3439_p6 }
  0xb5   :  { %p3442_p9 = pnand %p3441_p8, %p3435_p5 }
  0xb7   :  { %3445 = shalt.err (!%p3442_p9)
}
  0xb8   :  { %86 = dma.hbm_to_vmem [thread:$0]  %s4570_s4, 16, %s84_s11, [#allocation9]  }
  0xb9   :  { %s3638_s9 = smov [#allocation13]   ;;  %s3639_s27 = smov [#allocation16]  }
  0xba   :  { %s104_s21 = sshll.u32 %s3638_s9, 4  ;;  %s129_s23 = sshll.u32 %s3639_s27, 4  ;;  %s105_s21 = int_to_ptr.vmem [resolvable:$true] %s104_s21  ;;  %s130_s23 = int_to_ptr.vmem [resolvable:$true] %s129_s23 }
  0xbb   :  { %s3446_s5 = scalar_lea.hbm %s4572_s6, 4096 }
  0xbc   :  { %p3447_p10 = scmp.ne.s32.totalorder %s4572_s6, %s3446_s5  ;;  %p3450_p11 = scmp.lt.u32.totalorder %s3446_s5, %s4572_s6 }
  0xbe   :  { %p3452_p12 = pnand %p3450_p11, %p3447_p10 }
  0xc0   :  { %3455 = shalt.err (!%p3452_p12)
}
  0xc1   :  { %s3456_s4 = scalar_lea.vmem %s105_s21, 4096  ;;  %p3461_p0 = scmp.lt.s32.totalorder %s105_s21, %s105_s21 }
  0xc2   :  { %p3457_p13 = scmp.ne.s32.totalorder %s105_s21, %s3456_s4  ;;  %p3462_p1 = scmp.lt.s32.totalorder %s3456_s4, %s3456_s4 }
  0xc4   :  { %p3463_p2 = por %p3462_p1, %p3461_p0 }
  0xc6   :  { %p3464_p3 = pnand %p3463_p2, %p3457_p13 }
  0xc8   :  { %3467 = shalt.err (!%p3464_p3)
}
  0xc9   :  { %110 = dma.hbm_to_vmem [thread:$0]  %s4572_s6, 4096, %s105_s21, [#allocation12], %s3634_s13, %s3634_s13, %s3635_s28  }
  0xca   :  { %s3468_s24 = scalar_lea.hbm %s4574_s8, 16 }
  0xcb   :  { %p3469_p4 = scmp.ne.s32.totalorder %s4574_s8, %s3468_s24  ;;  %p3472_p5 = scmp.lt.u32.totalorder %s3468_s24, %s4574_s8 }
  0xcd   :  { %p3474_p6 = pnand %p3472_p5, %p3469_p4 }
  0xcf   :  { %3477 = shalt.err (!%p3474_p6)
}
  0xd0   :  { %s3478_s27 = scalar_lea.vmem %s130_s23, 16  ;;  %s3482_s26 = scalar_lea.vmem %s130_s23, 32 }
  0xd1   :  { %p3479_p7 = scmp.ne.s32.totalorder %s130_s23, %s3478_s27  ;;  %p3483_p8 = scmp.lt.s32.totalorder %s130_s23, %s130_s23 }
  0xd2   :  { %p3484_p9 = scmp.lt.s32.totalorder %s3482_s26, %s3478_s27 }
  0xd4   :  { %p3485_p10 = por %p3484_p9, %p3483_p8 }
  0xd6   :  { %p3486_p11 = pnand %p3485_p10, %p3479_p7 }
  0xd8   :  { %3489 = shalt.err (!%p3486_p11)
}
  0xd9   :  { %132 = dma.hbm_to_vmem [thread:$0]  %s4574_s8, 16, %s130_s23, [#allocation15]  }
  0xda   :  { %s3640_s7 = smov [#allocation19]   ;;  %s3641_s19 = smov [#allocation22]  }
  0xdb   :  { %s149_s5 = sshll.u32 %s3640_s7, 4  ;;  %s168_s29 = sshll.u32 %s3641_s19, 4  ;;  %s150_s5 = int_to_ptr.vmem [resolvable:$true] %s149_s5  ;;  %s3902_s29 = int_to_ptr.vmem [resolvable:$true] %s168_s29 }
  0xdc   :  { %s3490_s4 = scalar_lea.hbm %s4576_s10, 16 }
  0xdd   :  { %p3491_p12 = scmp.ne.s32.totalorder %s4576_s10, %s3490_s4  ;;  %p3494_p13 = scmp.lt.u32.totalorder %s3490_s4, %s4576_s10 }
  0xdf   :  { %p3496_p0 = pnand %p3494_p13, %p3491_p12 }
  0xe1   :  { %3499 = shalt.err (!%p3496_p0)
}
  0xe2   :  { %s3500_s8 = scalar_lea.vmem %s150_s5, 16  ;;  %s3504_s23 = scalar_lea.vmem %s150_s5, 32 }
  0xe3   :  { %p3501_p1 = scmp.ne.s32.totalorder %s150_s5, %s3500_s8  ;;  %p3505_p2 = scmp.lt.s32.totalorder %s150_s5, %s150_s5 }
  0xe4   :  { %p3506_p3 = scmp.lt.s32.totalorder %s3504_s23, %s3500_s8 }
  0xe6   :  { %p3507_p4 = por %p3506_p3, %p3505_p2 }
  0xe8   :  { %p3508_p5 = pnand %p3507_p4, %p3501_p1 }
  0xea   :  { %3511 = shalt.err (!%p3508_p5)
}
  0xeb   :  { %152 = dma.hbm_to_vmem [thread:$0]  %s4576_s10, 16, %s150_s5, [#allocation18]  }
  0xec   :  { %s3512_s9 = scalar_lea.hbm %s4578_s12, 2048 }
  0xed   :  { %p3513_p6 = scmp.ne.s32.totalorder %s4578_s12, %s3512_s9  ;;  %p3516_p7 = scmp.lt.u32.totalorder %s3512_s9, %s4578_s12 }
  0xef   :  { %p3518_p8 = pnand %p3516_p7, %p3513_p6 }
  0xf1   :  { %3521 = shalt.err (!%p3518_p8)
}
  0xf2   :  { %s3522_s7 = scalar_lea.vmem %s3902_s29, 2048  ;;  %p3527_p10 = scmp.lt.s32.totalorder %s3902_s29, %s3902_s29 }
  0xf3   :  { %p3523_p9 = scmp.ne.s32.totalorder %s3902_s29, %s3522_s7  ;;  %p3528_p11 = scmp.lt.s32.totalorder %s3522_s7, %s3522_s7 }
  0xf5   :  { %p3529_p12 = por %p3528_p11, %p3527_p10 }
  0xf7   :  { %p3530_p13 = pnand %p3529_p12, %p3523_p9 }
  0xf9   :  { %3533 = shalt.err (!%p3530_p13)
}
  0xfa   :  { %174 = dma.hbm_to_vmem [thread:$0]  %s4578_s12, 2048, %s3902_s29, [#allocation21], %s3634_s13, %s3634_s13, %s3635_s28  }
  0xfb   :  { %s3642_s19 = smov [#allocation25]   ;;  %s3643_s3 = smov [#allocation26]  }
  0xfc   :  { %s190_s30 = sshll.u32 %s3642_s19, 4  ;;  %s203_s4 = sshll.u32 %s3643_s3, 4  ;;  %s191_s30 = int_to_ptr.vmem [resolvable:$true] %s190_s30  ;;  %s204_s4 = int_to_ptr.vmem [resolvable:$true] %s203_s4 }
  0xfd   :  { %s3534_s17 = scalar_lea.hbm %s4580_s14, 2048 }
  0xfe   :  { %p3535_p0 = scmp.ne.s32.totalorder %s4580_s14, %s3534_s17  ;;  %p3538_p1 = scmp.lt.u32.totalorder %s3534_s17, %s4580_s14 }
 0x100   :  { %p3540_p2 = pnand %p3538_p1, %p3535_p0 }
 0x102   :  { %3543 = shalt.err (!%p3540_p2)
}
 0x103   :  { %s3544_s12 = scalar_lea.vmem %s191_s30, 2048  ;;  %p3549_p4 = scmp.lt.s32.totalorder %s191_s30, %s191_s30 }
 0x104   :  { %p3545_p3 = scmp.ne.s32.totalorder %s191_s30, %s3544_s12  ;;  %p3550_p5 = scmp.lt.s32.totalorder %s3544_s12, %s3544_s12 }
 0x106   :  { %p3551_p6 = por %p3550_p5, %p3549_p4 }
 0x108   :  { %p3552_p7 = pnand %p3551_p6, %p3545_p3 }
 0x10a   :  { %3555 = shalt.err (!%p3552_p7)
}
 0x10b   :  { %196 = dma.hbm_to_vmem [thread:$0]  %s4580_s14, 2048, %s191_s30, [#allocation24], %s3624_s1, %s3624_s1, %s3625_s22  }
 0x10c   :  { %s3556_s9 = scalar_lea.hbm %s4581_s15, 16 }
 0x10d   :  { %p3557_p8 = scmp.ne.s32.totalorder %s4581_s15, %s3556_s9  ;;  %p3560_p9 = scmp.lt.u32.totalorder %s3556_s9, %s4581_s15 }
 0x10f   :  { %p3562_p10 = pnand %p3560_p9, %p3557_p8 }
 0x111   :  { %3565 = shalt.err (!%p3562_p10)
}
 0x112   :  { %s3566_s7 = scalar_lea.vmem %s204_s4, 16  ;;  %s3570_s10 = scalar_lea.vmem %s204_s4, 32 }
 0x113   :  { %p3567_p11 = scmp.ne.s32.totalorder %s204_s4, %s3566_s7  ;;  %p3571_p12 = scmp.lt.s32.totalorder %s204_s4, %s204_s4 }
 0x114   :  { %p3572_p13 = scmp.lt.s32.totalorder %s3570_s10, %s3566_s7 }
 0x116   :  { %p3573_p0 = por %p3572_p13, %p3571_p12 }
 0x118   :  { %p3574_p1 = pnand %p3573_p0, %p3567_p11 }
 0x11a   :  { %3577 = shalt.err (!%p3574_p1)
}
 0x11b   :  { %206 = dma.hbm_to_vmem [thread:$0]  %s4581_s15, 16, %s204_s4, [#allocation27]  }
 0x11c   :  { %3600 = dma.done.wait [#allocation3], 1024  }
 0x11d   :  { %3601 = vsyncadd [#allocation3], 4294966272 }
 0x11e   :  { %3602 = dma.done.wait [#allocation6], 3120  }
 0x11f   :  { %3603 = vsyncadd [#allocation6], 4294964176 }
 0x120   :  { %3604 = dma.done.wait [#allocation9], 1040  }
 0x121   :  { %3605 = vsyncadd [#allocation9], 4294966256 }
 0x122   :  { %3606 = dma.done.wait [#allocation12], 6144  }
 0x123   :  { %3607 = vsyncadd [#allocation12], 4294961152 }
 0x124   :  { %3608 = dma.done.wait [#allocation15], 528  }
 0x125   :  { %3609 = vsyncadd [#allocation15], 4294966768 }
 0x126   :  { %3610 = dma.done.wait [#allocation18], 32  }
 0x127   :  { %3611 = vsyncadd [#allocation18], 4294967264 }
 0x128   :  { %3612 = dma.done.wait [#allocation21], 2064  }
 0x129   :  { %3613 = vsyncadd [#allocation21], 4294965232 }
 0x12a   :  { %3614 = dma.done.wait [#allocation24], 2080  }
 0x12b   :  { %3615 = vsyncadd [#allocation24], 4294965216 }
 0x12c   :  { %3616 = dma.done.wait [#allocation27], 16  }
 0x12d   :  { %3617 = vsyncadd [#allocation27], 4294967280  ;;  %v3644_v0 = vmov 0   ;;  %v2994_v1 = vld [vmem:[#allocation5 + $0x4] ss:$12 sps:$4 sm:$0xff]   ;;  %v257_v10 = vld [vmem:[#allocation2 + $0x8] sm:$0xff]  ;;  %v302_v37 = vlaneseq }
 0x12e   :  { %477 = vmatprep.mubr.bf16.mxu0 %v3644_v0  ;;  %v2996_v2 = vld [vmem:[#allocation5] ss:$12 sps:$4 sm:$0xff]   ;;  %445 = vmatprep.subr.bf16.mxu0 %v2994_v1  ;;  %v2997_v3 = vld [vmem:[#allocation5 + $0x1c] ss:$12 sps:$4 sm:$0xff]   ;;  %v2999_v4 = vld [vmem:[#allocation5 + $0x18] ss:$12 sps:$4 sm:$0xff]  }
 0x12f   :  { %446 = vmatpush1.bf16.msra.mxu0 %v2996_v2  ;;  %v3000_v5 = vld [vmem:[#allocation5 + $0x34] ss:$12 sps:$4 sm:$0xff]   ;;  %v3002_v6 = vld [vmem:[#allocation5 + $0x30] ss:$12 sps:$4 sm:$0xff]   ;;  %v3003_v7 = vld [vmem:[#allocation5 + $0x4c] ss:$12 sps:$4 sm:$0xff]  }
 0x130   :  { %447 = vmatprep.subr.bf16.mxu0 %v2997_v3  ;;  %v256_v8 = vld [vmem:[#allocation2] sm:$0xff]  ;;  %v3005_v9 = vld [vmem:[#allocation5 + $0x48] ss:$12 sps:$4 sm:$0xff]   ;;  %v3021_v20 = vld [vmem:[#allocation5 + $0x50] ss:$12 sps:$4 sm:$0xff]   ;;  %v3967_v38 = vshrl.u32 %v302_v37, 7 }
 0x131   :  { %v3006_v11 = vld [vmem:[#allocation5 + $0x64] ss:$12 sps:$4 sm:$0xff]   ;;  %v264_v12 = vpack.c.bf16 %v257_v10, %v256_v8  ;;  %v3008_v13 = vld [vmem:[#allocation5 + $0x60] ss:$12 sps:$4 sm:$0xff]   ;;  %v3018_v14 = vld [vmem:[#allocation5 + $0x8] ss:$12 sps:$4 sm:$0xff]  }
 0x132   :  { %v3019_v15 = vld [vmem:[#allocation5 + $0x20] ss:$12 sps:$4 sm:$0xff]   ;;  %v3009_v16 = vld [vmem:[#allocation5 + $0x7c] ss:$12 sps:$4 sm:$0xff]   ;;  %2883 = vmatprep.subr.bf16.mxu1 %v3018_v14  ;;  %v3020_v17 = vld [vmem:[#allocation5 + $0x38] ss:$12 sps:$4 sm:$0xff]  }
 0x133   :  { %448 = vmatpush1.bf16.msra.mxu0 %v2999_v4  ;;  %2899 = vmatprep.mubr.bf16.mxu1 %v264_v12  ;;  %v3011_v18 = vld [vmem:[#allocation5 + $0x78] ss:$12 sps:$4 sm:$0xff]   ;;  %v3012_v19 = vld [vmem:[#allocation5 + $0x94] ss:$12 sps:$4 sm:$0xff]   ;;  %v3014_v21 = vld [vmem:[#allocation5 + $0x90] ss:$12 sps:$4 sm:$0xff]  }
 0x134   :  { %449 = vmatprep.subr.bf16.mxu0 %v3000_v5  ;;  %2884 = vmatpush3.bf16.msra.mxu1 %v3018_v14  ;;  %v3015_v22 = vld [vmem:[#allocation5 + $0xac] ss:$12 sps:$4 sm:$0xff]   ;;  %v3022_v23 = vld [vmem:[#allocation5 + $0x68] ss:$12 sps:$4 sm:$0xff]   ;;  %v260_v29 = vld [vmem:[#allocation2 + $0x20] sm:$0xff]  ;;  %v304_v39 = vsub.s32 0, %v3967_v38 }
 0x135   :  { %2885 = vmatprep.subr.bf16.mxu1 %v3019_v15  ;;  %v3017_v24 = vld [vmem:[#allocation5 + $0xa8] ss:$12 sps:$4 sm:$0xff]   ;;  %v3023_v25 = vld [vmem:[#allocation5 + $0x80] ss:$12 sps:$4 sm:$0xff]   ;;  %v259_v27 = vld [vmem:[#allocation2 + $0x18] sm:$0xff]  ;;  %v308_v41 = vsub.s32 1, %v3967_v38 }
 0x136   :  { %v258_v26 = vld [vmem:[#allocation2 + $0x10] sm:$0xff]  ;;  %v261_v30 = vld [vmem:[#allocation2 + $0x28] sm:$0xff]  ;;  %v263_v33 = vld [vmem:[#allocation2 + $0x38] sm:$0xff]  ;;  %vm1284_vm0 = vcmask 130048   ;;  %s3646_s15 = smov [#allocation28]  }
 0x137   :  { %450 = vmatpush1.bf16.msra.mxu0 %v3002_v6  ;;  %v265_v28 = vpack.c.bf16 %v259_v27, %v258_v26  ;;  %v266_v31 = vpack.c.bf16 %v261_v30, %v260_v29  ;;  %v262_v32 = vld [vmem:[#allocation2 + $0x30] sm:$0xff]  ;;  %v3024_v35 = vld [vmem:[#allocation5 + $0x98] ss:$12 sps:$4 sm:$0xff]   ;;  %v3970_v40 = vld [vmem:[#allocation7] sm:$0x7]  ;;  %s2489_s22 = sshll.u32 %s3646_s15, 4  ;;  %s2490_s22 = int_to_ptr.vmem [resolvable:$true] %s2489_s22 }
 0x138   :  { %451 = vmatprep.subr.bf16.mxu0 %v3003_v7  ;;  %2886 = vmatpush3.bf16.msra.mxu1 %v3019_v15  ;;  %v267_v34 = vpack.c.bf16 %v263_v33, %v262_v32  ;;  %v3025_v36 = vld [vmem:[#allocation5 + $0xb0] ss:$12 sps:$4 sm:$0xff]   ;;  %v3976_v42 = vrot.slane %v3970_v40, %v304_v39  ;;  %v3981_v44 = vrot.slane %v3970_v40, %v308_v41  ;;  %v3987_v52 = vld [vmem:[#allocation11 + $0x40] sm:$0xff]   ;;  %s3578_s5 = scalar_lea.vmem %s2490_s22, 1024  ;;  %p3583_p3 = scmp.lt.s32.totalorder %s2490_s22, %s2490_s22 }
 0x139   :  { %2887 = vmatprep.subr.bf16.mxu1 %v3020_v17  ;;  %v3989_v53 = vld [vmem:[#allocation11] sm:$0xff]   ;;  %v3993_v57 = vld [vmem:[#allocation11 + $0x48] sm:$0xff]   ;;  %v4031_v26 = vld [vmem:[#allocation11 + $0x10] sm:$0xff]   ;;  %p3579_p2 = scmp.ne.s32.totalorder %s2490_s22, %s3578_s5  ;;  %p3584_p4 = scmp.lt.s32.totalorder %s3578_s5, %s3578_s5 }
 0x13b   :  { %452 = vmatpush1.bf16.msra.mxu0 %v3005_v9  ;;  %v4008_v9 = vld [vmem:[#allocation11 + $0x8] sm:$0xff]   ;;  %p3585_p5 = por %p3584_p4, %p3583_p3 }
 0x13c   :  { %453 = vmatprep.subr.bf16.mxu0 %v3006_v11  ;;  %2888 = vmatpush3.bf16.msra.mxu1 %v3020_v17  ;;  %v4012_v11 = vld [vmem:[#allocation11 + $0x50] sm:$0xff]  }
 0x13d   :  { %2889 = vmatprep.subr.bf16.mxu1 %v3021_v20  ;;  %p3586_p6 = pnand %p3585_p5, %p3579_p2 }
 0x13f   :  { %454 = vmatpush1.bf16.msra.mxu0 %v3008_v13 }
 0x140   :  { %455 = vmatprep.subr.bf16.mxu0 %v3009_v16  ;;  %2890 = vmatpush3.bf16.msra.mxu1 %v3021_v20 }
 0x141   :  { %2891 = vmatprep.subr.bf16.mxu1 %v3022_v23 }
 0x143   :  { %456 = vmatpush1.bf16.msra.mxu0 %v3011_v18 }
 0x144   :  { %457 = vmatprep.subr.bf16.mxu0 %v3012_v19  ;;  %2892 = vmatpush3.bf16.msra.mxu1 %v3022_v23 }
 0x145   :  { %2893 = vmatprep.subr.bf16.mxu1 %v3023_v25 }
 0x147   :  { %458 = vmatpush1.bf16.msra.mxu0 %v3014_v21 }
 0x148   :  { %459 = vmatprep.subr.bf16.mxu0 %v3015_v22  ;;  %2894 = vmatpush3.bf16.msra.mxu1 %v3023_v25 }
 0x149   :  { %2895 = vmatprep.subr.bf16.mxu1 %v3024_v35 }
 0x14b   :  { %460 = vmatpush1.bf16.msra.mxu0 %v3017_v24 }
 0x14c   :  { %2896 = vmatpush3.bf16.msra.mxu1 %v3024_v35 }
 0x14d   :  { %2897 = vmatprep.subr.bf16.mxu1 %v3025_v36 }
 0x14e   :  { %478 = vmatmul.mubr.bf16.vlgmr.msra.gmra.mrb[0].mxu0 %v264_v12 }
 0x14f   :  { %487 = vmatprep.mubr.bf16.mxu0 %v3644_v0 }
 0x150   :  { %2898 = vmatpush3.bf16.msra.mxu1 %v3025_v36 }
 0x153   :  { %2900 = vmatmul.mubr.bf16.vlgmr.msra.gmra.mrb[0].mxu1 %v265_v28 }
 0x154   :  { %2903 = vmatprep.mubr.bf16.mxu1 %v266_v31 }
 0x156   :  { %488 = vmatmul.mubr.bf16.gmra.mrb[4].mxu0 %v265_v28  ;;  %v4033_v28 = vld [vmem:[#allocation11 + $0x58] sm:$0xff]  }
 0x157   :  { %497 = vmatprep.mubr.bf16.mxu0 %v3644_v0 }
 0x15b   :  { %2904 = vmatmul.mubr.bf16.gmra.mrb[4].mxu1 %v267_v34 }
 0x15e   :  { %498 = vmatmul.mubr.bf16.gmra.mrb[8].mxu0 %v266_v31 }
 0x15f   :  { %507 = vmatprep.mubr.bf16.mxu0 %v3644_v0 }
 0x166   :  { %508 = vmatmul.mubr.bf16.gmra.mrb[12].mxu0 %v267_v34 }
 0x221   :  { %v479_v43 = vpop.f32.mrb[0].mxu0 }
 0x222   :  { %v480_v45 = vadd.f32 %v479_v43, %v3976_v42  ;;  %v481_v46 = vpop.f32.mrb[1].mxu0 }
 0x223   :  { %v483_v47 = vpop.f32.mrb[2].mxu0  ;;  %v482_v50 = vadd.f32 %v481_v46, %v3981_v44 }
 0x224   :  { %v484_v48 = vadd.f32 %v483_v47, %v3976_v42  ;;  %v485_v49 = vpop.f32.mrb[3].mxu0  ;;  %v583_v54 = vmul.f32 0.35355338, %v480_v45 }
 0x225   :  { %v486_v51 = vadd.f32 %v485_v49, %v3981_v44 }
 0x226   :  { %v584_v55 = vmul.f32 0.35355338, %v484_v48 }
 0x227   :  { %v3991_v56 = vpack.c.bf16 %v486_v51, %v482_v50  ;;  %v4051_v51 = vld [vmem:[#allocation11 + $0x18] sm:$0xff]  }
 0x228   :  { %v3995_v58 = vpack.c.bf16 %v584_v55, %v583_v54  ;;  %v4053_v55 = vld [vmem:[#allocation11 + $0x60] sm:$0xff]  }
 0x229   :  { %v489_v59 = vpop.f32.mrb[4].mxu0  ;;  %v775_v60 = vmul.bf16 %v3987_v52, %v3991_v56  ;;  %v767_v61 = vmul.bf16 %v3989_v53, %v3991_v56  ;;  %v776_v2 = vmul.bf16 %v3993_v57, %v3991_v56  ;;  %v768_v16 = vmul.bf16 %v4008_v9, %v3991_v56 }
 0x22a   :  { %v490_v62 = vadd.f32 %v489_v59, %v3976_v42  ;;  %v491_v63 = vpop.f32.mrb[5].mxu0  ;;  %2631 = vmatprep.mubr.bf16.mxu0 %v3995_v58  ;;  %v777_v18 = vmul.bf16 %v4012_v11, %v3991_v56  ;;  %v769_v33 = vmul.bf16 %v4031_v26, %v3991_v56  ;;  %v778_v37 = vmul.bf16 %v4033_v28, %v3991_v56 }
 0x22b   :  { %v493_v1 = vpop.f32.mrb[6].mxu0  ;;  %2615 = vmatprep.subr.bf16.mxu0 %v775_v60  ;;  %v492_v5 = vadd.f32 %v491_v63, %v3981_v44  ;;  %v4067_v63 = vld [vmem:[#allocation11 + $0x20] sm:$0xff]  }
 0x22c   :  { %v494_v3 = vadd.f32 %v493_v1, %v3976_v42  ;;  %v495_v4 = vpop.f32.mrb[7].mxu0  ;;  %2616 = vmatpush3.bf16.xpose.msra.mxu0 %v767_v61  ;;  %v585_v7 = vmul.f32 0.35355338, %v490_v62  ;;  %v770_v61 = vmul.bf16 %v4051_v51, %v3991_v56  ;;  %v779_v62 = vmul.bf16 %v4053_v55, %v3991_v56  ;;  %v4069_v1 = vld [vmem:[#allocation11 + $0x68] sm:$0xff]  }
 0x22d   :  { %v496_v6 = vadd.f32 %v495_v4, %v3981_v44  ;;  %2617 = vmatprep.subr.bf16.mxu0 %v776_v2  ;;  %v771_v2 = vmul.bf16 %v4067_v63, %v3991_v56  ;;  %v780_v4 = vmul.bf16 %v4069_v1, %v3991_v56 }
 0x22e   :  { %v586_v8 = vmul.f32 0.35355338, %v494_v3 }
 0x22f   :  { %v4010_v10 = vpack.c.bf16 %v496_v6, %v492_v5  ;;  %v4079_v6 = vld [vmem:[#allocation11 + $0x28] sm:$0xff]  }
 0x230   :  { %v4014_v12 = vpack.c.bf16 %v586_v8, %v585_v7  ;;  %v4081_v7 = vld [vmem:[#allocation11 + $0x70] sm:$0xff]   ;;  %v772_v8 = vmul.bf16 %v4079_v6, %v3991_v56 }
 0x231   :  { %v791_v13 = vmul.bf16 %v3987_v52, %v4010_v10  ;;  %v783_v14 = vmul.bf16 %v3989_v53, %v4010_v10  ;;  %v499_v15 = vpop.f32.mrb[8].mxu0  ;;  %v792_v19 = vmul.bf16 %v3993_v57, %v4010_v10  ;;  %v784_v34 = vmul.bf16 %v4008_v9, %v4010_v10 }
 0x232   :  { %2649 = vmatprep.mubr.bf16.mxu1 %v4014_v12  ;;  %v501_v17 = vpop.f32.mrb[9].mxu0  ;;  %v500_v21 = vadd.f32 %v499_v15, %v3976_v42  ;;  %v793_v43 = vmul.bf16 %v4012_v11, %v4010_v10  ;;  %v786_v3 = vmul.bf16 %v4051_v51, %v4010_v10  ;;  %v795_v5 = vmul.bf16 %v4053_v55, %v4010_v10 }
 0x233   :  { %2633 = vmatprep.subr.bf16.mxu1 %v791_v13  ;;  %v503_v20 = vpop.f32.mrb[10].mxu0  ;;  %v502_v22 = vadd.f32 %v501_v17, %v3981_v44  ;;  %v787_v13 = vmul.bf16 %v4067_v63, %v4010_v10  ;;  %v796_v15 = vmul.bf16 %v4069_v1, %v4010_v10  ;;  %v4093_v17 = vld [vmem:[#allocation11 + $0x78] sm:$0xff]  }
 0x234   :  { %2618 = vmatpush3.bf16.xpose.msra.mxu0 %v768_v16  ;;  %2634 = vmatpush3.bf16.xpose.msra.mxu1 %v783_v14  ;;  %v505_v23 = vpop.f32.mrb[11].mxu0  ;;  %v504_v24 = vadd.f32 %v503_v20, %v3976_v42  ;;  %v587_v27 = vmul.f32 0.35355338, %v500_v21  ;;  %v781_v14 = vmul.bf16 %v4081_v7, %v3991_v56  ;;  %v4091_v16 = vld [vmem:[#allocation11 + $0x30] sm:$0xff]   ;;  %v782_v20 = vmul.bf16 %v4093_v17, %v3991_v56 }
 0x235   :  { %2619 = vmatprep.subr.bf16.mxu0 %v777_v18  ;;  %2635 = vmatprep.subr.bf16.mxu1 %v792_v19  ;;  %v506_v25 = vadd.f32 %v505_v23, %v3981_v44  ;;  %v773_v18 = vmul.bf16 %v4091_v16, %v3991_v56  ;;  %v788_v19 = vmul.bf16 %v4079_v6, %v4010_v10 }
 0x236   :  { %v588_v29 = vmul.f32 0.35355338, %v504_v24  ;;  %v797_v21 = vmul.bf16 %v4081_v7, %v4010_v10 }
 0x237   :  { %v4035_v30 = vpack.c.bf16 %v506_v25, %v502_v22  ;;  %v4103_v22 = vld [vmem:[#allocation11 + $0x38] sm:$0xff]   ;;  %v789_v25 = vmul.bf16 %v4091_v16, %v4010_v10 }
 0x238   :  { %v4037_v31 = vpack.c.bf16 %v588_v29, %v587_v27  ;;  %v774_v24 = vmul.bf16 %v4103_v22, %v3991_v56  ;;  %v798_v27 = vmul.bf16 %v4093_v17, %v4010_v10  ;;  %v790_v29 = vmul.bf16 %v4103_v22, %v4010_v10 }
 0x239   :  { %v509_v32 = vpop.f32.mrb[12].mxu0  ;;  %v807_v23 = vmul.bf16 %v3987_v52, %v4035_v30  ;;  %v808_v56 = vmul.bf16 %v3993_v57, %v4035_v30 }
 0x23a   :  { %v510_v35 = vadd.f32 %v509_v32, %v3976_v42  ;;  %v511_v36 = vpop.f32.mrb[13].mxu0  ;;  %v799_v32 = vmul.bf16 %v3989_v53, %v4035_v30 }
 0x23b   :  { %v512_v45 = vadd.f32 %v511_v36, %v3981_v44  ;;  %v513_v46 = vpop.f32.mrb[14].mxu0  ;;  %v312_v36 = vsub.s32 2, %v3967_v38 }
 0x23c   :  { %2620 = vmatpush3.bf16.xpose.msra.mxu0 %v769_v33  ;;  %2636 = vmatpush3.bf16.xpose.msra.mxu1 %v784_v34  ;;  %v589_v47 = vmul.f32 0.35355338, %v510_v35  ;;  %v514_v48 = vadd.f32 %v513_v46, %v3976_v42  ;;  %v515_v49 = vpop.f32.mrb[15].mxu0  ;;  %v785_v42 = vmul.bf16 %v4031_v26, %v4010_v10 }
 0x23d   :  { %2621 = vmatprep.subr.bf16.mxu0 %v778_v37  ;;  %2637 = vmatprep.subr.bf16.mxu1 %v793_v43  ;;  %v516_v50 = vadd.f32 %v515_v49, %v3981_v44  ;;  %v794_v44 = vmul.bf16 %v4033_v28, %v4010_v10  ;;  %v800_v10 = vmul.bf16 %v4008_v9, %v4035_v30 }
 0x23e   :  { %v590_v54 = vmul.f32 0.35355338, %v514_v48  ;;  %v4135_v37 = vrot.slane %v3970_v40, %v312_v36 }
 0x23f   :  { %v4055_v59 = vpack.c.bf16 %v516_v50, %v512_v45  ;;  %v810_v45 = vmul.bf16 %v4033_v28, %v4035_v30 }
 0x240   :  { %v4057_v60 = vpack.c.bf16 %v590_v54, %v589_v47  ;;  %v2901_v47 = vpop.f32.mrb[0].mxu1 }
 0x241   :  { %v823_v33 = vmul.bf16 %v3987_v52, %v4055_v59  ;;  %v815_v34 = vmul.bf16 %v3989_v53, %v4055_v59  ;;  %v824_v35 = vmul.bf16 %v3993_v57, %v4055_v59  ;;  %v816_v43 = vmul.bf16 %v4008_v9, %v4055_v59  ;;  %v552_v48 = vpop.f32.mrb[1].mxu1 }
 0x242   :  { %v825_v46 = vmul.bf16 %v4012_v11, %v4055_v59  ;;  %v561_v40 = vadd.f32 %v2901_v47, %v4135_v37  ;;  %v553_v49 = vadd.f32 %v552_v48, %v4135_v37  ;;  %v2902_v50 = vpop.f32.mrb[2].mxu1  ;;  %v636_v47 = vld [vmem:[#allocation13 + $0x8] sm:$0xff]  ;;  %v654_v48 = vld [vmem:[#allocation13 + $0x98] sm:$0xff] }
 0x243   :  { %v564_v54 = vadd.f32 %v2902_v50, %v4135_v37  ;;  %v670_v50 = vld [vmem:[#allocation14 + $0x18] sm:$0xff] }
 0x244   :  { %2622 = vmatpush3.bf16.xpose.msra.mxu0 %v770_v61  ;;  %2638 = vmatpush3.bf16.xpose.msra.mxu1 %v785_v42  ;;  %v555_v61 = vpop.f32.mrb[3].mxu1 }
 0x245   :  { %2623 = vmatprep.subr.bf16.mxu0 %v779_v62  ;;  %2639 = vmatprep.subr.bf16.mxu1 %v794_v44  ;;  %v556_v42 = vadd.f32 %v555_v61, %v4135_v37  ;;  %v4149_v62 = vpack.c.bf16 %v564_v54, %v561_v40  ;;  %v802_v44 = vmul.bf16 %v4051_v51, %v4035_v30  ;;  %v653_v40 = vld [vmem:[#allocation13 + $0x90] sm:$0xff] }
 0x246   :  { %v2935_v61 = vpack.c.bf16 %v654_v48, %v653_v40  ;;  %v663_v40 = vld [vmem:[#allocation13 + $0xe0] sm:$0xff]  ;;  %v664_v48 = vld [vmem:[#allocation13 + $0xe8] sm:$0xff] }
 0x24c   :  { %2624 = vmatpush3.bf16.xpose.msra.mxu0 %v771_v2  ;;  %2640 = vmatpush3.bf16.xpose.msra.mxu1 %v786_v3  ;;  %v817_v2 = vmul.bf16 %v4031_v26, %v4055_v59  ;;  %v4155_v3 = vpack.c.bf16 %v556_v42, %v553_v49  ;;  %v668_v49 = vld [vmem:[#allocation14 + $0x8] sm:$0xff]  ;;  %v637_v42 = vld [vmem:[#allocation13 + $0x10] sm:$0xff] }
 0x24d   :  { %2625 = vmatprep.subr.bf16.mxu0 %v780_v4  ;;  %2641 = vmatprep.subr.bf16.mxu1 %v795_v5  ;;  %v811_v4 = vmul.bf16 %v4053_v55, %v4035_v30  ;;  %v826_v5 = vmul.bf16 %v4033_v28, %v4055_v59 }
 0x254   :  { %2626 = vmatpush3.bf16.xpose.msra.mxu0 %v772_v8  ;;  %2642 = vmatpush3.bf16.xpose.msra.mxu1 %v787_v13  ;;  %v2905_v8 = vpop.f32.mrb[4].mxu1 }
 0x255   :  { %2627 = vmatprep.subr.bf16.mxu0 %v781_v14  ;;  %2643 = vmatprep.subr.bf16.mxu1 %v796_v15  ;;  %v577_v13 = vadd.f32 %v2905_v8, %v4135_v37  ;;  %v4162_v14 = vpop.f32.mrb[5].mxu1 }
 0x256   :  { %v2906_v15 = vpop.f32.mrb[6].mxu1 }
 0x25c   :  { %2628 = vmatpush3.bf16.xpose.msra.mxu0 %v773_v18  ;;  %2644 = vmatpush3.bf16.xpose.msra.mxu1 %v788_v19  ;;  %v580_v18 = vadd.f32 %v2906_v15, %v4135_v37 }
 0x25d   :  { %2629 = vmatprep.subr.bf16.mxu0 %v782_v20  ;;  %2645 = vmatprep.subr.bf16.mxu1 %v797_v21  ;;  %v803_v20 = vmul.bf16 %v4067_v63, %v4035_v30  ;;  %v818_v21 = vmul.bf16 %v4051_v51, %v4055_v59 }
 0x25e   :  { %v4165_v19 = vpack.c.bf16 %v580_v18, %v577_v13  ;;  %v639_v13 = vld [vmem:[#allocation13 + $0x20] sm:$0xff]  ;;  %v640_v18 = vld [vmem:[#allocation13 + $0x28] sm:$0xff] }
 0x264   :  { %2630 = vmatpush3.bf16.xpose.msra.mxu0 %v774_v24  ;;  %2646 = vmatpush3.bf16.xpose.msra.mxu1 %v789_v25  ;;  %v827_v24 = vmul.bf16 %v4053_v55, %v4055_v59  ;;  %v804_v25 = vmul.bf16 %v4079_v6, %v4035_v30 }
 0x265   :  { %2647 = vmatprep.subr.bf16.mxu1 %v798_v27  ;;  %2651 = vmatprep.subr.bf16.mxu0 %v807_v23  ;;  %v812_v23 = vmul.bf16 %v4069_v1, %v4035_v30  ;;  %v819_v27 = vmul.bf16 %v4067_v63, %v4055_v59 }
 0x26b   :  { %2632 = vmatmul.mubr.bf16.vlgmr.msra.gmra.mrb[16].mxu0 %v3995_v58  ;;  %v809_v58 = vmul.bf16 %v4012_v11, %v4035_v30 }
 0x26c   :  { %2648 = vmatpush3.bf16.xpose.msra.mxu1 %v790_v29  ;;  %2652 = vmatpush3.bf16.xpose.msra.mxu0 %v799_v32  ;;  %v813_v29 = vmul.bf16 %v4081_v7, %v4035_v30  ;;  %v828_v32 = vmul.bf16 %v4069_v1, %v4055_v59 }
 0x26d   :  { %2667 = vmatprep.mubr.bf16.mxu0 %v4037_v31  ;;  %2653 = vmatprep.subr.bf16.mxu0 %v808_v56  ;;  %v820_v56 = vmul.bf16 %v4079_v6, %v4055_v59 }
 0x26e   :  { %2669 = vmatprep.subr.bf16.mxu1 %v823_v33  ;;  %v805_v33 = vmul.bf16 %v4091_v16, %v4035_v30 }
 0x273   :  { %2650 = vmatmul.mubr.bf16.vlgmr.msra.gmra.mrb[8].mxu1 %v4014_v12  ;;  %v801_v12 = vmul.bf16 %v4031_v26, %v4035_v30 }
 0x274   :  { %2654 = vmatpush3.bf16.xpose.msra.mxu0 %v800_v10  ;;  %2670 = vmatpush3.bf16.xpose.msra.mxu1 %v815_v34  ;;  %v814_v10 = vmul.bf16 %v4093_v17, %v4035_v30  ;;  %v829_v34 = vmul.bf16 %v4081_v7, %v4055_v59 }
 0x275   :  { %2685 = vmatprep.mubr.bf16.mxu1 %v4057_v60  ;;  %2655 = vmatprep.subr.bf16.mxu0 %v809_v58  ;;  %v651_v58 = vld [vmem:[#allocation13 + $0x80] sm:$0xff] }
 0x276   :  { %2671 = vmatprep.subr.bf16.mxu1 %v824_v35  ;;  %v652_v35 = vld [vmem:[#allocation13 + $0x88] sm:$0xff] }
 0x277   :  { %v2931_v36 = vpack.c.bf16 %v652_v35, %v651_v58  ;;  %v643_v58 = vld [vmem:[#allocation13 + $0x40] sm:$0xff]  ;;  %v644_v35 = vld [vmem:[#allocation13 + $0x48] sm:$0xff] }
 0x27c   :  { %2656 = vmatpush3.bf16.xpose.msra.mxu0 %v801_v12  ;;  %2672 = vmatpush3.bf16.xpose.msra.mxu1 %v816_v43  ;;  %v806_v12 = vmul.bf16 %v4103_v22, %v4035_v30  ;;  %v821_v43 = vmul.bf16 %v4091_v16, %v4055_v59  ;;  %v638_v30 = vld [vmem:[#allocation13 + $0x18] sm:$0xff] }
 0x27d   :  { %2657 = vmatprep.subr.bf16.mxu0 %v810_v45  ;;  %2673 = vmatprep.subr.bf16.mxu1 %v825_v46  ;;  %v830_v45 = vmul.bf16 %v4093_v17, %v4055_v59  ;;  %v635_v46 = vld [vmem:[#allocation13] sm:$0xff]  ;;  %v2937_v8 = vpack.c.bf16 %v638_v30, %v637_v42  ;;  %v665_v42 = vld [vmem:[#allocation13 + $0xf0] sm:$0xff]  ;;  %v666_v30 = vld [vmem:[#allocation13 + $0xf8] sm:$0xff] }
 0x27e   :  { %v2933_v54 = vpack.c.bf16 %v636_v47, %v635_v46  ;;  %v645_v46 = vld [vmem:[#allocation13 + $0x50] sm:$0xff]  ;;  %v646_v47 = vld [vmem:[#allocation13 + $0x58] sm:$0xff] }
 0x284   :  { %2658 = vmatpush3.bf16.xpose.msra.mxu0 %v802_v44  ;;  %2674 = vmatpush3.bf16.xpose.msra.mxu1 %v817_v2  ;;  %v2963_v44 = vpack.c.bf16 %v670_v50, %v668_v49  ;;  %v822_v2 = vmul.bf16 %v4103_v22, %v4055_v59  ;;  %v2955_v49 = vpack.c.bf16 %v664_v48, %v663_v40  ;;  %v647_v50 = vld [vmem:[#allocation13 + $0x60] sm:$0xff] }
 0x285   :  { %2659 = vmatprep.subr.bf16.mxu0 %v811_v4  ;;  %2675 = vmatprep.subr.bf16.mxu1 %v826_v5  ;;  %v655_v4 = vld [vmem:[#allocation13 + $0xa0] sm:$0xff]  ;;  %v656_v5 = vld [vmem:[#allocation13 + $0xa8] sm:$0xff] }
 0x286   :  { %v2939_v15 = vpack.c.bf16 %v656_v5, %v655_v4  ;;  %v2959_v5 = vpack.c.bf16 %v666_v30, %v665_v42 }
 0x28c   :  { %2660 = vmatpush3.bf16.xpose.msra.mxu0 %v803_v20  ;;  %2676 = vmatpush3.bf16.xpose.msra.mxu1 %v818_v21  ;;  %v667_v20 = vld [vmem:[#allocation14] sm:$0xff]  ;;  %v669_v21 = vld [vmem:[#allocation14 + $0x10] sm:$0xff] }
 0x28d   :  { %2661 = vmatprep.subr.bf16.mxu0 %v812_v23  ;;  %2677 = vmatprep.subr.bf16.mxu1 %v827_v24  ;;  %v657_v23 = vld [vmem:[#allocation13 + $0xb0] sm:$0xff]  ;;  %v658_v24 = vld [vmem:[#allocation13 + $0xb8] sm:$0xff] }
 0x28e   :  { %v2943_v59 = vpack.c.bf16 %v658_v24, %v657_v23 }
 0x294   :  { %2662 = vmatpush3.bf16.xpose.msra.mxu0 %v804_v25  ;;  %2678 = vmatpush3.bf16.xpose.msra.mxu1 %v819_v27  ;;  %v2941_v25 = vpack.c.bf16 %v640_v18, %v639_v13  ;;  %v2965_v27 = vpack.c.bf16 %v669_v21, %v667_v20  ;;  %v650_v13 = vld [vmem:[#allocation13 + $0x78] sm:$0xff]  ;;  %v855_v20 = vmul.bf16 %v3987_v52, %v4149_v62 }
 0x295   :  { %2663 = vmatprep.subr.bf16.mxu0 %v813_v29  ;;  %2679 = vmatprep.subr.bf16.mxu1 %v828_v32  ;;  %v641_v29 = vld [vmem:[#allocation13 + $0x30] sm:$0xff]  ;;  %v642_v32 = vld [vmem:[#allocation13 + $0x38] sm:$0xff] }
 0x29c   :  { %2664 = vmatpush3.bf16.xpose.msra.mxu0 %v805_v33  ;;  %2680 = vmatpush3.bf16.xpose.msra.mxu1 %v820_v56  ;;  %v659_v33 = vld [vmem:[#allocation13 + $0xc0] sm:$0xff]  ;;  %v660_v56 = vld [vmem:[#allocation13 + $0xc8] sm:$0xff] }
 0x29d   :  { %2665 = vmatprep.subr.bf16.mxu0 %v814_v10  ;;  %2681 = vmatprep.subr.bf16.mxu1 %v829_v34  ;;  %v2945_v10 = vpack.c.bf16 %v642_v32, %v641_v29  ;;  %v2947_v34 = vpack.c.bf16 %v660_v56, %v659_v33 }
 0x2a4   :  { %2666 = vmatpush3.bf16.xpose.msra.mxu0 %v806_v12  ;;  %2682 = vmatpush3.bf16.xpose.msra.mxu1 %v821_v43  ;;  %v662_v12 = vld [vmem:[#allocation13 + $0xd8] sm:$0xff]  ;;  %v2949_v43 = vpack.c.bf16 %v644_v35, %v643_v58 }
 0x2a5   :  { %2683 = vmatprep.subr.bf16.mxu1 %v830_v45  ;;  %2932 = vmatprep.subr.bf16.mxu0 %v2931_v36  ;;  %v661_v36 = vld [vmem:[#allocation13 + $0xd0] sm:$0xff] }
 0x2a6   :  { %v2951_v45 = vpack.c.bf16 %v662_v12, %v661_v36 }
 0x2ab   :  { %2668 = vmatmul.mubr.bf16.vlgmr.msra.gmra.mrb[20].mxu0 %v4037_v31  ;;  %v839_v31 = vmul.bf16 %v3987_v52, %v4155_v3 }
 0x2ac   :  { %2684 = vmatpush3.bf16.xpose.msra.mxu1 %v822_v2  ;;  %2934 = vmatpush3.bf16.msra.mxu0 %v2933_v54  ;;  %v648_v54 = vld [vmem:[#allocation13 + $0x68] sm:$0xff] }
 0x2ad   :  { %2936 = vmatprep.subr.bf16.mxu0 %v2935_v61  ;;  %2964 = vmatprep.subr.bf16.mxu1 %v2963_v44  ;;  %v569_v61 = vadd.f32 %v4162_v14, %v4135_v37  ;;  %v571_v44 = vpop.f32.mrb[7].mxu1  ;;  %v2957_v4 = vpack.c.bf16 %v648_v54, %v647_v50 }
 0x2ae   :  { %v572_v2 = vadd.f32 %v571_v44, %v4135_v37 }
 0x2b0   :  { %2938 = vmatpush3.bf16.msra.mxu0 %v2937_v8  ;;  %v649_v8 = vld [vmem:[#allocation13 + $0x70] sm:$0xff] }
 0x2b1   :  { %2940 = vmatprep.subr.bf16.mxu0 %v2939_v15  ;;  %v4206_v15 = vpack.c.bf16 %v572_v2, %v569_v61  ;;  %v2961_v18 = vpack.c.bf16 %v650_v13, %v649_v8 }
 0x2b3   :  { %2686 = vmatmul.mubr.bf16.vlgmr.msra.gmra.mrb[12].mxu1 %v4057_v60  ;;  %v2953_v60 = vpack.c.bf16 %v646_v47, %v645_v46 }
 0x2b4   :  { %2942 = vmatpush3.bf16.msra.mxu0 %v2941_v25  ;;  %2966 = vmatpush1.bf16.msra.mxu1 %v2965_v27 }
 0x2b5   :  { %2944 = vmatprep.subr.bf16.mxu0 %v2943_v59  ;;  %2743 = vmatprep.subr.bf16.mxu1 %v839_v31 }
 0x2b8   :  { %2946 = vmatpush3.bf16.msra.mxu0 %v2945_v10 }
 0x2b9   :  { %2948 = vmatprep.subr.bf16.mxu0 %v2947_v34 }
 0x2bc   :  { %2950 = vmatpush3.bf16.msra.mxu0 %v2949_v43 }
 0x2bd   :  { %2952 = vmatprep.subr.bf16.mxu0 %v2951_v45 }
 0x2c0   :  { %2954 = vmatpush3.bf16.msra.mxu0 %v2953_v60 }
 0x2c1   :  { %2956 = vmatprep.subr.bf16.mxu0 %v2955_v49 }
 0x2c4   :  { %2958 = vmatpush3.bf16.msra.mxu0 %v2957_v4 }
 0x2c5   :  { %2960 = vmatprep.subr.bf16.mxu0 %v2959_v5 }
 0x2c8   :  { %2962 = vmatpush3.bf16.msra.mxu0 %v2961_v18 }
 0x2c9   :  { %2765 = vmatprep.subr.bf16.mxu0 %v855_v20 }
 0x33e   :  { %v929_v14 = vpop.f32.mrb[16].mxu0 }
 0x33f   :  { %v931_v21 = vpop.f32.mrb[17].mxu0 }
 0x340   :  { %v933_v23 = vpop.f32.mrb[18].mxu0  ;;  %v1067_v37 = vmax.f32 %v929_v14, %v931_v21 }
 0x341   :  { %v935_v24 = vpop.f32.mrb[19].mxu0 }
 0x342   :  { %1068 = vmax.xlane.f32.xlu0 %v1067_v37  ;;  %v1070_v25 = vmax.f32 %v933_v23, %v935_v24 }
 0x346   :  { %v972_v27 = vpop.f32.mrb[8].mxu1  ;;  %1071 = vmax.xlane.f32.xlu0 %v1070_v25 }
 0x347   :  { %v974_v59 = vpop.f32.mrb[9].mxu1 }
 0x348   :  { %v976_v29 = vpop.f32.mrb[10].mxu1  ;;  %v1073_v32 = vmax.f32 %v972_v27, %v974_v59 }
 0x349   :  { %v978_v31 = vpop.f32.mrb[11].mxu1 }
 0x34a   :  { %1074 = vmax.xlane.f32.xlu1 %v1073_v32  ;;  %v1076_v33 = vmax.f32 %v976_v29, %v978_v31 }
 0x34e   :  { %1077 = vmax.xlane.f32.xlu1 %v1076_v33  ;;  %v857_v33 = vmul.bf16 %v4012_v11, %v4149_v62 }
 0x37e   :  { %v4210_v56 = vpop.f32.mrb[20].mxu0 }
 0x37f   :  { %v4212_v10 = vpop.f32.mrb[21].mxu0 }
 0x380   :  { %v4214_v34 = vpop.f32.mrb[22].mxu0  ;;  %v1079_v58 = vmax.f32 %v4210_v56, %v4212_v10 }
 0x381   :  { %v4218_v35 = vpop.f32.mrb[23].mxu0 }
 0x382   :  { %1080 = vmax.xlane.f32.xlu0 %v1079_v58  ;;  %v1082_v36 = vmax.f32 %v4214_v34, %v4218_v35 }
 0x384   :  { %1083 = vmax.xlane.f32.xlu1 %v1082_v36 }
 0x386   :  { %v4222_v12 = vpop.f32.mrb[12].mxu1 }
 0x387   :  { %v4224_v43 = vpop.f32.mrb[13].mxu1 }
 0x388   :  { %v4226_v45 = vpop.f32.mrb[14].mxu1  ;;  %v1085_v46 = vmax.f32 %v4222_v12, %v4224_v43 }
 0x389   :  { %v4230_v47 = vpop.f32.mrb[15].mxu1 }
 0x38a   :  { %1086 = vmax.xlane.f32.xlu0 %v1085_v46  ;;  %v1088_v40 = vmax.f32 %v4226_v45, %v4230_v47  ;;  %v849_v46 = vmul.bf16 %v4031_v26, %v4149_v62 }
 0x38c   :  { %1089 = vmax.xlane.f32.xlu1 %v1088_v40  ;;  %v858_v40 = vmul.bf16 %v4033_v28, %v4149_v62 }
 0x3cf   :  { %v1069_v48 = vpop.xlane.xlu0 %1068 }
 0x3d0   :  { %v1091_v60 = vsub.f32 %v929_v14, %v1069_v48  ;;  %v1092_v49 = vsub.f32 %v931_v21, %v1069_v48 }
 0x3d2   :  { %v1107_v50 = vmul.f32 1.442695, %v1091_v60  ;;  %v1109_v54 = vmul.f32 1.442695, %v1092_v49  ;;  %v850_v49 = vmul.bf16 %v4051_v51, %v4149_v62 }
 0x3d3   :  { %v1072_v61 = vpop.xlane.xlu0 %1071 }
 0x3d4   :  { %3090 = vpow2.f32 %v1107_v50  ;;  %v1093_v42 = vsub.f32 %v933_v23, %v1072_v61  ;;  %v1094_v30 = vsub.f32 %v935_v24, %v1072_v61  ;;  %v859_v50 = vmul.bf16 %v4053_v55, %v4149_v62 }
 0x3d5   :  { %3092 = vpow2.f32 %v1109_v54  ;;  %v851_v54 = vmul.bf16 %v4067_v63, %v4149_v62  ;;  %v860_v61 = vmul.bf16 %v4069_v1, %v4149_v62 }
 0x3d6   :  { %v1111_v44 = vmul.f32 1.442695, %v1093_v42  ;;  %v1113_v2 = vmul.f32 1.442695, %v1094_v30  ;;  %v852_v42 = vmul.bf16 %v4079_v6, %v4149_v62  ;;  %v861_v30 = vmul.bf16 %v4081_v7, %v4149_v62 }
 0x3d7   :  { %v1075_v4 = vpop.xlane.xlu1 %1074 }
 0x3d8   :  { %3094 = vpow2.f32 %v1111_v44  ;;  %v1095_v5 = vsub.f32 %v972_v27, %v1075_v4  ;;  %v1096_v8 = vsub.f32 %v974_v59, %v1075_v4  ;;  %v847_v27 = vmul.bf16 %v3989_v53, %v4149_v62 }
 0x3d9   :  { %3096 = vpow2.f32 %v1113_v2  ;;  %v856_v59 = vmul.bf16 %v3993_v57, %v4149_v62  ;;  %v853_v44 = vmul.bf16 %v4091_v16, %v4149_v62  ;;  %v862_v2 = vmul.bf16 %v4093_v17, %v4149_v62 }
 0x3da   :  { %v1115_v13 = vmul.f32 1.442695, %v1095_v5  ;;  %v1117_v18 = vmul.f32 1.442695, %v1096_v8  ;;  %v854_v4 = vmul.bf16 %v4103_v22, %v4149_v62  ;;  %v887_v5 = vmul.bf16 %v3987_v52, %v4165_v19 }
 0x3db   :  { %v1078_v20 = vpop.xlane.xlu1 %1077 }
 0x3dc   :  { %3098 = vpow2.f32 %v1115_v13  ;;  %v1097_v14 = vsub.f32 %v976_v29, %v1078_v20  ;;  %v1098_v21 = vsub.f32 %v978_v31, %v1078_v20  ;;  %v848_v31 = vmul.bf16 %v4008_v9, %v4149_v62 }
 0x3dd   :  { %3100 = vpow2.f32 %v1117_v18 }
 0x3de   :  { %v4234_v37 = vpop.eup %3090  ;;  %v1119_v25 = vmul.f32 1.442695, %v1097_v14  ;;  %v1121_v23 = vmul.f32 1.442695, %v1098_v21 }
 0x3df   :  { %v4236_v24 = vpop.eup %3092 }
 0x3e0   :  { %3102 = vpow2.f32 %v1119_v25  ;;  %1203 = vmatprep.mubr.f32.mxu0 %v4236_v24 }
 0x3e1   :  { %3104 = vpow2.f32 %v1121_v23  ;;  %1204 = vmatmul.mubr.f32.vlgmr.msra.gmra.mrb[24].mxu0 %v4234_v37 }
 0x3e2   :  { %v4244_v29 = vpop.eup %3094  ;;  %2766 = vmatpush3.bf16.msra.mxu0 %v847_v27 }
 0x3e3   :  { %v4246_v32 = vpop.eup %3096  ;;  %2767 = vmatprep.subr.bf16.mxu0 %v856_v59 }
 0x3e4   :  { %1208 = vmatprep.mubr.f32.mxu0 %v4246_v32 }
 0x3e5   :  { %1209 = vmatmul.mubr.f32.gmra.mrb[26].mxu0 %v4244_v29 }
 0x3e6   :  { %v4254_v58 = vpop.eup %3098  ;;  %2768 = vmatpush3.bf16.msra.mxu0 %v848_v31 }
 0x3e7   :  { %v4256_v36 = vpop.eup %3100  ;;  %2769 = vmatprep.subr.bf16.mxu0 %v857_v33 }
 0x3e8   :  { %1213 = vmatprep.mubr.f32.mxu0 %v4256_v36 }
 0x3e9   :  { %1214 = vmatmul.mubr.f32.gmra.mrb[28].mxu0 %v4254_v58 }
 0x3ea   :  { %v4264_v48 = vpop.eup %3102  ;;  %2770 = vmatpush3.bf16.msra.mxu0 %v849_v46 }
 0x3eb   :  { %v4266_v60 = vpop.eup %3104  ;;  %2771 = vmatprep.subr.bf16.mxu0 %v858_v40 }
 0x3ec   :  { %1218 = vmatprep.mubr.f32.mxu0 %v4266_v60 }
 0x3ed   :  { %1219 = vmatmul.mubr.f32.gmra.mrb[30].mxu0 %v4264_v48 }
 0x3ee   :  { %2772 = vmatpush3.bf16.msra.mxu0 %v850_v49 }
 0x3ef   :  { %2773 = vmatprep.subr.bf16.mxu0 %v859_v50 }
 0x3f2   :  { %2774 = vmatpush3.bf16.msra.mxu0 %v851_v54 }
 0x3f3   :  { %2775 = vmatprep.subr.bf16.mxu0 %v860_v61 }
 0x3f6   :  { %2776 = vmatpush3.bf16.msra.mxu0 %v852_v42  ;;  %v3645_v42 = vmov 0.0  }
 0x3f7   :  { %2777 = vmatprep.subr.bf16.mxu0 %v861_v30  ;;  %1373 = vmatprep.mubr.f32.mxu1 %v3645_v42 }
 0x3fa   :  { %2778 = vmatpush3.bf16.msra.mxu0 %v853_v44 }
 0x3fb   :  { %2779 = vmatprep.subr.bf16.mxu0 %v862_v2 }
 0x3fe   :  { %2780 = vmatpush3.bf16.msra.mxu0 %v854_v4 }
 0x3ff   :  { %2809 = vmatprep.subr.bf16.mxu0 %v887_v5 }
 0x40f   :  { %v1081_v8 = vpop.xlane.xlu0 %1080 }
 0x410   :  { %v1099_v13 = vsub.f32 %v4210_v56, %v1081_v8  ;;  %v1100_v18 = vsub.f32 %v4212_v10, %v1081_v8 }
 0x411   :  { %v1084_v20 = vpop.xlane.xlu1 %1083 }
 0x412   :  { %v1123_v14 = vmul.f32 1.442695, %v1099_v13  ;;  %v1125_v21 = vmul.f32 1.442695, %v1100_v18  ;;  %v1101_v25 = vsub.f32 %v4214_v34, %v1084_v20  ;;  %v1102_v23 = vsub.f32 %v4218_v35, %v1084_v20 }
 0x414   :  { %3106 = vpow2.f32 %v1123_v14  ;;  %v1129_v27 = vmul.f32 1.442695, %v1102_v23  ;;  %v1127_v62 = vmul.f32 1.442695, %v1101_v25 }
 0x415   :  { %3108 = vpow2.f32 %v1125_v21 }
 0x416   :  { %3110 = vpow2.f32 %v1129_v27 }
 0x417   :  { %v1087_v52 = vpop.xlane.xlu0 %1086  ;;  %3112 = vpow2.f32 %v1127_v62 }
 0x418   :  { %v1103_v59 = vsub.f32 %v4222_v12, %v1087_v52  ;;  %v1104_v31 = vsub.f32 %v4224_v43, %v1087_v52 }
 0x419   :  { %v1090_v56 = vpop.xlane.xlu1 %1089 }
 0x41a   :  { %v1131_v10 = vmul.f32 1.442695, %v1103_v59  ;;  %v1133_v33 = vmul.f32 1.442695, %v1104_v31  ;;  %v1105_v46 = vsub.f32 %v4226_v45, %v1090_v56  ;;  %v1106_v34 = vsub.f32 %v4230_v47, %v1090_v56 }
 0x41c   :  { %3114 = vpow2.f32 %v1131_v10  ;;  %v1137_v35 = vmul.f32 1.442695, %v1106_v34  ;;  %v1135_v49 = vmul.f32 1.442695, %v1105_v46  ;;  %v831_v34 = vmul.bf16 %v3989_v53, %v4155_v3 }
 0x41d   :  { %3116 = vpow2.f32 %v1133_v33  ;;  %v841_v53 = vmul.bf16 %v4012_v11, %v4155_v3 }
 0x41e   :  { %v4298_v40 = vpop.eup %3106  ;;  %3118 = vpow2.f32 %v1137_v35 }
 0x41f   :  { %v4300_v50 = vpop.eup %3108  ;;  %3120 = vpow2.f32 %v1135_v49  ;;  %v840_v49 = vmul.bf16 %v3993_v57, %v4155_v3 }
 0x420   :  { %1223 = vmatprep.mubr.f32.mxu0 %v4300_v50  ;;  %v4303_v12 = vpop.eup %3110 }
 0x421   :  { %1224 = vmatmul.mubr.f32.gmra.mrb[32].mxu0 %v4298_v40  ;;  %v4307_v43 = vpop.eup %3112 }
 0x422   :  { %1228 = vmatprep.mubr.f32.mxu0 %v4303_v12 }
 0x425   :  { %1229 = vmatmul.mubr.f32.gmra.mrb[34].mxu0 %v4307_v43 }
 0x426   :  { %v4310_v45 = vpop.eup %3114 }
 0x427   :  { %v4312_v47 = vpop.eup %3116 }
 0x428   :  { %1233 = vmatprep.mubr.f32.mxu0 %v4312_v47  ;;  %v4315_v54 = vpop.eup %3118 }
 0x429   :  { %1234 = vmatmul.mubr.f32.gmra.mrb[36].mxu0 %v4310_v45  ;;  %v4319_v61 = vpop.eup %3120 }
 0x42a   :  { %1238 = vmatprep.mubr.f32.mxu0 %v4315_v54 }
 0x42d   :  { %1239 = vmatmul.mubr.f32.gmra.mrb[38].mxu0 %v4319_v61 }
 0x4b4   :  { %v2719_v30 = vpop.f32.mrb[24].mxu0 }
 0x4b5   :  { %v2720_v44 = vpop.f32.mrb[25].mxu0 }
 0x4b6   :  { %v2721_v2 = vadd.f32 %v2720_v44, %v2719_v30 }
 0x4b8   :  { %v1244_v4 = vmax.f32 %v2721_v2, 1e-30  ;;  %v2722_v5 = vpop.f32.mrb[26].mxu0 }
 0x4b9   :  { %v2723_v8 = vpop.f32.mrb[27].mxu0 }
 0x4ba   :  { %3122 = vrcp.f32 %v1244_v4  ;;  %v2724_v13 = vadd.f32 %v2723_v8, %v2722_v5 }
 0x4bc   :  { %v1245_v18 = vmax.f32 %v2724_v13, 1e-30  ;;  %v2725_v20 = vpop.f32.mrb[28].mxu0 }
 0x4bd   :  { %v2726_v14 = vpop.f32.mrb[29].mxu0 }
 0x4be   :  { %3124 = vrcp.f32 %v1245_v18  ;;  %v2727_v21 = vadd.f32 %v2726_v14, %v2725_v20  ;;  %v834_v14 = vmul.bf16 %v4051_v51, %v4155_v3  ;;  %v836_v51 = vmul.bf16 %v4079_v6, %v4155_v3 }
 0x4c0   :  { %v1246_v25 = vmax.f32 %v2727_v21, 1e-30  ;;  %v2728_v23 = vpop.f32.mrb[30].mxu0  ;;  %v843_v21 = vmul.bf16 %v4053_v55, %v4155_v3  ;;  %v837_v55 = vmul.bf16 %v4091_v16, %v4155_v3 }
 0x4c1   :  { %v2729_v27 = vpop.f32.mrb[31].mxu0 }
 0x4c2   :  { %3126 = vrcp.f32 %v1246_v25  ;;  %v2730_v62 = vadd.f32 %v2729_v27, %v2728_v23  ;;  %v846_v23 = vmul.bf16 %v4093_v17, %v4155_v3 }
 0x4c4   :  { %v3123_v52 = vpop.eup %3122  ;;  %v1247_v59 = vmax.f32 %v2730_v62, 1e-30 }
 0x4c5   :  { %v1260_v31 = vmul.f32 %v3123_v52, %v1244_v4  ;;  %v832_v4 = vmul.bf16 %v4008_v9, %v4155_v3  ;;  %v842_v9 = vmul.bf16 %v4033_v28, %v4155_v3  ;;  %v844_v28 = vmul.bf16 %v4069_v1, %v4155_v3  ;;  %v3202_v1 = vld [vmem:[#allocation11 + $0x40] sm:$0xff]  }
 0x4c6   :  { %3128 = vrcp.f32 %v1247_v59  ;;  %v871_v27 = vmul.bf16 %v3202_v1, %v4206_v15 }
 0x4c7   :  { %v1268_v56 = vsub.f32 2.0, %v1260_v31 }
 0x4c8   :  { %v3125_v10 = vpop.eup %3124 }
 0x4c9   :  { %v1276_v33 = vmul.f32 %v3123_v52, %v1268_v56  ;;  %v1261_v46 = vmul.f32 %v3125_v10, %v1245_v18  ;;  %v833_v18 = vmul.bf16 %v4031_v26, %v4155_v3  ;;  %v835_v26 = vmul.bf16 %v4067_v63, %v4155_v3 }
 0x4ca   :  { %v838_v63 = vmul.bf16 %v4103_v22, %v4155_v3 }
 0x4cb   :  { %v1269_v35 = vsub.f32 2.0, %v1261_v46  ;;  %2549 = vmatmul.mubr.msk.f32.vlgmr.msra.gmra.mrb[16].mxu1 %vm1284_vm0, %v1276_v33 }
 0x4cc   :  { %v3127_v30 = vpop.eup %3126  ;;  %2744 = vmatpush3.bf16.msra.mxu1 %v831_v34  ;;  %1379 = vmatprep.mubr.f32.mxu1 %v3645_v42 }
 0x4cd   :  { %v1277_v44 = vmul.f32 %v3125_v10, %v1269_v35  ;;  %v1262_v2 = vmul.f32 %v3127_v30, %v1246_v25  ;;  %2745 = vmatprep.subr.bf16.mxu1 %v840_v49  ;;  %v845_v25 = vmul.bf16 %v4081_v7, %v4155_v3 }
 0x4cf   :  { %v1270_v5 = vsub.f32 2.0, %v1262_v2  ;;  %2550 = vmatmul.mubr.msk.f32.gmra.mrb[18].mxu1 %vm1284_vm0, %v1277_v44 }
 0x4d0   :  { %v3129_v8 = vpop.eup %3128  ;;  %2746 = vmatpush3.bf16.msra.mxu1 %v832_v4  ;;  %1385 = vmatprep.mubr.f32.mxu1 %v3645_v42 }
 0x4d1   :  { %v1278_v57 = vmul.f32 %v3127_v30, %v1270_v5  ;;  %v1263_v13 = vmul.f32 %v3129_v8, %v1247_v59  ;;  %2747 = vmatprep.subr.bf16.mxu1 %v841_v53 }
 0x4d3   :  { %v1271_v20 = vsub.f32 2.0, %v1263_v13  ;;  %2551 = vmatmul.mubr.msk.f32.gmra.mrb[20].mxu1 %vm1284_vm0, %v1278_v57 }
 0x4d4   :  { %2748 = vmatpush3.bf16.msra.mxu1 %v833_v18  ;;  %1391 = vmatprep.mubr.f32.mxu1 %v3645_v42 }
 0x4d5   :  { %v1279_v11 = vmul.f32 %v3129_v8, %v1271_v20  ;;  %2749 = vmatprep.subr.bf16.mxu1 %v842_v9 }
 0x4d7   :  { %2552 = vmatmul.mubr.msk.f32.gmra.mrb[22].mxu1 %vm1284_vm0, %v1279_v11 }
 0x4d8   :  { %2750 = vmatpush3.bf16.msra.mxu1 %v834_v14  ;;  %1397 = vmatprep.mubr.f32.mxu1 %v3645_v42 }
 0x4d9   :  { %2751 = vmatprep.subr.bf16.mxu1 %v843_v21 }
 0x4dc   :  { %2752 = vmatpush3.bf16.msra.mxu1 %v835_v26 }
 0x4dd   :  { %2753 = vmatprep.subr.bf16.mxu1 %v844_v28 }
 0x4e0   :  { %2754 = vmatpush3.bf16.msra.mxu1 %v836_v51 }
 0x4e1   :  { %2755 = vmatprep.subr.bf16.mxu1 %v845_v25 }
 0x4e4   :  { %2756 = vmatpush3.bf16.msra.mxu1 %v837_v55 }
 0x4e5   :  { %2757 = vmatprep.subr.bf16.mxu1 %v846_v23 }
 0x4e8   :  { %2758 = vmatpush3.bf16.msra.mxu1 %v838_v63 }
 0x4e9   :  { %2787 = vmatprep.subr.bf16.mxu1 %v871_v27 }
 0x4f4   :  { %v2731_v6 = vpop.f32.mrb[32].mxu0 }
 0x4f5   :  { %v2732_v7 = vpop.f32.mrb[33].mxu0 }
 0x4f6   :  { %v2733_v62 = vadd.f32 %v2732_v7, %v2731_v6 }
 0x4f8   :  { %v1248_v52 = vmax.f32 %v2733_v62, 1e-30  ;;  %v2734_v59 = vpop.f32.mrb[34].mxu0 }
 0x4f9   :  { %v2735_v31 = vpop.f32.mrb[35].mxu0 }
 0x4fa   :  { %3130 = vrcp.f32 %v1248_v52  ;;  %v2736_v16 = vadd.f32 %v2735_v31, %v2734_v59  ;;  %v3204_v59 = vld [vmem:[#allocation11 + $0x48] sm:$0xff]  }
 0x4fb   :  { %v872_v31 = vmul.bf16 %v3204_v59, %v4206_v15 }
 0x4fc   :  { %v1249_v56 = vmax.f32 %v2736_v16, 1e-30  ;;  %v2737_v17 = vpop.f32.mrb[36].mxu0 }
 0x4fd   :  { %v2738_v10 = vpop.f32.mrb[37].mxu0 }
 0x4fe   :  { %3132 = vrcp.f32 %v1249_v56  ;;  %v2739_v33 = vadd.f32 %v2738_v10, %v2737_v17  ;;  %v3205_v17 = vld [vmem:[#allocation11 + $0x8] sm:$0xff]  }
 0x4ff   :  { %v864_v10 = vmul.bf16 %v3205_v17, %v4206_v15 }
 0x500   :  { %v1250_v46 = vmax.f32 %v2739_v33, 1e-30  ;;  %v2740_v22 = vpop.f32.mrb[38].mxu0 }
 0x501   :  { %v2741_v3 = vpop.f32.mrb[39].mxu0 }
 0x502   :  { %3134 = vrcp.f32 %v1250_v46  ;;  %v2742_v34 = vadd.f32 %v2741_v3, %v2740_v22 }
 0x504   :  { %v3131_v35 = vpop.eup %3130  ;;  %v1251_v49 = vmax.f32 %v2742_v34, 1e-30 }
 0x505   :  { %v1264_v30 = vmul.f32 %v3131_v35, %v1248_v52 }
 0x506   :  { %3136 = vrcp.f32 %v1251_v49 }
 0x507   :  { %v1272_v44 = vsub.f32 2.0, %v1264_v30 }
 0x508   :  { %v3133_v2 = vpop.eup %3132 }
 0x509   :  { %v1280_v4 = vmul.f32 %v3131_v35, %v1272_v44  ;;  %v1265_v5 = vmul.f32 %v3133_v2, %v1249_v56  ;;  %v888_v35 = vmul.bf16 %v3204_v59, %v4165_v19  ;;  %v880_v44 = vmul.bf16 %v3205_v17, %v4165_v19 }
 0x50b   :  { %v1273_v53 = vsub.f32 2.0, %v1265_v5  ;;  %2553 = vmatmul.mubr.msk.f32.gmra.mrb[24].mxu1 %vm1284_vm0, %v1280_v4 }
 0x50c   :  { %v3135_v8 = vpop.eup %3134  ;;  %1403 = vmatprep.mubr.f32.mxu1 %v3645_v42 }
 0x50d   :  { %v1281_v57 = vmul.f32 %v3133_v2, %v1273_v53  ;;  %v1266_v13 = vmul.f32 %v3135_v8, %v1250_v46  ;;  %v3206_v46 = vld [vmem:[#allocation11 + $0x50] sm:$0xff]   ;;  %v3210_v2 = vld [vmem:[#allocation11 + $0x60] sm:$0xff]  }
 0x50e   :  { %v873_v22 = vmul.bf16 %v3206_v46, %v4206_v15  ;;  %v875_v4 = vmul.bf16 %v3210_v2, %v4206_v15  ;;  %v889_v5 = vmul.bf16 %v3206_v46, %v4165_v19  ;;  %v3211_v53 = vld [vmem:[#allocation11 + $0x20] sm:$0xff]  }
 0x50f   :  { %v1274_v18 = vsub.f32 2.0, %v1266_v13  ;;  %2554 = vmatmul.mubr.msk.f32.gmra.mrb[26].mxu1 %vm1284_vm0, %v1281_v57  ;;  %v3212_v13 = vld [vmem:[#allocation11 + $0x68] sm:$0xff]  }
 0x510   :  { %v3137_v20 = vpop.eup %3136  ;;  %1409 = vmatprep.mubr.f32.mxu1 %v3645_v42 }
 0x511   :  { %v1282_v9 = vmul.f32 %v3135_v8, %v1274_v18  ;;  %v1267_v11 = vmul.f32 %v3137_v20, %v1251_v49  ;;  %v3209_v49 = vld [vmem:[#allocation11 + $0x18] sm:$0xff]   ;;  %v867_v8 = vmul.bf16 %v3211_v53, %v4206_v15  ;;  %v876_v18 = vmul.bf16 %v3212_v13, %v4206_v15 }
 0x512   :  { %v866_v30 = vmul.bf16 %v3209_v49, %v4206_v15 }
 0x513   :  { %v1275_v14 = vsub.f32 2.0, %v1267_v11  ;;  %2555 = vmatmul.mubr.msk.f32.gmra.mrb[28].mxu1 %vm1284_vm0, %v1282_v9  ;;  %v3213_v9 = vld [vmem:[#allocation11 + $0x28] sm:$0xff]  }
 0x514   :  { %1415 = vmatprep.mubr.f32.mxu1 %v3645_v42  ;;  %v3203_v42 = vld [vmem:[#allocation11] sm:$0xff]   ;;  %v868_v11 = vmul.bf16 %v3213_v9, %v4206_v15 }
 0x515   :  { %v1283_v21 = vmul.f32 %v3137_v20, %v1275_v14  ;;  %v863_v52 = vmul.bf16 %v3203_v42, %v4206_v15  ;;  %v879_v34 = vmul.bf16 %v3203_v42, %v4165_v19  ;;  %v882_v14 = vmul.bf16 %v3209_v49, %v4165_v19 }
 0x517   :  { %2556 = vmatmul.mubr.msk.f32.gmra.mrb[30].mxu1 %vm1284_vm0, %v1283_v21  ;;  %v3214_v21 = vld [vmem:[#allocation11 + $0x70] sm:$0xff]  }
 0x518   :  { %v893_v42 = vmul.bf16 %v3214_v21, %v4165_v19 }
 0x59e   :  { %v1375_v26 = vpop.f32.mrb[16].mxu1 }
 0x59f   :  { %v1377_v28 = vpop.f32.mrb[17].mxu1  ;;  %v1422_v25 = vmul.f32 %v4234_v37, %v1375_v26  ;;  %v877_v26 = vmul.bf16 %v3214_v21, %v4206_v15 }
 0x5a0   :  { %v1423_v63 = vmul.f32 %v4236_v24, %v1377_v28  ;;  %v891_v28 = vmul.bf16 %v3210_v2, %v4165_v19 }
 0x5a2   :  { %v1381_v51 = vpop.f32.mrb[18].mxu1 }
 0x5a3   :  { %v1424_v55 = vmul.f32 %v4244_v29, %v1381_v51  ;;  %v1383_v23 = vpop.f32.mrb[19].mxu1  ;;  %v3215_v51 = vld [vmem:[#allocation11 + $0x30] sm:$0xff]  }
 0x5a4   :  { %v1425_v1 = vmul.f32 %v4246_v32, %v1383_v23  ;;  %v3216_v23 = vld [vmem:[#allocation11 + $0x78] sm:$0xff]  }
 0x5a5   :  { %v1438_v27 = vpack.c.bf16 %v1424_v55, %v1422_v25  ;;  %v869_v25 = vmul.bf16 %v3215_v51, %v4206_v15  ;;  %v883_v55 = vmul.bf16 %v3211_v53, %v4165_v19  ;;  %v894_v59 = vmul.bf16 %v3216_v23, %v4165_v19 }
 0x5a6   :  { %v1439_v6 = vpack.c.bf16 %v1425_v1, %v1423_v63  ;;  %v1387_v7 = vpop.f32.mrb[20].mxu1  ;;  %v878_v63 = vmul.bf16 %v3216_v23, %v4206_v15  ;;  %v892_v1 = vmul.bf16 %v3212_v13, %v4165_v19 }
 0x5a7   :  { %v1389_v62 = vpop.f32.mrb[21].mxu1  ;;  %v1426_v29 = vmul.f32 %v4254_v58, %v1387_v7  ;;  %v3207_v58 = vld [vmem:[#allocation11 + $0x10] sm:$0xff]  }
 0x5a8   :  { %1478 = vmatprep.mubr.bf16.mxu1 %v1439_v6  ;;  %v1427_v16 = vmul.f32 %v4256_v36, %v1389_v62  ;;  %v3208_v36 = vld [vmem:[#allocation11 + $0x58] sm:$0xff]   ;;  %v881_v57 = vmul.bf16 %v3207_v58, %v4165_v19  ;;  %v884_v62 = vmul.bf16 %v3213_v9, %v4165_v19 }
 0x5a9   :  { %1479 = vmatmul.mubr.bf16.vlgmr.msra.gmra.mrb[32].mxu1 %v1438_v27  ;;  %v890_v20 = vmul.bf16 %v3208_v36, %v4165_v19  ;;  %v3042_v27 = vld [vmem:[#allocation8] sm:$0xff]  }
 0x5aa   :  { %2788 = vmatpush3.bf16.msra.mxu1 %v863_v52  ;;  %v1393_v37 = vpop.f32.mrb[22].mxu1  ;;  %v3217_v6 = vld [vmem:[#allocation11 + $0x38] sm:$0xff]   ;;  %v885_v52 = vmul.bf16 %v3215_v51, %v4165_v19 }
 0x5ab   :  { %v1428_v24 = vmul.f32 %v4264_v48, %v1393_v37  ;;  %2789 = vmatprep.subr.bf16.mxu1 %v872_v31  ;;  %v1395_v32 = vpop.f32.mrb[23].mxu1  ;;  %v865_v48 = vmul.bf16 %v3207_v58, %v4206_v15  ;;  %v870_v7 = vmul.bf16 %v3217_v6, %v4206_v15  ;;  %v886_v31 = vmul.bf16 %v3217_v6, %v4165_v19 }
 0x5ac   :  { %v1429_v56 = vmul.f32 %v4266_v60, %v1395_v32  ;;  %v874_v60 = vmul.bf16 %v3208_v36, %v4206_v15 }
 0x5ad   :  { %v1440_v33 = vpack.c.bf16 %v1428_v24, %v1426_v29 }
 0x5ae   :  { %v1441_v3 = vpack.c.bf16 %v1429_v56, %v1427_v16  ;;  %2790 = vmatpush3.bf16.msra.mxu1 %v864_v10 }
 0x5af   :  { %2791 = vmatprep.subr.bf16.mxu1 %v873_v22 }
 0x5b0   :  { %1519 = vmatprep.mubr.bf16.mxu0 %v1441_v3  ;;  %v3043_v3 = vld [vmem:[#allocation8 + $0x8] sm:$0xff]  }
 0x5b1   :  { %1520 = vmatmul.mubr.bf16.vlgmr.msra.gmra.mrb[40].mxu0 %v1440_v33 }
 0x5b2   :  { %2792 = vmatpush3.bf16.msra.mxu1 %v865_v48  ;;  %2810 = vmatpush3.bf16.msra.mxu0 %v879_v34 }
 0x5b3   :  { %2793 = vmatprep.subr.bf16.mxu1 %v874_v60  ;;  %2811 = vmatprep.subr.bf16.mxu0 %v888_v35  ;;  %v3045_v60 = vld [vmem:[#allocation8 + $0x18] sm:$0xff]  }
 0x5b6   :  { %2794 = vmatpush3.bf16.msra.mxu1 %v866_v30  ;;  %2812 = vmatpush3.bf16.msra.mxu0 %v880_v44 }
 0x5b7   :  { %2795 = vmatprep.subr.bf16.mxu1 %v875_v4  ;;  %2813 = vmatprep.subr.bf16.mxu0 %v889_v5 }
 0x5ba   :  { %2796 = vmatpush3.bf16.msra.mxu1 %v867_v8  ;;  %2814 = vmatpush3.bf16.msra.mxu0 %v881_v57 }
 0x5bb   :  { %2797 = vmatprep.subr.bf16.mxu1 %v876_v18  ;;  %2815 = vmatprep.subr.bf16.mxu0 %v890_v20 }
 0x5be   :  { %2798 = vmatpush3.bf16.msra.mxu1 %v868_v11  ;;  %2816 = vmatpush3.bf16.msra.mxu0 %v882_v14 }
 0x5bf   :  { %2799 = vmatprep.subr.bf16.mxu1 %v877_v26  ;;  %2817 = vmatprep.subr.bf16.mxu0 %v891_v28 }
 0x5c2   :  { %2800 = vmatpush3.bf16.msra.mxu1 %v869_v25  ;;  %2818 = vmatpush3.bf16.msra.mxu0 %v883_v55 }
 0x5c3   :  { %2801 = vmatprep.subr.bf16.mxu1 %v878_v63  ;;  %2819 = vmatprep.subr.bf16.mxu0 %v892_v1 }
 0x5c6   :  { %2802 = vmatpush3.bf16.msra.mxu1 %v870_v7  ;;  %2820 = vmatpush3.bf16.msra.mxu0 %v884_v62  ;;  %v2557_v62 = vld [vmem:[#allocation10] ss:$0 sm:$0xff] }
 0x5c7   :  { %2821 = vmatprep.subr.bf16.mxu0 %v893_v42  ;;  %2907 = vmatprep.subr.bf16.mxu1 %v3042_v27 }
 0x5ca   :  { %2822 = vmatpush3.bf16.msra.mxu0 %v885_v52 }
 0x5cb   :  { %2823 = vmatprep.subr.bf16.mxu0 %v894_v59 }
 0x5ce   :  { %2824 = vmatpush3.bf16.msra.mxu0 %v886_v31 }
 0x5de   :  { %v1399_v37 = vpop.f32.mrb[24].mxu1 }
 0x5df   :  { %v1401_v29 = vpop.f32.mrb[25].mxu1  ;;  %v1430_v24 = vmul.f32 %v4298_v40, %v1399_v37 }
 0x5e0   :  { %v1431_v56 = vmul.f32 %v4300_v50, %v1401_v29 }
 0x5e2   :  { %v1405_v15 = vpop.f32.mrb[26].mxu1 }
 0x5e3   :  { %v1432_v32 = vmul.f32 %v4307_v43, %v1405_v15  ;;  %v1407_v16 = vpop.f32.mrb[27].mxu1  ;;  %v3044_v43 = vld [vmem:[#allocation8 + $0x10] sm:$0xff]  }
 0x5e4   :  { %v1433_v17 = vmul.f32 %v4303_v12, %v1407_v16 }
 0x5e5   :  { %v1442_v10 = vpack.c.bf16 %v1432_v32, %v1430_v24  ;;  %v3218_v24 = vld [vmem:[#allocation2] sm:$0xff] }
 0x5e6   :  { %v1443_v33 = vpack.c.bf16 %v1433_v17, %v1431_v56  ;;  %v1411_v46 = vpop.f32.mrb[28].mxu1  ;;  %v3219_v56 = vld [vmem:[#allocation2 + $0x8] sm:$0xff] }
 0x5e7   :  { %v1413_v22 = vpop.f32.mrb[29].mxu1  ;;  %v1434_v58 = vmul.f32 %v4310_v45, %v1411_v46  ;;  %v3046_v45 = vld [vmem:[#allocation8 + $0x20] sm:$0xff]   ;;  %v3221_v46 = vld [vmem:[#allocation2 + $0x18] sm:$0xff] }
 0x5e8   :  { %1560 = vmatprep.mubr.bf16.mxu1 %v1443_v33  ;;  %v1435_v50 = vmul.f32 %v4312_v47, %v1413_v22  ;;  %v3048_v47 = vld [vmem:[#allocation8 + $0x30] sm:$0xff]  }
 0x5e9   :  { %1561 = vmatmul.mubr.bf16.vlgmr.msra.gmra.mrb[36].mxu1 %v1442_v10  ;;  %v3220_v10 = vld [vmem:[#allocation2 + $0x10] sm:$0xff] }
 0x5ea   :  { %v1417_v19 = vpop.f32.mrb[30].mxu1  ;;  %2908 = vmatpush3.bf16.msra.mxu1 %v3042_v27 }
 0x5eb   :  { %v1436_v40 = vmul.f32 %v4319_v61, %v1417_v19  ;;  %v1419_v48 = vpop.f32.mrb[31].mxu1  ;;  %2909 = vmatprep.subr.bf16.mxu1 %v3043_v3  ;;  %v3047_v61 = vld [vmem:[#allocation8 + $0x28] sm:$0xff]  }
 0x5ec   :  { %v1437_v12 = vmul.f32 %v4315_v54, %v1419_v48  ;;  %v3049_v54 = vld [vmem:[#allocation8 + $0x38] sm:$0xff]  }
 0x5ed   :  { %v1444_v34 = vpack.c.bf16 %v1436_v40, %v1434_v58 }
 0x5ee   :  { %v1445_v36 = vpack.c.bf16 %v1437_v12, %v1435_v50  ;;  %2910 = vmatpush3.bf16.msra.mxu1 %v3043_v3  ;;  %v3222_v12 = vld [vmem:[#allocation2 + $0x20] sm:$0xff] }
 0x5ef   :  { %2911 = vmatprep.subr.bf16.mxu1 %v3044_v43 }
 0x5f0   :  { %1601 = vmatprep.mubr.bf16.mxu0 %v1445_v36 }
 0x5f1   :  { %1602 = vmatmul.mubr.bf16.vlgmr.msra.gmra.mrb[44].mxu0 %v1444_v34 }
 0x5f2   :  { %2912 = vmatpush3.bf16.msra.mxu1 %v3044_v43  ;;  %2021 = vmatprep.mubr.bf16.mxu0 %v3644_v0 }
 0x5f3   :  { %2913 = vmatprep.subr.bf16.mxu1 %v3045_v60 }
 0x5f6   :  { %2914 = vmatpush3.bf16.msra.mxu1 %v3045_v60  ;;  %v3223_v60 = vld [vmem:[#allocation2 + $0x28] sm:$0xff] }
 0x5f7   :  { %2915 = vmatprep.subr.bf16.mxu1 %v3046_v45 }
 0x5fa   :  { %2916 = vmatpush3.bf16.msra.mxu1 %v3046_v45 }
 0x5fb   :  { %2917 = vmatprep.subr.bf16.mxu1 %v3047_v61 }
 0x5fe   :  { %2918 = vmatpush3.bf16.msra.mxu1 %v3047_v61  ;;  %v3224_v61 = vld [vmem:[#allocation2 + $0x30] sm:$0xff] }
 0x5ff   :  { %2919 = vmatprep.subr.bf16.mxu1 %v3048_v47 }
 0x602   :  { %2920 = vmatpush3.bf16.msra.mxu1 %v3048_v47 }
 0x603   :  { %2921 = vmatprep.subr.bf16.mxu1 %v3049_v54 }
 0x606   :  { %2922 = vmatpush3.bf16.msra.mxu1 %v3049_v54  ;;  %v3225_v54 = vld [vmem:[#allocation2 + $0x38] sm:$0xff] }
 0x67c   :  { %v2759_v35 = vpop.f32.mrb[32].mxu1 }
 0x67d   :  { %v2760_v49 = vpop.f32.mrb[33].mxu1 }
 0x67e   :  { %v2761_v30 = vadd.f32 %v2760_v49, %v2759_v35  ;;  %v2762_v44 = vpop.f32.mrb[34].mxu1  ;;  %v3050_v49 = vld [vmem:[#allocation22] ss:$8 sps:$4 sm:$0xff]  }
 0x67f   :  { %v2763_v2 = vpop.f32.mrb[35].mxu1 }
 0x680   :  { %v2764_v4 = vadd.f32 %v2763_v2, %v2762_v44  ;;  %v3055_v44 = vld [vmem:[#allocation22 + $0x14] ss:$8 sps:$4 sm:$0xff]   ;;  %v3053_v2 = vld [vmem:[#allocation22 + $0x10] ss:$8 sps:$4 sm:$0xff]  }
 0x682   :  { %v1610_v5 = vpack.c.bf16 %v2764_v4, %v2761_v30  ;;  %v3052_v30 = vld [vmem:[#allocation22 + $0x4] ss:$8 sps:$4 sm:$0xff]  }
 0x683   :  { %1989 = vmatprep.subr.bf16.mxu0 %v3052_v30 }
 0x684   :  { %v2781_v53 = vpop.f32.mrb[40].mxu0  ;;  %2923 = vmatprep.mubr.bf16.mxu1 %v1610_v5  ;;  %1990 = vmatpush1.bf16.msra.mxu0 %v3050_v49 }
 0x685   :  { %v2782_v8 = vpop.f32.mrb[41].mxu0  ;;  %1991 = vmatprep.subr.bf16.mxu0 %v3055_v44 }
 0x686   :  { %v2783_v57 = vadd.f32 %v2782_v8, %v2781_v53  ;;  %v2784_v13 = vpop.f32.mrb[42].mxu0 }
 0x687   :  { %v2785_v18 = vpop.f32.mrb[43].mxu0 }
 0x688   :  { %v2786_v20 = vadd.f32 %v2785_v18, %v2784_v13  ;;  %1992 = vmatpush1.bf16.msra.mxu0 %v3053_v2 }
 0x68a   :  { %v1611_v9 = vpack.c.bf16 %v2786_v20, %v2783_v57 }
 0x68c   :  { %2924 = vmatmul.mubr.bf16.vlgmr.msra.gmra.mrb[40].mxu1 %v1611_v9 }
 0x6bc   :  { %v2803_v11 = vpop.f32.mrb[36].mxu1 }
 0x6bd   :  { %v2804_v14 = vpop.f32.mrb[37].mxu1 }
 0x6be   :  { %v2805_v21 = vadd.f32 %v2804_v14, %v2803_v11  ;;  %v2806_v26 = vpop.f32.mrb[38].mxu1 }
 0x6bf   :  { %v2807_v28 = vpop.f32.mrb[39].mxu1 }
 0x6c0   :  { %v2808_v51 = vadd.f32 %v2807_v28, %v2806_v26 }
 0x6c2   :  { %v1612_v25 = vpack.c.bf16 %v2808_v51, %v2805_v21 }
 0x6c4   :  { %v2825_v55 = vpop.f32.mrb[44].mxu0  ;;  %2927 = vmatprep.mubr.bf16.mxu1 %v1612_v25 }
 0x6c5   :  { %v2826_v23 = vpop.f32.mrb[45].mxu0 }
 0x6c6   :  { %v2827_v63 = vadd.f32 %v2826_v23, %v2825_v55  ;;  %v2828_v1 = vpop.f32.mrb[46].mxu0  ;;  %v3058_v55 = vld [vmem:[#allocation22 + $0x24] ss:$8 sps:$4 sm:$0xff]   ;;  %v3056_v23 = vld [vmem:[#allocation22 + $0x20] ss:$8 sps:$4 sm:$0xff]  }
 0x6c7   :  { %v2829_v27 = vpop.f32.mrb[47].mxu0  ;;  %1993 = vmatprep.subr.bf16.mxu0 %v3058_v55 }
 0x6c8   :  { %v2830_v6 = vadd.f32 %v2829_v27, %v2828_v1  ;;  %1994 = vmatpush1.bf16.msra.mxu0 %v3056_v23  ;;  %v3059_v1 = vld [vmem:[#allocation22 + $0x30] ss:$8 sps:$4 sm:$0xff]   ;;  %v3064_v27 = vld [vmem:[#allocation22 + $0x44] ss:$8 sps:$4 sm:$0xff]  }
 0x6ca   :  { %v1613_v7 = vpack.c.bf16 %v2830_v6, %v2827_v63  ;;  %v3061_v63 = vld [vmem:[#allocation22 + $0x34] ss:$8 sps:$4 sm:$0xff]   ;;  %v3062_v6 = vld [vmem:[#allocation22 + $0x40] ss:$8 sps:$4 sm:$0xff]  }
 0x6cb   :  { %1995 = vmatprep.subr.bf16.mxu0 %v3061_v63 }
 0x6cc   :  { %2928 = vmatmul.mubr.bf16.gmra.mrb[44].mxu1 %v1613_v7  ;;  %1996 = vmatpush1.bf16.msra.mxu0 %v3059_v1  ;;  %v3067_v7 = vld [vmem:[#allocation22 + $0x54] ss:$8 sps:$4 sm:$0xff]  }
 0x6cd   :  { %1997 = vmatprep.subr.bf16.mxu0 %v3064_v27 }
 0x6d0   :  { %1998 = vmatpush1.bf16.msra.mxu0 %v3062_v6 }
 0x6d1   :  { %1999 = vmatprep.subr.bf16.mxu0 %v3067_v7 }
 0x75f   :  { %v2925_v42 = vpop.f32.mrb[40].mxu1 }
 0x760   :  { %v1719_v52 = vpop.f32.mrb[41].mxu1  ;;  %v1728_v29 = vadd.f32 %v2925_v42, %v2557_v62  ;;  %v3070_v42 = vld [vmem:[#allocation22 + $0x64] ss:$8 sps:$4 sm:$0xff]  }
 0x761   :  { %v1720_v59 = vadd.f32 %v2557_v62, %v1719_v52  ;;  %v2926_v31 = vpop.f32.mrb[42].mxu1  ;;  %v3068_v52 = vld [vmem:[#allocation22 + $0x60] ss:$8 sps:$4 sm:$0xff]  }
 0x762   :  { %v1722_v37 = vpop.f32.mrb[43].mxu1  ;;  %v1731_v16 = vadd.f32 %v2926_v31, %v2557_v62  ;;  %v1752_v33 = vadd.f32 %v3220_v10, %v1728_v29  ;;  %v3071_v31 = vld [vmem:[#allocation22 + $0x70] ss:$8 sps:$4 sm:$0xff]  }
 0x763   :  { %v1723_v15 = vadd.f32 %v2557_v62, %v1722_v37  ;;  %v1750_v32 = vadd.f32 %v3218_v24, %v1720_v59  ;;  %v3073_v59 = vld [vmem:[#allocation22 + $0x74] ss:$8 sps:$4 sm:$0xff]  }
 0x764   :  { %v1753_v22 = vadd.f32 %v3221_v46, %v1731_v16 }
 0x765   :  { %1758 = vadd.xlane.f32.xlu0 %v1750_v32  ;;  %v1751_v17 = vadd.f32 %v3219_v56, %v1723_v15 }
 0x767   :  { %1760 = vadd.xlane.f32.xlu1 %v1751_v17 }
 0x769   :  { %1762 = vadd.xlane.f32.xlu0 %v1752_v33 }
 0x76b   :  { %1764 = vadd.xlane.f32.xlu1 %v1753_v22 }
 0x79f   :  { %v2929_v3 = vpop.f32.mrb[44].mxu1 }
 0x7a0   :  { %v1735_v19 = vpop.f32.mrb[45].mxu1  ;;  %v1744_v43 = vadd.f32 %v2929_v3, %v2557_v62 }
 0x7a1   :  { %v1736_v58 = vadd.f32 %v2557_v62, %v1735_v19  ;;  %v2930_v40 = vpop.f32.mrb[46].mxu1 }
 0x7a2   :  { %v1738_v48 = vpop.f32.mrb[47].mxu1  ;;  %v1747_v36 = vadd.f32 %v2930_v40, %v2557_v62  ;;  %v4422_v47 = vadd.f32 %v3224_v61, %v1744_v43  ;;  %v3075_v43 = vld [vmem:[#allocation25] sm:$0xff]  }
 0x7a3   :  { %v1739_v50 = vadd.f32 %v2557_v62, %v1738_v48  ;;  %v4416_v34 = vadd.f32 %v3222_v12, %v1736_v58  ;;  %v3065_v62 = vld [vmem:[#allocation22 + $0x50] ss:$8 sps:$4 sm:$0xff]   ;;  %v3074_v48 = vld [vmem:[#allocation25 + $0x40] sm:$0xff]  }
 0x7a4   :  { %v4425_v35 = vadd.f32 %v3225_v54, %v1747_v36  ;;  %2000 = vmatpush1.bf16.msra.mxu0 %v3065_v62  ;;  %2843 = vmatprep.subr.bf16.mxu1 %v3074_v48  ;;  %v3077_v12 = vld [vmem:[#allocation25 + $0x8] sm:$0xff]  }
 0x7a5   :  { %1766 = vadd.xlane.f32.xlu0 %v4416_v34  ;;  %v4419_v45 = vadd.f32 %v3223_v60, %v1739_v50  ;;  %2001 = vmatprep.subr.bf16.mxu0 %v3070_v42  ;;  %v3076_v50 = vld [vmem:[#allocation25 + $0x48] sm:$0xff]  }
 0x7a6   :  { %2844 = vmatpush3.bf16.msra.mxu1 %v3075_v43 }
 0x7a7   :  { %1768 = vadd.xlane.f32.xlu1 %v4419_v45  ;;  %2845 = vmatprep.subr.bf16.mxu1 %v3076_v50 }
 0x7a8   :  { %2002 = vmatpush1.bf16.msra.mxu0 %v3068_v52 }
 0x7a9   :  { %1770 = vadd.xlane.f32.xlu0 %v4422_v47  ;;  %2003 = vmatprep.subr.bf16.mxu0 %v3073_v59 }
 0x7aa   :  { %2846 = vmatpush3.bf16.msra.mxu1 %v3077_v12 }
 0x7ab   :  { %1772 = vadd.xlane.f32.xlu1 %v4425_v35 }
 0x7ac   :  { %2004 = vmatpush1.bf16.msra.mxu0 %v3071_v31 }
 0x7f2   :  { %v1759_v4 = vpop.xlane.xlu0 %1758 }
 0x7f3   :  { %v1775_v5 = vmul.f32 0.0078125, %v1759_v4 }
 0x7f4   :  { %v1761_v53 = vpop.xlane.xlu1 %1760 }
 0x7f5   :  { %v4428_v8 = vsub.f32 %v1750_v32, %v1775_v5  ;;  %v1776_v57 = vmul.f32 0.0078125, %v1761_v53  ;;  %v2566_v5 = vld [vmem:[#allocation16] ss:$0 sm:$0xff] }
 0x7f6   :  { %v1763_v13 = vpop.xlane.xlu0 %1762 }
 0x7f7   :  { %v4430_v18 = vsub.f32 %v1751_v17, %v1776_v57  ;;  %v1777_v20 = vmul.f32 0.0078125, %v1763_v13  ;;  %v1791_v9 = vmul.f32 %v4428_v8, %v4428_v8 }
 0x7f8   :  { %v1765_v11 = vpop.xlane.xlu1 %1764 }
 0x7f9   :  { %v4434_v14 = vsub.f32 %v1752_v33, %v1777_v20  ;;  %v1778_v21 = vmul.f32 0.0078125, %v1765_v11  ;;  %1799 = vadd.xlane.f32.xlu0 %v1791_v9  ;;  %v1792_v26 = vmul.f32 %v4430_v18, %v4430_v18  ;;  %v2567_v11 = vld [vmem:[#allocation17] ss:$0 sm:$0xff] }
 0x7fb   :  { %v4438_v28 = vsub.f32 %v1753_v22, %v1778_v21  ;;  %1801 = vadd.xlane.f32.xlu1 %v1792_v26  ;;  %v1793_v51 = vmul.f32 %v4434_v14, %v4434_v14 }
 0x7fd   :  { %1803 = vadd.xlane.f32.xlu0 %v1793_v51  ;;  %v1794_v25 = vmul.f32 %v4438_v28, %v4438_v28 }
 0x7ff   :  { %1805 = vadd.xlane.f32.xlu1 %v1794_v25 }
 0x832   :  { %v1767_v37 = vpop.xlane.xlu0 %1766 }
 0x833   :  { %v1779_v29 = vmul.f32 0.0078125, %v1767_v37 }
 0x834   :  { %v1769_v15 = vpop.xlane.xlu1 %1768 }
 0x835   :  { %v4445_v24 = vsub.f32 %v4416_v34, %v1779_v29  ;;  %v1780_v32 = vmul.f32 0.0078125, %v1769_v15 }
 0x836   :  { %v1771_v16 = vpop.xlane.xlu0 %1770 }
 0x837   :  { %v4448_v56 = vsub.f32 %v4419_v45, %v1780_v32  ;;  %v1781_v17 = vmul.f32 0.0078125, %v1771_v16  ;;  %v1795_v10 = vmul.f32 %v4445_v24, %v4445_v24 }
 0x838   :  { %v1773_v33 = vpop.xlane.xlu1 %1772 }
 0x839   :  { %v4453_v46 = vsub.f32 %v4422_v47, %v1781_v17  ;;  %v1782_v22 = vmul.f32 0.0078125, %v1773_v33  ;;  %1807 = vadd.xlane.f32.xlu0 %v1795_v10  ;;  %v1796_v3 = vmul.f32 %v4448_v56, %v4448_v56 }
 0x83b   :  { %v4458_v19 = vsub.f32 %v4425_v35, %v1782_v22  ;;  %1809 = vadd.xlane.f32.xlu1 %v1796_v3  ;;  %v1797_v58 = vmul.f32 %v4453_v46, %v4453_v46 }
 0x83d   :  { %1811 = vadd.xlane.f32.xlu0 %v1797_v58  ;;  %v1798_v40 = vmul.f32 %v4458_v19, %v4458_v19 }
 0x83f   :  { %1813 = vadd.xlane.f32.xlu1 %v1798_v40 }
 0x886   :  { %v1800_v34 = vpop.xlane.xlu0 %1799 }
 0x887   :  { %v1815_v36 = vmul.f32 0.0078125, %v1800_v34 }
 0x888   :  { %v1802_v60 = vpop.xlane.xlu1 %1801 }
 0x889   :  { %v1823_v45 = vadd.f32 1e-12, %v1815_v36  ;;  %v1816_v61 = vmul.f32 0.0078125, %v1802_v60 }
 0x88a   :  { %v1804_v47 = vpop.xlane.xlu0 %1803 }
 0x88b   :  { %3138 = vrsqrt.f32 %v1823_v45  ;;  %v1824_v54 = vadd.f32 1e-12, %v1816_v61  ;;  %v1817_v35 = vmul.f32 0.0078125, %v1804_v47  ;;  %v3078_v61 = vld [vmem:[#allocation25 + $0x50] sm:$0xff]   ;;  %v3081_v47 = vld [vmem:[#allocation25 + $0x18] sm:$0xff]  }
 0x88c   :  { %v1806_v49 = vpop.xlane.xlu1 %1805  ;;  %2847 = vmatprep.subr.bf16.mxu1 %v3078_v61 }
 0x88d   :  { %3140 = vrsqrt.f32 %v1824_v54  ;;  %v1825_v30 = vadd.f32 1e-12, %v1817_v35  ;;  %v1818_v44 = vmul.f32 0.0078125, %v1806_v49  ;;  %v3082_v54 = vld [vmem:[#allocation25 + $0x60] sm:$0xff]   ;;  %v3085_v49 = vld [vmem:[#allocation25 + $0x28] sm:$0xff]  }
 0x88e   :  { %v3083_v35 = vld [vmem:[#allocation25 + $0x20] sm:$0xff]  }
 0x88f   :  { %3142 = vrsqrt.f32 %v1825_v30  ;;  %v1826_v2 = vadd.f32 1e-12, %v1818_v44  ;;  %v3086_v30 = vld [vmem:[#allocation25 + $0x70] sm:$0xff]  }
 0x890   :  { %v3087_v44 = vld [vmem:[#allocation25 + $0x30] sm:$0xff]  }
 0x891   :  { %3144 = vrsqrt.f32 %v1826_v2  ;;  %v3088_v2 = vld [vmem:[#allocation25 + $0x78] sm:$0xff]  }
 0x895   :  { %v3139_v4 = vpop.eup %3138 }
 0x896   :  { %v1839_v53 = vmul.f32 %v3139_v4, %v4428_v8  ;;  %v3089_v4 = vld [vmem:[#allocation25 + $0x38] sm:$0xff]  }
 0x897   :  { %v3141_v57 = vpop.eup %3140 }
 0x898   :  { %v1840_v13 = vmul.f32 %v3141_v57, %v4430_v18  ;;  %v1854_v20 = vmul.f32 %v2566_v5, %v1839_v53 }
 0x899   :  { %v3143_v9 = vpop.eup %3142 }
 0x89a   :  { %v1855_v21 = vmul.f32 %v2566_v5, %v1840_v13  ;;  %v4466_v51 = vadd.f32 %v2567_v11, %v1854_v20  ;;  %v1841_v55 = vmul.f32 %v3143_v9, %v4434_v14 }
 0x89b   :  { %v3145_v26 = vpop.eup %3144 }
 0x89c   :  { %v4468_v25 = vadd.f32 %v2567_v11, %v1855_v21  ;;  %v1842_v23 = vmul.f32 %v3145_v26, %v4438_v28  ;;  %v1856_v1 = vmul.f32 %v2566_v5, %v1841_v55 }
 0x89e   :  { %v1877_v63 = vpack.c.bf16 %v4468_v25, %v4466_v51  ;;  %v1857_v8 = vmul.f32 %v2566_v5, %v1842_v23  ;;  %v4477_v27 = vadd.f32 %v2567_v11, %v1856_v1 }
 0x8a0   :  { %2022 = vmatmul.mubr.bf16.vlgmr.msra.gmra.mrb[48].mxu0 %v1877_v63  ;;  %v4475_v18 = vadd.f32 %v2567_v11, %v1857_v8 }
 0x8a1   :  { %2031 = vmatprep.mubr.bf16.mxu0 %v3644_v0 }
 0x8a2   :  { %v1878_v6 = vpack.c.bf16 %v4475_v18, %v4477_v27 }
 0x8a8   :  { %2032 = vmatmul.mubr.bf16.gmra.mrb[52].mxu0 %v1878_v6 }
 0x8a9   :  { %2041 = vmatprep.mubr.bf16.mxu0 %v3644_v0 }
 0x8c6   :  { %v1808_v14 = vpop.xlane.xlu0 %1807 }
 0x8c7   :  { %v1819_v28 = vmul.f32 0.0078125, %v1808_v14 }
 0x8c8   :  { %v1810_v7 = vpop.xlane.xlu1 %1809 }
 0x8c9   :  { %v1827_v62 = vadd.f32 1e-12, %v1819_v28  ;;  %v1820_v42 = vmul.f32 0.0078125, %v1810_v7 }
 0x8ca   :  { %v1812_v52 = vpop.xlane.xlu0 %1811 }
 0x8cb   :  { %3146 = vrsqrt.f32 %v1827_v62  ;;  %v1828_v59 = vadd.f32 1e-12, %v1820_v42  ;;  %v1821_v31 = vmul.f32 0.0078125, %v1812_v52 }
 0x8cc   :  { %v1814_v37 = vpop.xlane.xlu1 %1813 }
 0x8cd   :  { %3148 = vrsqrt.f32 %v1828_v59  ;;  %v1829_v29 = vadd.f32 1e-12, %v1821_v31  ;;  %v1822_v15 = vmul.f32 0.0078125, %v1814_v37 }
 0x8cf   :  { %3150 = vrsqrt.f32 %v1829_v29  ;;  %v1830_v32 = vadd.f32 1e-12, %v1822_v15 }
 0x8d1   :  { %3152 = vrsqrt.f32 %v1830_v32 }
 0x8d5   :  { %v3147_v16 = vpop.eup %3146 }
 0x8d6   :  { %v1843_v17 = vmul.f32 %v3147_v16, %v4445_v24 }
 0x8d7   :  { %v3149_v10 = vpop.eup %3148 }
 0x8d8   :  { %v1844_v33 = vmul.f32 %v3149_v10, %v4448_v56  ;;  %v1858_v22 = vmul.f32 %v2566_v5, %v1843_v17 }
 0x8d9   :  { %v3151_v3 = vpop.eup %3150 }
 0x8da   :  { %v1859_v58 = vmul.f32 %v2566_v5, %v1844_v33  ;;  %v4484_v48 = vadd.f32 %v2567_v11, %v1858_v22  ;;  %v1845_v50 = vmul.f32 %v3151_v3, %v4453_v46  ;;  %v3079_v46 = vld [vmem:[#allocation25 + $0x10] sm:$0xff]  }
 0x8db   :  { %v3153_v40 = vpop.eup %3152  ;;  %2848 = vmatpush3.bf16.msra.mxu1 %v3079_v46 }
 0x8dc   :  { %v4486_v43 = vadd.f32 %v2567_v11, %v1859_v58  ;;  %v1846_v12 = vmul.f32 %v3153_v40, %v4458_v19  ;;  %v1860_v24 = vmul.f32 %v2566_v5, %v1845_v50  ;;  %v3080_v19 = vld [vmem:[#allocation25 + $0x58] sm:$0xff]  }
 0x8dd   :  { %2849 = vmatprep.subr.bf16.mxu1 %v3080_v19 }
 0x8de   :  { %v1879_v34 = vpack.c.bf16 %v4486_v43, %v4484_v48  ;;  %v1861_v36 = vmul.f32 %v2566_v5, %v1846_v12  ;;  %v4495_v60 = vadd.f32 %v2567_v11, %v1860_v24  ;;  %v1897_v5 = vld [vmem:[#allocation23] sm:$0x3] }
 0x8df   :  { %2850 = vmatpush3.bf16.msra.mxu1 %v3081_v47  ;;  %v4501_v53 = vrot.slane %v1897_v5, %v304_v39  ;;  %v4505_v57 = vrot.slane %v1897_v5, %v308_v41 }
 0x8e0   :  { %2042 = vmatmul.mubr.bf16.gmra.mrb[56].mxu0 %v1879_v34  ;;  %v4493_v56 = vadd.f32 %v2567_v11, %v1861_v36  ;;  %2851 = vmatprep.subr.bf16.mxu1 %v3082_v54 }
 0x8e1   :  { %2051 = vmatprep.mubr.bf16.mxu0 %v3644_v0  ;;  %v3084_v0 = vld [vmem:[#allocation25 + $0x68] sm:$0xff]  }
 0x8e2   :  { %v1880_v45 = vpack.c.bf16 %v4493_v56, %v4495_v60 }
 0x8e3   :  { %2852 = vmatpush3.bf16.msra.mxu1 %v3083_v35 }
 0x8e4   :  { %2853 = vmatprep.subr.bf16.mxu1 %v3084_v0 }
 0x8e7   :  { %2854 = vmatpush3.bf16.msra.mxu1 %v3085_v49 }
 0x8e8   :  { %2052 = vmatmul.mubr.bf16.gmra.mrb[60].mxu0 %v1880_v45  ;;  %2855 = vmatprep.subr.bf16.mxu1 %v3086_v30 }
 0x8eb   :  { %2856 = vmatpush3.bf16.msra.mxu1 %v3087_v44 }
 0x8ec   :  { %2857 = vmatprep.subr.bf16.mxu1 %v3088_v2 }
 0x8ef   :  { %2858 = vmatpush3.bf16.msra.mxu1 %v3089_v4 }
 0x973   :  { %v2023_v13 = vpop.f32.mrb[48].mxu0 }
 0x974   :  { %v2024_v20 = vadd.f32 %v2023_v13, %v4501_v53  ;;  %v2025_v9 = vpop.f32.mrb[49].mxu0 }
 0x975   :  { %v2026_v11 = vadd.f32 %v2025_v9, %v4505_v57  ;;  %v2027_v21 = vpop.f32.mrb[50].mxu0 }
 0x976   :  { %v2078_v26 = vmul.f32 0.70710677, %v2024_v20  ;;  %v2028_v55 = vadd.f32 %v2027_v21, %v4501_v53  ;;  %v2029_v23 = vpop.f32.mrb[51].mxu0  ;;  %v2062_v33 = vmul.f32 0.5, %v2024_v20 }
 0x977   :  { %v2079_v63 = vmul.f32 0.70710677, %v2026_v11  ;;  %v2030_v8 = vadd.f32 %v2029_v23, %v4505_v57  ;;  %v2063_v58 = vmul.f32 0.5, %v2026_v11 }
 0x978   :  { %3154 = verf.f32 %v2078_v26  ;;  %v2080_v39 = vmul.f32 0.70710677, %v2028_v55  ;;  %v2064_v22 = vmul.f32 0.5, %v2028_v55 }
 0x979   :  { %3156 = verf.f32 %v2079_v63  ;;  %v2081_v38 = vmul.f32 0.70710677, %v2030_v8  ;;  %v2065_v40 = vmul.f32 0.5, %v2030_v8 }
 0x97a   :  { %3158 = verf.f32 %v2080_v39 }
 0x97b   :  { %3160 = verf.f32 %v2081_v38  ;;  %v2033_v41 = vpop.f32.mrb[52].mxu0 }
 0x97c   :  { %v2034_v1 = vadd.f32 %v2033_v41, %v4501_v53  ;;  %v2035_v6 = vpop.f32.mrb[53].mxu0 }
 0x97d   :  { %v2036_v14 = vadd.f32 %v2035_v6, %v4505_v57  ;;  %v2037_v28 = vpop.f32.mrb[54].mxu0 }
 0x97e   :  { %v2082_v7 = vmul.f32 0.70710677, %v2034_v1  ;;  %v2038_v62 = vadd.f32 %v2037_v28, %v4501_v53  ;;  %v2039_v42 = vpop.f32.mrb[55].mxu0  ;;  %v2066_v49 = vmul.f32 0.5, %v2034_v1 }
 0x97f   :  { %v2083_v52 = vmul.f32 0.70710677, %v2036_v14  ;;  %v2040_v59 = vadd.f32 %v2039_v42, %v4505_v57  ;;  %v2067_v2 = vmul.f32 0.5, %v2036_v14 }
 0x980   :  { %3162 = verf.f32 %v2082_v7  ;;  %v2084_v31 = vmul.f32 0.70710677, %v2038_v62  ;;  %v2068_v30 = vmul.f32 0.5, %v2038_v62 }
 0x981   :  { %3164 = verf.f32 %v2083_v52  ;;  %v2085_v37 = vmul.f32 0.70710677, %v2040_v59  ;;  %v2069_v4 = vmul.f32 0.5, %v2040_v59 }
 0x982   :  { %v3155_v29 = vpop.eup %3154  ;;  %3166 = verf.f32 %v2084_v31 }
 0x983   :  { %v3157_v15 = vpop.eup %3156  ;;  %v2110_v32 = vadd.f32 1.0, %v3155_v29  ;;  %3168 = verf.f32 %v2085_v37 }
 0x984   :  { %v3159_v16 = vpop.eup %3158  ;;  %v2111_v17 = vadd.f32 1.0, %v3157_v15 }
 0x985   :  { %v3161_v10 = vpop.eup %3160  ;;  %v2112_v3 = vadd.f32 1.0, %v3159_v16  ;;  %v2126_v12 = vmul.f32 %v2110_v32, %v2062_v33 }
 0x986   :  { %v2113_v50 = vadd.f32 1.0, %v3161_v10  ;;  %v2127_v36 = vmul.f32 %v2111_v17, %v2063_v58 }
 0x987   :  { %v2128_v34 = vmul.f32 %v2112_v3, %v2064_v22 }
 0x988   :  { %v2129_v24 = vmul.f32 %v2113_v50, %v2065_v40 }
 0x989   :  { %v2142_v45 = vpack.c.bf16 %v2128_v34, %v2126_v12 }
 0x98a   :  { %v3163_v61 = vpop.eup %3162  ;;  %v2143_v46 = vpack.c.bf16 %v2129_v24, %v2127_v36 }
 0x98b   :  { %v3165_v19 = vpop.eup %3164  ;;  %v2114_v47 = vadd.f32 1.0, %v3163_v61 }
 0x98c   :  { %v3167_v54 = vpop.eup %3166  ;;  %v2115_v35 = vadd.f32 1.0, %v3165_v19  ;;  %2317 = vmatprep.mubr.bf16.mxu1 %v2143_v46 }
 0x98d   :  { %v3169_v0 = vpop.eup %3168  ;;  %v2116_v44 = vadd.f32 1.0, %v3167_v54  ;;  %2318 = vmatmul.mubr.bf16.vlgmr.msra.gmra.mrb[48].mxu1 %v2142_v45  ;;  %v2130_v13 = vmul.f32 %v2114_v47, %v2066_v49 }
 0x98e   :  { %v2117_v5 = vadd.f32 1.0, %v3169_v0  ;;  %v2131_v9 = vmul.f32 %v2115_v35, %v2067_v2 }
 0x98f   :  { %v2132_v20 = vmul.f32 %v2116_v44, %v2068_v30 }
 0x990   :  { %v2133_v11 = vmul.f32 %v2117_v5, %v2069_v4 }
 0x991   :  { %v2144_v21 = vpack.c.bf16 %v2132_v20, %v2130_v13 }
 0x992   :  { %v2145_v26 = vpack.c.bf16 %v2133_v11, %v2131_v9 }
 0x994   :  { %2325 = vmatprep.mubr.bf16.mxu1 %v2145_v26 }
 0x995   :  { %2326 = vmatmul.mubr.bf16.gmra.mrb[52].mxu1 %v2144_v21 }
 0x9b3   :  { %v2043_v55 = vpop.f32.mrb[56].mxu0 }
 0x9b4   :  { %v2044_v23 = vadd.f32 %v2043_v55, %v4501_v53  ;;  %v2045_v63 = vpop.f32.mrb[57].mxu0 }
 0x9b5   :  { %v2046_v8 = vadd.f32 %v2045_v63, %v4505_v57  ;;  %v2047_v39 = vpop.f32.mrb[58].mxu0 }
 0x9b6   :  { %v2086_v38 = vmul.f32 0.70710677, %v2044_v23  ;;  %v2048_v41 = vadd.f32 %v2047_v39, %v4501_v53  ;;  %v2049_v1 = vpop.f32.mrb[59].mxu0  ;;  %v2070_v12 = vmul.f32 0.5, %v2044_v23 }
 0x9b7   :  { %v2087_v6 = vmul.f32 0.70710677, %v2046_v8  ;;  %v2050_v14 = vadd.f32 %v2049_v1, %v4505_v57 }
 0x9b8   :  { %3170 = verf.f32 %v2086_v38  ;;  %v2088_v28 = vmul.f32 0.70710677, %v2048_v41  ;;  %v2072_v34 = vmul.f32 0.5, %v2048_v41  ;;  %v2584_v38 = vld [vmem:[#allocation26] ss:$0 sm:$0xff] }
 0x9b9   :  { %3172 = verf.f32 %v2087_v6  ;;  %v2089_v7 = vmul.f32 0.70710677, %v2050_v14  ;;  %v2073_v24 = vmul.f32 0.5, %v2050_v14 }
 0x9ba   :  { %3174 = verf.f32 %v2088_v28 }
 0x9bb   :  { %3176 = verf.f32 %v2089_v7  ;;  %v2053_v62 = vpop.f32.mrb[60].mxu0 }
 0x9bc   :  { %v2054_v42 = vadd.f32 %v2053_v62, %v4501_v53  ;;  %v2055_v52 = vpop.f32.mrb[61].mxu0 }
 0x9bd   :  { %v2056_v59 = vadd.f32 %v2055_v52, %v4505_v57  ;;  %v2057_v31 = vpop.f32.mrb[62].mxu0 }
 0x9be   :  { %v2090_v37 = vmul.f32 0.70710677, %v2054_v42  ;;  %v2058_v29 = vadd.f32 %v2057_v31, %v4501_v53  ;;  %v2059_v15 = vpop.f32.mrb[63].mxu0  ;;  %v2071_v53 = vmul.f32 0.5, %v2046_v8  ;;  %v2074_v4 = vmul.f32 0.5, %v2054_v42 }
 0x9bf   :  { %v2091_v32 = vmul.f32 0.70710677, %v2056_v59  ;;  %v2060_v16 = vadd.f32 %v2059_v15, %v4505_v57  ;;  %v2075_v20 = vmul.f32 0.5, %v2056_v59 }
 0x9c0   :  { %3178 = verf.f32 %v2090_v37  ;;  %v2092_v17 = vmul.f32 0.70710677, %v2058_v29  ;;  %v2076_v5 = vmul.f32 0.5, %v2058_v29 }
 0x9c1   :  { %3180 = verf.f32 %v2091_v32  ;;  %v2093_v10 = vmul.f32 0.70710677, %v2060_v16  ;;  %v2077_v9 = vmul.f32 0.5, %v2060_v16 }
 0x9c2   :  { %v3171_v33 = vpop.eup %3170  ;;  %3182 = verf.f32 %v2092_v17 }
 0x9c3   :  { %v3173_v22 = vpop.eup %3172  ;;  %v2118_v3 = vadd.f32 1.0, %v3171_v33  ;;  %3184 = verf.f32 %v2093_v10 }
 0x9c4   :  { %v3175_v58 = vpop.eup %3174  ;;  %v2119_v40 = vadd.f32 1.0, %v3173_v22 }
 0x9c5   :  { %v3177_v50 = vpop.eup %3176  ;;  %v2120_v36 = vadd.f32 1.0, %v3175_v58  ;;  %v2134_v61 = vmul.f32 %v2118_v3, %v2070_v12 }
 0x9c6   :  { %v2121_v45 = vadd.f32 1.0, %v3177_v50  ;;  %v2135_v46 = vmul.f32 %v2119_v40, %v2071_v53 }
 0x9c7   :  { %v2136_v57 = vmul.f32 %v2120_v36, %v2072_v34 }
 0x9c8   :  { %v2137_v19 = vmul.f32 %v2121_v45, %v2073_v24 }
 0x9c9   :  { %v2146_v47 = vpack.c.bf16 %v2136_v57, %v2134_v61 }
 0x9ca   :  { %v3179_v54 = vpop.eup %3178  ;;  %v2147_v35 = vpack.c.bf16 %v2137_v19, %v2135_v46 }
 0x9cb   :  { %v3181_v0 = vpop.eup %3180  ;;  %v2122_v49 = vadd.f32 1.0, %v3179_v54 }
 0x9cc   :  { %v3183_v30 = vpop.eup %3182  ;;  %v2123_v44 = vadd.f32 1.0, %v3181_v0  ;;  %2333 = vmatprep.mubr.bf16.mxu1 %v2147_v35 }
 0x9cd   :  { %v3185_v2 = vpop.eup %3184  ;;  %v2124_v13 = vadd.f32 1.0, %v3183_v30  ;;  %2334 = vmatmul.mubr.bf16.gmra.mrb[56].mxu1 %v2146_v47  ;;  %v2138_v21 = vmul.f32 %v2122_v49, %v2074_v4 }
 0x9ce   :  { %v2125_v11 = vadd.f32 1.0, %v3185_v2  ;;  %v2139_v55 = vmul.f32 %v2123_v44, %v2075_v20 }
 0x9cf   :  { %v2140_v26 = vmul.f32 %v2124_v13, %v2076_v5 }
 0x9d0   :  { %v2141_v23 = vmul.f32 %v2125_v11, %v2077_v9 }
 0x9d1   :  { %v2148_v63 = vpack.c.bf16 %v2140_v26, %v2138_v21 }
 0x9d2   :  { %v2149_v8 = vpack.c.bf16 %v2141_v23, %v2139_v55 }
 0x9d4   :  { %2341 = vmatprep.mubr.bf16.mxu1 %v2149_v8 }
 0x9d5   :  { %2342 = vmatmul.mubr.bf16.gmra.mrb[60].mxu1 %v2148_v63 }
 0xa60   :  { %v2859_v39 = vpop.f32.mrb[48].mxu1 }
 0xa61   :  { %v2860_v41 = vpop.f32.mrb[49].mxu1 }
 0xa62   :  { %v2861_v1 = vadd.f32 %v2860_v41, %v2859_v39  ;;  %v2862_v6 = vpop.f32.mrb[50].mxu1 }
 0xa63   :  { %v2863_v14 = vpop.f32.mrb[51].mxu1 }
 0xa64   :  { %v2320_v28 = vadd.f32 %v2861_v1, %v2584_v38  ;;  %v2864_v7 = vadd.f32 %v2863_v14, %v2862_v6 }
 0xa66   :  { %v2323_v62 = vadd.f32 %v2864_v7, %v2584_v38  ;;  %v2350_v42 = vadd.f32 %v2320_v28, %v4466_v51 }
 0xa68   :  { %2358 = vadd.xlane.f32.xlu0 %v2350_v42  ;;  %v2865_v52 = vpop.f32.mrb[52].mxu1  ;;  %v2351_v59 = vadd.f32 %v2323_v62, %v4468_v25 }
 0xa69   :  { %v2866_v31 = vpop.f32.mrb[53].mxu1 }
 0xa6a   :  { %v2867_v37 = vadd.f32 %v2866_v31, %v2865_v52  ;;  %2360 = vadd.xlane.f32.xlu1 %v2351_v59  ;;  %v2868_v29 = vpop.f32.mrb[54].mxu1 }
 0xa6b   :  { %v2869_v15 = vpop.f32.mrb[55].mxu1 }
 0xa6c   :  { %v2328_v32 = vadd.f32 %v2867_v37, %v2584_v38  ;;  %v2870_v16 = vadd.f32 %v2869_v15, %v2868_v29 }
 0xa6e   :  { %v2331_v17 = vadd.f32 %v2870_v16, %v2584_v38  ;;  %v2352_v10 = vadd.f32 %v2328_v32, %v4477_v27 }
 0xa70   :  { %2362 = vadd.xlane.f32.xlu0 %v2352_v10  ;;  %v2353_v33 = vadd.f32 %v2331_v17, %v4475_v18 }
 0xa72   :  { %2364 = vadd.xlane.f32.xlu1 %v2353_v33 }
 0xaa0   :  { %v2871_v22 = vpop.f32.mrb[56].mxu1 }
 0xaa1   :  { %v2872_v51 = vpop.f32.mrb[57].mxu1 }
 0xaa2   :  { %v2873_v3 = vadd.f32 %v2872_v51, %v2871_v22  ;;  %v2874_v58 = vpop.f32.mrb[58].mxu1  ;;  %v2601_v51 = vld [vmem:[#allocation19] ss:$0 sm:$0xff] }
 0xaa3   :  { %v2875_v40 = vpop.f32.mrb[59].mxu1 }
 0xaa4   :  { %v2336_v25 = vadd.f32 %v2873_v3, %v2584_v38  ;;  %v2876_v50 = vadd.f32 %v2875_v40, %v2874_v58  ;;  %v2602_v40 = vld [vmem:[#allocation20] ss:$0 sm:$0xff] }
 0xaa6   :  { %v2339_v12 = vadd.f32 %v2876_v50, %v2584_v38  ;;  %v2354_v34 = vadd.f32 %v2336_v25, %v4484_v48 }
 0xaa8   :  { %2366 = vadd.xlane.f32.xlu0 %v2354_v34  ;;  %v2877_v36 = vpop.f32.mrb[60].mxu1  ;;  %v2355_v53 = vadd.f32 %v2339_v12, %v4486_v43 }
 0xaa9   :  { %v2878_v24 = vpop.f32.mrb[61].mxu1 }
 0xaaa   :  { %v2879_v27 = vadd.f32 %v2878_v24, %v2877_v36  ;;  %2368 = vadd.xlane.f32.xlu1 %v2355_v53  ;;  %v2880_v45 = vpop.f32.mrb[62].mxu1 }
 0xaab   :  { %v2881_v18 = vpop.f32.mrb[63].mxu1 }
 0xaac   :  { %v2344_v61 = vadd.f32 %v2879_v27, %v2584_v38  ;;  %v2882_v57 = vadd.f32 %v2881_v18, %v2880_v45 }
 0xaae   :  { %v2347_v46 = vadd.f32 %v2882_v57, %v2584_v38  ;;  %v2356_v19 = vadd.f32 %v2344_v61, %v4495_v60 }
 0xab0   :  { %2370 = vadd.xlane.f32.xlu0 %v2356_v19  ;;  %v2357_v47 = vadd.f32 %v2347_v46, %v4493_v56 }
 0xab2   :  { %2372 = vadd.xlane.f32.xlu1 %v2357_v47 }
 0xaf5   :  { %v2359_v54 = vpop.xlane.xlu0 %2358 }
 0xaf6   :  { %v2374_v48 = vmul.f32 0.0078125, %v2359_v54 }
 0xaf7   :  { %v2361_v35 = vpop.xlane.xlu1 %2360 }
 0xaf8   :  { %v2382_v0 = vsub.f32 %v2350_v42, %v2374_v48  ;;  %v2375_v49 = vmul.f32 0.0078125, %v2361_v35 }
 0xafa   :  { %v2383_v43 = vsub.f32 %v2351_v59, %v2375_v49  ;;  %v2390_v30 = vmul.f32 %v2382_v0, %v2382_v0 }
 0xafc   :  { %2398 = vadd.xlane.f32.xlu0 %v2390_v30  ;;  %v2391_v44 = vmul.f32 %v2383_v43, %v2383_v43 }
 0xafd   :  { %v2363_v2 = vpop.xlane.xlu0 %2362 }
 0xafe   :  { %v2376_v4 = vmul.f32 0.0078125, %v2363_v2  ;;  %2400 = vadd.xlane.f32.xlu1 %v2391_v44 }
 0xaff   :  { %v2365_v5 = vpop.xlane.xlu1 %2364 }
 0xb00   :  { %v2384_v13 = vsub.f32 %v2352_v10, %v2376_v4  ;;  %v2377_v20 = vmul.f32 0.0078125, %v2365_v5 }
 0xb02   :  { %v2385_v60 = vsub.f32 %v2353_v33, %v2377_v20  ;;  %v2392_v9 = vmul.f32 %v2384_v13, %v2384_v13 }
 0xb04   :  { %2402 = vadd.xlane.f32.xlu0 %v2392_v9  ;;  %v2393_v56 = vmul.f32 %v2385_v60, %v2385_v60 }
 0xb06   :  { %2404 = vadd.xlane.f32.xlu1 %v2393_v56 }
 0xb35   :  { %v2367_v11 = vpop.xlane.xlu0 %2366 }
 0xb36   :  { %v2378_v21 = vmul.f32 0.0078125, %v2367_v11 }
 0xb37   :  { %v2369_v26 = vpop.xlane.xlu1 %2368 }
 0xb38   :  { %v4531_v55 = vsub.f32 %v2354_v34, %v2378_v21  ;;  %v2379_v23 = vmul.f32 0.0078125, %v2369_v26 }
 0xb3a   :  { %v4533_v63 = vsub.f32 %v2355_v53, %v2379_v23  ;;  %v2394_v8 = vmul.f32 %v4531_v55, %v4531_v55 }
 0xb3c   :  { %2406 = vadd.xlane.f32.xlu0 %v2394_v8  ;;  %v2395_v39 = vmul.f32 %v4533_v63, %v4533_v63 }
 0xb3d   :  { %v2371_v38 = vpop.xlane.xlu0 %2370 }
 0xb3e   :  { %v2380_v41 = vmul.f32 0.0078125, %v2371_v38  ;;  %2408 = vadd.xlane.f32.xlu1 %v2395_v39 }
 0xb3f   :  { %v2373_v1 = vpop.xlane.xlu1 %2372 }
 0xb40   :  { %v4539_v6 = vsub.f32 %v2356_v19, %v2380_v41  ;;  %v2381_v14 = vmul.f32 0.0078125, %v2373_v1 }
 0xb42   :  { %v4541_v28 = vsub.f32 %v2357_v47, %v2381_v14  ;;  %v2396_v7 = vmul.f32 %v4539_v6, %v4539_v6 }
 0xb44   :  { %2410 = vadd.xlane.f32.xlu0 %v2396_v7  ;;  %v2397_v62 = vmul.f32 %v4541_v28, %v4541_v28 }
 0xb46   :  { %2412 = vadd.xlane.f32.xlu1 %v2397_v62 }
 0xb89   :  { %v2399_v42 = vpop.xlane.xlu0 %2398 }
 0xb8a   :  { %v2414_v52 = vmul.f32 0.0078125, %v2399_v42 }
 0xb8b   :  { %v2401_v59 = vpop.xlane.xlu1 %2400 }
 0xb8c   :  { %v2422_v31 = vadd.f32 1e-12, %v2414_v52  ;;  %v2415_v37 = vmul.f32 0.0078125, %v2401_v59 }
 0xb8e   :  { %3186 = vrsqrt.f32 %v2422_v31  ;;  %v2423_v29 = vadd.f32 1e-12, %v2415_v37 }
 0xb90   :  { %3188 = vrsqrt.f32 %v2423_v29 }
 0xb91   :  { %v2403_v15 = vpop.xlane.xlu0 %2402 }
 0xb92   :  { %v2416_v32 = vmul.f32 0.0078125, %v2403_v15 }
 0xb93   :  { %v2405_v16 = vpop.xlane.xlu1 %2404 }
 0xb94   :  { %v2424_v17 = vadd.f32 1e-12, %v2416_v32  ;;  %v2417_v10 = vmul.f32 0.0078125, %v2405_v16 }
 0xb96   :  { %3190 = vrsqrt.f32 %v2424_v17  ;;  %v2425_v33 = vadd.f32 1e-12, %v2417_v10 }
 0xb98   :  { %v3187_v22 = vpop.eup %3186  ;;  %3192 = vrsqrt.f32 %v2425_v33 }
 0xb99   :  { %v2438_v3 = vmul.f32 %v3187_v22, %v2382_v0 }
 0xb9a   :  { %v3189_v58 = vpop.eup %3188 }
 0xb9b   :  { %v2453_v25 = vmul.f32 %v2601_v51, %v2438_v3  ;;  %v2439_v50 = vmul.f32 %v3189_v58, %v2383_v43 }
 0xb9d   :  { %v2468_v12 = vadd.f32 %v2602_v40, %v2453_v25  ;;  %v2454_v34 = vmul.f32 %v2601_v51, %v2439_v50 }
 0xb9f   :  { %2476 = vst [vmem:[#allocation28] sm:$0xff] %v2468_v12  ;;  %v2469_v36 = vadd.f32 %v2602_v40, %v2454_v34 }
 0xba0   :  { %v3191_v53 = vpop.eup %3190 }
 0xba1   :  { %2477 = vst [vmem:[#allocation28 + $0x8] sm:$0xff] %v2469_v36  ;;  %v2440_v24 = vmul.f32 %v3191_v53, %v2384_v13 }
 0xba2   :  { %v3193_v27 = vpop.eup %3192 }
 0xba3   :  { %v2455_v45 = vmul.f32 %v2601_v51, %v2440_v24  ;;  %v2441_v18 = vmul.f32 %v3193_v27, %v2385_v60 }
 0xba5   :  { %v2470_v61 = vadd.f32 %v2602_v40, %v2455_v45  ;;  %v2456_v57 = vmul.f32 %v2601_v51, %v2441_v18 }
 0xba7   :  { %2478 = vst [vmem:[#allocation28 + $0x10] sm:$0xff] %v2470_v61  ;;  %v2471_v46 = vadd.f32 %v2602_v40, %v2456_v57 }
 0xba9   :  { %2479 = vst [vmem:[#allocation28 + $0x18] sm:$0xff] %v2471_v46 }
 0xbc9   :  { %v2407_v19 = vpop.xlane.xlu0 %2406 }
 0xbca   :  { %v2418_v47 = vmul.f32 0.0078125, %v2407_v19 }
 0xbcb   :  { %v2409_v54 = vpop.xlane.xlu1 %2408 }
 0xbcc   :  { %v2426_v48 = vadd.f32 1e-12, %v2418_v47  ;;  %v2419_v35 = vmul.f32 0.0078125, %v2409_v54 }
 0xbce   :  { %3194 = vrsqrt.f32 %v2426_v48  ;;  %v2427_v0 = vadd.f32 1e-12, %v2419_v35 }
 0xbd0   :  { %3196 = vrsqrt.f32 %v2427_v0 }
 0xbd1   :  { %v2411_v49 = vpop.xlane.xlu0 %2410 }
 0xbd2   :  { %v2420_v43 = vmul.f32 0.0078125, %v2411_v49 }
 0xbd3   :  { %v2413_v30 = vpop.xlane.xlu1 %2412 }
 0xbd4   :  { %v2428_v44 = vadd.f32 1e-12, %v2420_v43  ;;  %v2421_v2 = vmul.f32 0.0078125, %v2413_v30 }
 0xbd6   :  { %3198 = vrsqrt.f32 %v2428_v44  ;;  %v2429_v4 = vadd.f32 1e-12, %v2421_v2 }
 0xbd8   :  { %v3195_v5 = vpop.eup %3194  ;;  %3200 = vrsqrt.f32 %v2429_v4 }
 0xbd9   :  { %v2442_v13 = vmul.f32 %v3195_v5, %v4531_v55 }
 0xbda   :  { %v3197_v20 = vpop.eup %3196 }
 0xbdb   :  { %v2457_v60 = vmul.f32 %v2601_v51, %v2442_v13  ;;  %v2443_v9 = vmul.f32 %v3197_v20, %v4533_v63 }
 0xbdd   :  { %v2472_v56 = vadd.f32 %v2602_v40, %v2457_v60  ;;  %v2458_v11 = vmul.f32 %v2601_v51, %v2443_v9 }
 0xbdf   :  { %2480 = vst [vmem:[#allocation28 + $0x20] sm:$0xff] %v2472_v56  ;;  %v2473_v21 = vadd.f32 %v2602_v40, %v2458_v11 }
 0xbe0   :  { %v3199_v26 = vpop.eup %3198 }
 0xbe1   :  { %2481 = vst [vmem:[#allocation28 + $0x28] sm:$0xff] %v2473_v21  ;;  %v2444_v23 = vmul.f32 %v3199_v26, %v4539_v6 }
 0xbe2   :  { %v3201_v8 = vpop.eup %3200 }
 0xbe3   :  { %v2459_v39 = vmul.f32 %v2601_v51, %v2444_v23  ;;  %v2445_v38 = vmul.f32 %v3201_v8, %v4541_v28 }
 0xbe5   :  { %v2474_v41 = vadd.f32 %v2602_v40, %v2459_v39  ;;  %v2460_v55 = vmul.f32 %v2601_v51, %v2445_v38 }
 0xbe7   :  { %2482 = vst [vmem:[#allocation28 + $0x30] sm:$0xff] %v2474_v41  ;;  %v2475_v1 = vadd.f32 %v2602_v40, %v2460_v55 }
 0xbe9   :  { %2483 = vst [vmem:[#allocation28 + $0x38] sm:$0xff] %v2475_v1 }
 0xbea   :  { %3589 = shalt.err (!%p3586_p6)
}
 0xbeb   :  { %s3590_s3 = scalar_lea.hbm %s4582_s16, 1024 }
 0xbec   :  { %p3591_p7 = scmp.ne.s32.totalorder %s4582_s16, %s3590_s3  ;;  %p3594_p8 = scmp.lt.u32.totalorder %s3590_s3, %s4582_s16 }
 0xbee   :  { %p3596_p9 = pnand %p3594_p8, %p3591_p7 }
 0xbf0   :  { %3599 = shalt.err (!%p3596_p9)
}
 0xbf1   :  { %2495 = dma.vmem_to_hbm [thread:$0]  %s2490_s22, 1024, %s4582_s16, [#allocation4], %s3634_s13, %s3634_s13, %s3635_s28  }
 0xbf2   :  { %3618 = dma.done.wait [#allocation4], 1024  }
 0xbf3   :  { %3619 = vsyncadd [#allocation4], 4294966272 }
 0xbf4   :  { %2499 = vsyncpa [#allocation3], 1 }
 0xbf5   :  { %2500 = vsyncpa [#allocation6], 1 }
 0xbf6   :  { %2501 = vsyncpa [#allocation9], 1 }
 0xbf7   :  { %2502 = vsyncpa [#allocation12], 1 }
 0xbf8   :  { %2503 = vsyncpa [#allocation15], 1 }
 0xbf9   :  { %2504 = vsyncpa [#allocation18], 1 }
 0xbfa   :  { %2505 = vsyncpa [#allocation21], 1 }
 0xbfb   :  { %2506 = vsyncpa [#allocation24], 1 }
 0xbfc   :  { %2507 = vsyncpa [#allocation27], 1 }
 0xbfd   :  { %2508 = vsyncpa [#allocation4], 1 }

// kernel: tpu_custom_call.1
= control target key start
LH: loop header
LB: loop body
LE: loop exit
PB: predicated region body
PF: predicated region fallthrough
CT: control target
= control target key end

     0   :  { %s4412_s0 = inlined_call_operand.hbm [shape: f32[4,16,128], index: 0, kind: input, shape index: {}]   ;;  %s4413_s1 = inlined_call_operand.vmem [shape: bf16[128,384], index: 1, kind: input, shape index: {}]   ;;  %s4414_s2 = inlined_call_operand.hbm [shape: f32[1,384], index: 2, kind: input, shape index: {}]   ;;  %s4415_s3 = inlined_call_operand.hbm [shape: bf16[128,128], index: 3, kind: input, shape index: {}]   ;;  %s4416_s4 = inlined_call_operand.hbm [shape: f32[1,128], index: 4, kind: input, shape index: {}]   ;;  %s4417_s5 = inlined_call_operand.hbm [shape: bf16[256,128], index: 5, kind: input, shape index: {}]   ;;  %s4418_s6 = inlined_call_operand.vmem [shape: f32[256,16], index: 6, kind: input, shape index: {}]   ;;  %s4419_s7 = inlined_call_operand.hbm [shape: f32[16,256], index: 7, kind: input, shape index: {}]   ;;  %s4420_s8 = inlined_call_operand.hbm [shape: f32[1,128], index: 8, kind: input, shape index: {}]   ;;  %s4421_s9 = inlined_call_operand.hbm [shape: f32[1,128], index: 9, kind: input, shape index: {}]   ;;  %s4422_s10 = inlined_call_operand.vmem [shape: f32[1,128], index: 10, kind: input, shape index: {}]   ;;  %s4423_s11 = inlined_call_operand.vmem [shape: f32[1,128], index: 11, kind: input, shape index: {}]   ;;  %s4424_s12 = inlined_call_operand.vmem [shape: bf16[128,256], index: 12, kind: input, shape index: {}]   ;;  %s4425_s13 = inlined_call_operand.vmem [shape: f32[1,256], index: 13, kind: input, shape index: {}]   ;;  %s4426_s14 = inlined_call_operand.hbm [shape: bf16[256,128], index: 14, kind: input, shape index: {}]   ;;  %s4427_s15 = inlined_call_operand.vmem [shape: f32[1,128], index: 15, kind: input, shape index: {}]   ;;  %s4428_s16 = inlined_call_operand.hbm [shape: f32[4,16,128], index: 16, kind: output, shape index: {}]  }
   0x1   :  { %4430 = sst [smem:[#allocation24_spill]] %s4412_s0 }
   0x2   :  { %21 = vsyncpa [#allocation3], 0 }
   0x3   :  { %22 = vsyncpa [#allocation6], 0 }
   0x4   :  { %23 = vsyncpa [#allocation9], 0 }
   0x5   :  { %24 = vsyncpa [#allocation12], 0 }
   0x6   :  { %25 = vsyncpa [#allocation15], 0 }
   0x7   :  { %26 = vsyncpa [#allocation4], 0  ;;  %s3358_s21 = smov [#allocation5]   ;;  %s3359_s23 = smov [#allocation8]  }
   0x8   :  { %s47_s22 = sshll.u32 %s3358_s21, 4  ;;  %s69_s24 = sshll.u32 %s3359_s23, 4  ;;  %s48_s22 = int_to_ptr.vmem [resolvable:$true] %s47_s22  ;;  %s70_s24 = int_to_ptr.vmem [resolvable:$true] %s69_s24 }
   0x9   :  { %s3126_s27 = scalar_lea.hbm %s4414_s2, 48 }
   0xa   :  { %p3127_p0 = scmp.ne.s32.totalorder %s4414_s2, %s3126_s27  ;;  %p3130_p1 = scmp.lt.u32.totalorder %s3126_s27, %s4414_s2 }
   0xc   :  { %p3132_p2 = pnand %p3130_p1, %p3127_p0 }
   0xe   :  { %3135 = shalt.err (!%p3132_p2)
}
   0xf   :  { %s3136_s17 = scalar_lea.vmem %s48_s22, 48  ;;  %s3140_s18 = scalar_lea.vmem %s48_s22, 64 }
  0x10   :  { %p3137_p3 = scmp.ne.s32.totalorder %s48_s22, %s3136_s17  ;;  %p3141_p4 = scmp.lt.s32.totalorder %s48_s22, %s48_s22 }
  0x11   :  { %p3142_p5 = scmp.lt.s32.totalorder %s3140_s18, %s3136_s17 }
  0x13   :  { %p3143_p6 = por %p3142_p5, %p3141_p4 }
  0x15   :  { %p3144_p7 = pnand %p3143_p6, %p3137_p3 }
  0x17   :  { %3147 = shalt.err (!%p3144_p7)
}
  0x18   :  { %50 = dma.hbm_to_vmem [thread:$0]  %s4414_s2, 48, %s48_s22, [#allocation6]  }
  0x19   :  { %s3148_s25 = scalar_lea.hbm %s4416_s4, 16 }
  0x1a   :  { %p3149_p8 = scmp.ne.s32.totalorder %s4416_s4, %s3148_s25  ;;  %p3152_p9 = scmp.lt.u32.totalorder %s3148_s25, %s4416_s4 }
  0x1c   :  { %p3154_p10 = pnand %p3152_p9, %p3149_p8 }
  0x1e   :  { %3157 = shalt.err (!%p3154_p10)
}
  0x1f   :  { %s3158_s30 = scalar_lea.vmem %s70_s24, 16  ;;  %s3162_s0 = scalar_lea.vmem %s70_s24, 32 }
  0x20   :  { %p3159_p11 = scmp.ne.s32.totalorder %s70_s24, %s3158_s30  ;;  %p3163_p12 = scmp.lt.s32.totalorder %s70_s24, %s70_s24 }
  0x21   :  { %p3164_p13 = scmp.lt.s32.totalorder %s3162_s0, %s3158_s30 }
  0x23   :  { %p3165_p0 = por %p3164_p13, %p3163_p12 }
  0x25   :  { %p3166_p1 = pnand %p3165_p0, %p3159_p11 }
  0x27   :  { %3169 = shalt.err (!%p3166_p1)
}
  0x28   :  { %72 = dma.hbm_to_vmem [thread:$0]  %s4416_s4, 16, %s70_s24, [#allocation9]  }
  0x29   :  { %s3360_s17 = smov [#allocation11]   ;;  %s3170_s21 = scalar_lea.hbm %s4419_s7, 512 }
  0x2a   :  { %s92_s18 = sshll.u32 %s3360_s17, 4  ;;  %p3171_p2 = scmp.ne.s32.totalorder %s4419_s7, %s3170_s21  ;;  %s93_s18 = int_to_ptr.vmem [resolvable:$true] %s92_s18 }
  0x2b   :  { %p3174_p3 = scmp.lt.u32.totalorder %s3170_s21, %s4419_s7 }
  0x2d   :  { %p3176_p4 = pnand %p3174_p3, %p3171_p2 }
  0x2f   :  { %3179 = shalt.err (!%p3176_p4)
}
  0x30   :  { %s3180_s28 = scalar_lea.vmem %s93_s18, 512  ;;  %p3185_p6 = scmp.lt.s32.totalorder %s93_s18, %s93_s18 }
  0x31   :  { %p3181_p5 = scmp.ne.s32.totalorder %s93_s18, %s3180_s28  ;;  %p3186_p7 = scmp.lt.s32.totalorder %s3180_s28, %s3180_s28 }
  0x33   :  { %p3187_p8 = por %p3186_p7, %p3185_p6 }
  0x35   :  { %p3188_p9 = pnand %p3187_p8, %p3181_p5 }
  0x37   :  { %3191 = shalt.err (!%p3188_p9)
}
  0x38   :  { %s3361_s4 = smov 256   ;;  %s3362_s24 = smov 16  }
  0x39   :  { %98 = dma.hbm_to_vmem [thread:$0]  %s4419_s7, 512, %s93_s18, [#allocation12], %s3361_s4, %s3361_s4, %s3362_s24  }
  0x3a   :  { %s3363_s0 = smov [#allocation14]   ;;  %s3364_s22 = smov [#allocation2]  }
  0x3b   :  { %s115_s2 = sshll.u32 %s3363_s0, 4  ;;  %s32_s17 = sshll.u32 %s3364_s22, 4  ;;  %s116_s2 = int_to_ptr.vmem [resolvable:$true] %s115_s2  ;;  %s33_s17 = int_to_ptr.vmem [resolvable:$true] %s32_s17 }
  0x3c   :  { %s3192_s21 = scalar_lea.hbm %s4421_s9, 16 }
  0x3d   :  { %p3193_p10 = scmp.ne.s32.totalorder %s4421_s9, %s3192_s21  ;;  %p3196_p11 = scmp.lt.u32.totalorder %s3192_s21, %s4421_s9 }
  0x3f   :  { %p3198_p12 = pnand %p3196_p11, %p3193_p10 }
  0x41   :  { %3201 = shalt.err (!%p3198_p12)
}
  0x42   :  { %s3202_s7 = scalar_lea.vmem %s116_s2, 16  ;;  %s3206_s18 = scalar_lea.vmem %s116_s2, 32 }
  0x43   :  { %p3203_p13 = scmp.ne.s32.totalorder %s116_s2, %s3202_s7  ;;  %p3207_p0 = scmp.lt.s32.totalorder %s116_s2, %s116_s2 }
  0x44   :  { %p3208_p1 = scmp.lt.s32.totalorder %s3206_s18, %s3202_s7 }
  0x46   :  { %p3209_p2 = por %p3208_p1, %p3207_p0 }
  0x48   :  { %p3210_p3 = pnand %p3209_p2, %p3203_p13 }
  0x4a   :  { %3213 = shalt.err (!%p3210_p3)
}
  0x4b   :  { %118 = dma.hbm_to_vmem [thread:$0]  %s4421_s9, 16, %s116_s2, [#allocation15]  }
  0x4c   :  { %s4431_s30 = sld [smem:[#allocation24_spill]] }
  0x52   :  { %s3214_s0 = scalar_lea.hbm %s4431_s30, 1024 }
  0x53   :  { %p3215_p4 = scmp.ne.s32.totalorder %s4431_s30, %s3214_s0  ;;  %p3218_p5 = scmp.lt.u32.totalorder %s3214_s0, %s4431_s30 }
  0x55   :  { %p3220_p6 = pnand %p3218_p5, %p3215_p4 }
  0x57   :  { %3223 = shalt.err (!%p3220_p6)
}
  0x58   :  { %s3224_s23 = scalar_lea.vmem %s33_s17, 1024  ;;  %p3229_p8 = scmp.lt.s32.totalorder %s33_s17, %s33_s17 }
  0x59   :  { %p3225_p7 = scmp.ne.s32.totalorder %s33_s17, %s3224_s23  ;;  %p3230_p9 = scmp.lt.s32.totalorder %s3224_s23, %s3224_s23 }
  0x5b   :  { %p3231_p10 = por %p3230_p9, %p3229_p8 }
  0x5d   :  { %p3232_p11 = pnand %p3231_p10, %p3225_p7 }
  0x5f   :  { %3235 = shalt.err (!%p3232_p11)
}
  0x60   :  { %s3365_s9 = smov 128   ;;  %s3366_s2 = smov 8  }
  0x61   :  { %38 = dma.hbm_to_vmem [thread:$0]  %s4431_s30, 1024, %s33_s17, [#allocation3], %s3365_s9, %s3365_s9, %s3366_s2  }
  0x62   :  { %s3367_s27 = smov [#allocation7]   ;;  %s3236_s4 = scalar_lea.hbm %s4415_s3, 1024 }
  0x63   :  { %s56_s7 = sshll.u32 %s3367_s27, 4  ;;  %p3237_p12 = scmp.ne.s32.totalorder %s4415_s3, %s3236_s4  ;;  %s57_s7 = int_to_ptr.vmem [resolvable:$true] %s56_s7 }
  0x64   :  { %p3240_p13 = scmp.lt.u32.totalorder %s3236_s4, %s4415_s3 }
  0x66   :  { %p3242_p0 = pnand %p3240_p13, %p3237_p12 }
  0x68   :  { %3245 = shalt.err (!%p3242_p0)
}
  0x69   :  { %s3246_s19 = scalar_lea.vmem %s57_s7, 1024  ;;  %p3251_p2 = scmp.lt.s32.totalorder %s57_s7, %s57_s7 }
  0x6a   :  { %p3247_p1 = scmp.ne.s32.totalorder %s57_s7, %s3246_s19  ;;  %p3252_p3 = scmp.lt.s32.totalorder %s3246_s19, %s3246_s19 }
  0x6c   :  { %p3253_p4 = por %p3252_p3, %p3251_p2 }
  0x6e   :  { %p3254_p5 = pnand %p3253_p4, %p3247_p1 }
  0x70   :  { %3257 = shalt.err (!%p3254_p5)
}
  0x71   :  { %s3368_s17 = smov 64   ;;  %s3369_s30 = smov 4  }
  0x72   :  { %62 = dma.hbm_to_vmem [thread:$0]  %s4415_s3, 1024, %s57_s7, [#allocation6], %s3368_s17, %s3368_s17, %s3369_s30  }
  0x73   :  { %s3370_s23 = smov [#allocation10]   ;;  %s3371_s26 = smov [#allocation13]  }
  0x74   :  { %s78_s25 = sshll.u32 %s3370_s23, 4  ;;  %s105_s27 = sshll.u32 %s3371_s26, 4  ;;  %s79_s25 = int_to_ptr.vmem [resolvable:$true] %s78_s25  ;;  %s106_s27 = int_to_ptr.vmem [resolvable:$true] %s105_s27 }
  0x75   :  { %s3258_s4 = scalar_lea.hbm %s4417_s5, 2048 }
  0x76   :  { %p3259_p6 = scmp.ne.s32.totalorder %s4417_s5, %s3258_s4  ;;  %p3262_p7 = scmp.lt.u32.totalorder %s3258_s4, %s4417_s5 }
  0x78   :  { %p3264_p8 = pnand %p3262_p7, %p3259_p6 }
  0x7a   :  { %3267 = shalt.err (!%p3264_p8)
}
  0x7b   :  { %s3268_s3 = scalar_lea.vmem %s79_s25, 2048  ;;  %p3273_p10 = scmp.lt.s32.totalorder %s79_s25, %s79_s25 }
  0x7c   :  { %p3269_p9 = scmp.ne.s32.totalorder %s79_s25, %s3268_s3  ;;  %p3274_p11 = scmp.lt.s32.totalorder %s3268_s3, %s3268_s3 }
  0x7e   :  { %p3275_p12 = por %p3274_p11, %p3273_p10 }
  0x80   :  { %p3276_p13 = pnand %p3275_p12, %p3269_p9 }
  0x82   :  { %3279 = shalt.err (!%p3276_p13)
}
  0x83   :  { %84 = dma.hbm_to_vmem [thread:$0]  %s4417_s5, 2048, %s79_s25, [#allocation9], %s3368_s17, %s3368_s17, %s3369_s30  }
  0x84   :  { %s3280_s23 = scalar_lea.hbm %s4420_s8, 16 }
  0x85   :  { %p3281_p0 = scmp.ne.s32.totalorder %s4420_s8, %s3280_s23  ;;  %p3284_p1 = scmp.lt.u32.totalorder %s3280_s23, %s4420_s8 }
  0x87   :  { %p3286_p2 = pnand %p3284_p1, %p3281_p0 }
  0x89   :  { %3289 = shalt.err (!%p3286_p2)
}
  0x8a   :  { %s3290_s24 = scalar_lea.vmem %s106_s27, 16  ;;  %s3294_s29 = scalar_lea.vmem %s106_s27, 32 }
  0x8b   :  { %p3291_p3 = scmp.ne.s32.totalorder %s106_s27, %s3290_s24  ;;  %p3295_p4 = scmp.lt.s32.totalorder %s106_s27, %s106_s27 }
  0x8c   :  { %p3296_p5 = scmp.lt.s32.totalorder %s3294_s29, %s3290_s24 }
  0x8e   :  { %p3297_p6 = por %p3296_p5, %p3295_p4 }
  0x90   :  { %p3298_p7 = pnand %p3297_p6, %p3291_p3 }
  0x92   :  { %3301 = shalt.err (!%p3298_p7)
}
  0x93   :  { %108 = dma.hbm_to_vmem [thread:$0]  %s4420_s8, 16, %s106_s27, [#allocation12]  }
  0x94   :  { %s3372_s0 = smov [#allocation16]   ;;  %s3302_s19 = scalar_lea.hbm %s4426_s14, 2048 }
  0x95   :  { %s132_s22 = sshll.u32 %s3372_s0, 4  ;;  %p3303_p8 = scmp.ne.s32.totalorder %s4426_s14, %s3302_s19  ;;  %s133_s22 = int_to_ptr.vmem [resolvable:$true] %s132_s22 }
  0x96   :  { %p3306_p9 = scmp.lt.u32.totalorder %s3302_s19, %s4426_s14 }
  0x98   :  { %p3308_p10 = pnand %p3306_p9, %p3303_p8 }
  0x9a   :  { %3311 = shalt.err (!%p3308_p10)
}
  0x9b   :  { %s3312_s18 = scalar_lea.vmem %s133_s22, 2048  ;;  %p3317_p12 = scmp.lt.s32.totalorder %s133_s22, %s133_s22 }
  0x9c   :  { %p3313_p11 = scmp.ne.s32.totalorder %s133_s22, %s3312_s18  ;;  %p3318_p13 = scmp.lt.s32.totalorder %s3312_s18, %s3312_s18 }
  0x9e   :  { %p3319_p0 = por %p3318_p13, %p3317_p12 }
  0xa0   :  { %p3320_p1 = pnand %p3319_p0, %p3313_p11 }
  0xa2   :  { %3323 = shalt.err (!%p3320_p1)
}
  0xa3   :  { %138 = dma.hbm_to_vmem [thread:$0]  %s4426_s14, 2048, %s133_s22, [#allocation15], %s3368_s17, %s3368_s17, %s3369_s30  }
  0xa4   :  { %3346 = dma.done.wait [#allocation3], 1024  }
  0xa5   :  { %3347 = vsyncadd [#allocation3], 4294966272 }
  0xa6   :  { %3348 = dma.done.wait [#allocation6], 1072  }
  0xa7   :  { %3349 = vsyncadd [#allocation6], 4294966224 }
  0xa8   :  { %3350 = dma.done.wait [#allocation9], 2064  }
  0xa9   :  { %3351 = vsyncadd [#allocation9], 4294965232 }
  0xaa   :  { %3352 = dma.done.wait [#allocation12], 528  }
  0xab   :  { %3353 = vsyncadd [#allocation12], 4294966768 }
  0xac   :  { %3354 = dma.done.wait [#allocation15], 2064  }
  0xad   :  { %3355 = vsyncadd [#allocation15], 4294965232  ;;  %v3373_v0 = vmov 0   ;;  %v2894_v1 = vld [vmem:[%s4413_s1 + $0x4] ss:$12 sps:$4 sm:$0xff]   ;;  %v170_v10 = vld [vmem:[#allocation2 + $0x8] sm:$0xff]  ;;  %v215_v37 = vlaneseq }
  0xae   :  { %390 = vmatprep.mubr.bf16.mxu0 %v3373_v0  ;;  %v2896_v2 = vld [vmem:[%s4413_s1] ss:$12 sps:$4 sm:$0xff]   ;;  %358 = vmatprep.subr.bf16.mxu0 %v2894_v1  ;;  %v2897_v3 = vld [vmem:[%s4413_s1 + $0x1c] ss:$12 sps:$4 sm:$0xff]   ;;  %v2899_v4 = vld [vmem:[%s4413_s1 + $0x18] ss:$12 sps:$4 sm:$0xff]  }
  0xaf   :  { %359 = vmatpush1.bf16.msra.mxu0 %v2896_v2  ;;  %v2900_v5 = vld [vmem:[%s4413_s1 + $0x34] ss:$12 sps:$4 sm:$0xff]   ;;  %v2902_v6 = vld [vmem:[%s4413_s1 + $0x30] ss:$12 sps:$4 sm:$0xff]   ;;  %v2903_v7 = vld [vmem:[%s4413_s1 + $0x4c] ss:$12 sps:$4 sm:$0xff]  }
  0xb0   :  { %360 = vmatprep.subr.bf16.mxu0 %v2897_v3  ;;  %v169_v8 = vld [vmem:[#allocation2] sm:$0xff]  ;;  %v2905_v9 = vld [vmem:[%s4413_s1 + $0x48] ss:$12 sps:$4 sm:$0xff]   ;;  %v2921_v20 = vld [vmem:[%s4413_s1 + $0x50] ss:$12 sps:$4 sm:$0xff]   ;;  %v3657_v38 = vshrl.u32 %v215_v37, 7 }
  0xb1   :  { %v2906_v11 = vld [vmem:[%s4413_s1 + $0x64] ss:$12 sps:$4 sm:$0xff]   ;;  %v177_v12 = vpack.c.bf16 %v170_v10, %v169_v8  ;;  %v2908_v13 = vld [vmem:[%s4413_s1 + $0x60] ss:$12 sps:$4 sm:$0xff]   ;;  %v2918_v14 = vld [vmem:[%s4413_s1 + $0x8] ss:$12 sps:$4 sm:$0xff]  }
  0xb2   :  { %v2919_v15 = vld [vmem:[%s4413_s1 + $0x20] ss:$12 sps:$4 sm:$0xff]   ;;  %v2909_v16 = vld [vmem:[%s4413_s1 + $0x7c] ss:$12 sps:$4 sm:$0xff]   ;;  %2792 = vmatprep.subr.bf16.mxu1 %v2918_v14  ;;  %v2920_v17 = vld [vmem:[%s4413_s1 + $0x38] ss:$12 sps:$4 sm:$0xff]  }
  0xb3   :  { %361 = vmatpush1.bf16.msra.mxu0 %v2899_v4  ;;  %2808 = vmatprep.mubr.bf16.mxu1 %v177_v12  ;;  %v2911_v18 = vld [vmem:[%s4413_s1 + $0x78] ss:$12 sps:$4 sm:$0xff]   ;;  %v2912_v19 = vld [vmem:[%s4413_s1 + $0x94] ss:$12 sps:$4 sm:$0xff]   ;;  %v2914_v21 = vld [vmem:[%s4413_s1 + $0x90] ss:$12 sps:$4 sm:$0xff]  }
  0xb4   :  { %362 = vmatprep.subr.bf16.mxu0 %v2900_v5  ;;  %2793 = vmatpush3.bf16.msra.mxu1 %v2918_v14  ;;  %v2915_v22 = vld [vmem:[%s4413_s1 + $0xac] ss:$12 sps:$4 sm:$0xff]   ;;  %v2922_v23 = vld [vmem:[%s4413_s1 + $0x68] ss:$12 sps:$4 sm:$0xff]   ;;  %v173_v29 = vld [vmem:[#allocation2 + $0x20] sm:$0xff]  ;;  %v217_v39 = vsub.s32 0, %v3657_v38 }
  0xb5   :  { %2794 = vmatprep.subr.bf16.mxu1 %v2919_v15  ;;  %v2917_v24 = vld [vmem:[%s4413_s1 + $0xa8] ss:$12 sps:$4 sm:$0xff]   ;;  %v2923_v25 = vld [vmem:[%s4413_s1 + $0x80] ss:$12 sps:$4 sm:$0xff]   ;;  %v172_v27 = vld [vmem:[#allocation2 + $0x18] sm:$0xff]  ;;  %v221_v41 = vsub.s32 1, %v3657_v38 }
  0xb6   :  { %v171_v26 = vld [vmem:[#allocation2 + $0x10] sm:$0xff]  ;;  %v174_v30 = vld [vmem:[#allocation2 + $0x28] sm:$0xff]  ;;  %v176_v33 = vld [vmem:[#allocation2 + $0x38] sm:$0xff]  ;;  %vm1197_vm0 = vcmask 130048  }
  0xb7   :  { %363 = vmatpush1.bf16.msra.mxu0 %v2902_v6  ;;  %v178_v28 = vpack.c.bf16 %v172_v27, %v171_v26  ;;  %v179_v31 = vpack.c.bf16 %v174_v30, %v173_v29  ;;  %v175_v32 = vld [vmem:[#allocation2 + $0x30] sm:$0xff]  ;;  %v2924_v35 = vld [vmem:[%s4413_s1 + $0x98] ss:$12 sps:$4 sm:$0xff]   ;;  %v3660_v40 = vld [vmem:[#allocation5] sm:$0x7] }
  0xb8   :  { %364 = vmatprep.subr.bf16.mxu0 %v2903_v7  ;;  %2795 = vmatpush3.bf16.msra.mxu1 %v2919_v15  ;;  %v180_v34 = vpack.c.bf16 %v176_v33, %v175_v32  ;;  %v2925_v36 = vld [vmem:[%s4413_s1 + $0xb0] ss:$12 sps:$4 sm:$0xff]   ;;  %v3666_v42 = vrot.slane %v3660_v40, %v217_v39  ;;  %v3671_v44 = vrot.slane %v3660_v40, %v221_v41  ;;  %v3677_v52 = vld [vmem:[#allocation10 + $0x40] sm:$0xff]  }
  0xb9   :  { %2796 = vmatprep.subr.bf16.mxu1 %v2920_v17  ;;  %v3679_v53 = vld [vmem:[#allocation10] sm:$0xff]   ;;  %v3683_v57 = vld [vmem:[#allocation10 + $0x48] sm:$0xff]   ;;  %v3721_v26 = vld [vmem:[#allocation10 + $0x10] sm:$0xff]  }
  0xbb   :  { %365 = vmatpush1.bf16.msra.mxu0 %v2905_v9  ;;  %v3698_v9 = vld [vmem:[#allocation10 + $0x8] sm:$0xff]  }
  0xbc   :  { %366 = vmatprep.subr.bf16.mxu0 %v2906_v11  ;;  %2797 = vmatpush3.bf16.msra.mxu1 %v2920_v17  ;;  %v3702_v11 = vld [vmem:[#allocation10 + $0x50] sm:$0xff]  }
  0xbd   :  { %2798 = vmatprep.subr.bf16.mxu1 %v2921_v20 }
  0xbf   :  { %367 = vmatpush1.bf16.msra.mxu0 %v2908_v13 }
  0xc0   :  { %368 = vmatprep.subr.bf16.mxu0 %v2909_v16  ;;  %2799 = vmatpush3.bf16.msra.mxu1 %v2921_v20 }
  0xc1   :  { %2800 = vmatprep.subr.bf16.mxu1 %v2922_v23 }
  0xc3   :  { %369 = vmatpush1.bf16.msra.mxu0 %v2911_v18 }
  0xc4   :  { %370 = vmatprep.subr.bf16.mxu0 %v2912_v19  ;;  %2801 = vmatpush3.bf16.msra.mxu1 %v2922_v23 }
  0xc5   :  { %2802 = vmatprep.subr.bf16.mxu1 %v2923_v25 }
  0xc7   :  { %371 = vmatpush1.bf16.msra.mxu0 %v2914_v21 }
  0xc8   :  { %372 = vmatprep.subr.bf16.mxu0 %v2915_v22  ;;  %2803 = vmatpush3.bf16.msra.mxu1 %v2923_v25 }
  0xc9   :  { %2804 = vmatprep.subr.bf16.mxu1 %v2924_v35 }
  0xcb   :  { %373 = vmatpush1.bf16.msra.mxu0 %v2917_v24 }
  0xcc   :  { %2805 = vmatpush3.bf16.msra.mxu1 %v2924_v35 }
  0xcd   :  { %2806 = vmatprep.subr.bf16.mxu1 %v2925_v36 }
  0xce   :  { %391 = vmatmul.mubr.bf16.vlgmr.msra.gmra.mrb[0].mxu0 %v177_v12 }
  0xcf   :  { %400 = vmatprep.mubr.bf16.mxu0 %v3373_v0 }
  0xd0   :  { %2807 = vmatpush3.bf16.msra.mxu1 %v2925_v36 }
  0xd3   :  { %2809 = vmatmul.mubr.bf16.vlgmr.msra.gmra.mrb[0].mxu1 %v178_v28 }
  0xd4   :  { %2812 = vmatprep.mubr.bf16.mxu1 %v179_v31 }
  0xd6   :  { %401 = vmatmul.mubr.bf16.gmra.mrb[4].mxu0 %v178_v28  ;;  %v3723_v28 = vld [vmem:[#allocation10 + $0x58] sm:$0xff]  }
  0xd7   :  { %410 = vmatprep.mubr.bf16.mxu0 %v3373_v0 }
  0xdb   :  { %2813 = vmatmul.mubr.bf16.gmra.mrb[4].mxu1 %v180_v34 }
  0xde   :  { %411 = vmatmul.mubr.bf16.gmra.mrb[8].mxu0 %v179_v31 }
  0xdf   :  { %420 = vmatprep.mubr.bf16.mxu0 %v3373_v0 }
  0xe6   :  { %421 = vmatmul.mubr.bf16.gmra.mrb[12].mxu0 %v180_v34 }
 0x1a1   :  { %v392_v43 = vpop.f32.mrb[0].mxu0 }
 0x1a2   :  { %v393_v45 = vadd.f32 %v392_v43, %v3666_v42  ;;  %v394_v46 = vpop.f32.mrb[1].mxu0 }
 0x1a3   :  { %v396_v47 = vpop.f32.mrb[2].mxu0  ;;  %v395_v50 = vadd.f32 %v394_v46, %v3671_v44 }
 0x1a4   :  { %v397_v48 = vadd.f32 %v396_v47, %v3666_v42  ;;  %v398_v49 = vpop.f32.mrb[3].mxu0  ;;  %v496_v54 = vmul.f32 0.35355338, %v393_v45 }
 0x1a5   :  { %v399_v51 = vadd.f32 %v398_v49, %v3671_v44 }
 0x1a6   :  { %v497_v55 = vmul.f32 0.35355338, %v397_v48 }
 0x1a7   :  { %v3681_v56 = vpack.c.bf16 %v399_v51, %v395_v50  ;;  %v3741_v51 = vld [vmem:[#allocation10 + $0x18] sm:$0xff]  }
 0x1a8   :  { %v3685_v58 = vpack.c.bf16 %v497_v55, %v496_v54  ;;  %v3743_v55 = vld [vmem:[#allocation10 + $0x60] sm:$0xff]  }
 0x1a9   :  { %v402_v59 = vpop.f32.mrb[4].mxu0  ;;  %v688_v60 = vmul.bf16 %v3677_v52, %v3681_v56  ;;  %v680_v61 = vmul.bf16 %v3679_v53, %v3681_v56  ;;  %v689_v2 = vmul.bf16 %v3683_v57, %v3681_v56  ;;  %v681_v16 = vmul.bf16 %v3698_v9, %v3681_v56 }
 0x1aa   :  { %v403_v62 = vadd.f32 %v402_v59, %v3666_v42  ;;  %v404_v63 = vpop.f32.mrb[5].mxu0  ;;  %2540 = vmatprep.mubr.bf16.mxu0 %v3685_v58  ;;  %v690_v18 = vmul.bf16 %v3702_v11, %v3681_v56  ;;  %v682_v33 = vmul.bf16 %v3721_v26, %v3681_v56  ;;  %v691_v37 = vmul.bf16 %v3723_v28, %v3681_v56 }
 0x1ab   :  { %v406_v1 = vpop.f32.mrb[6].mxu0  ;;  %2524 = vmatprep.subr.bf16.mxu0 %v688_v60  ;;  %v405_v5 = vadd.f32 %v404_v63, %v3671_v44  ;;  %v3757_v63 = vld [vmem:[#allocation10 + $0x20] sm:$0xff]  }
 0x1ac   :  { %v407_v3 = vadd.f32 %v406_v1, %v3666_v42  ;;  %v408_v4 = vpop.f32.mrb[7].mxu0  ;;  %2525 = vmatpush3.bf16.xpose.msra.mxu0 %v680_v61  ;;  %v498_v7 = vmul.f32 0.35355338, %v403_v62  ;;  %v683_v61 = vmul.bf16 %v3741_v51, %v3681_v56  ;;  %v692_v62 = vmul.bf16 %v3743_v55, %v3681_v56  ;;  %v3759_v1 = vld [vmem:[#allocation10 + $0x68] sm:$0xff]  }
 0x1ad   :  { %v409_v6 = vadd.f32 %v408_v4, %v3671_v44  ;;  %2526 = vmatprep.subr.bf16.mxu0 %v689_v2  ;;  %v684_v2 = vmul.bf16 %v3757_v63, %v3681_v56  ;;  %v693_v4 = vmul.bf16 %v3759_v1, %v3681_v56 }
 0x1ae   :  { %v499_v8 = vmul.f32 0.35355338, %v407_v3 }
 0x1af   :  { %v3700_v10 = vpack.c.bf16 %v409_v6, %v405_v5  ;;  %v3769_v6 = vld [vmem:[#allocation10 + $0x28] sm:$0xff]  }
 0x1b0   :  { %v3704_v12 = vpack.c.bf16 %v499_v8, %v498_v7  ;;  %v3771_v7 = vld [vmem:[#allocation10 + $0x70] sm:$0xff]   ;;  %v685_v8 = vmul.bf16 %v3769_v6, %v3681_v56 }
 0x1b1   :  { %v704_v13 = vmul.bf16 %v3677_v52, %v3700_v10  ;;  %v696_v14 = vmul.bf16 %v3679_v53, %v3700_v10  ;;  %v412_v15 = vpop.f32.mrb[8].mxu0  ;;  %v705_v19 = vmul.bf16 %v3683_v57, %v3700_v10  ;;  %v697_v34 = vmul.bf16 %v3698_v9, %v3700_v10 }
 0x1b2   :  { %2558 = vmatprep.mubr.bf16.mxu1 %v3704_v12  ;;  %v414_v17 = vpop.f32.mrb[9].mxu0  ;;  %v413_v21 = vadd.f32 %v412_v15, %v3666_v42  ;;  %v706_v43 = vmul.bf16 %v3702_v11, %v3700_v10  ;;  %v699_v3 = vmul.bf16 %v3741_v51, %v3700_v10  ;;  %v708_v5 = vmul.bf16 %v3743_v55, %v3700_v10 }
 0x1b3   :  { %2542 = vmatprep.subr.bf16.mxu1 %v704_v13  ;;  %v416_v20 = vpop.f32.mrb[10].mxu0  ;;  %v415_v22 = vadd.f32 %v414_v17, %v3671_v44  ;;  %v700_v13 = vmul.bf16 %v3757_v63, %v3700_v10  ;;  %v709_v15 = vmul.bf16 %v3759_v1, %v3700_v10  ;;  %v3783_v17 = vld [vmem:[#allocation10 + $0x78] sm:$0xff]  }
 0x1b4   :  { %2527 = vmatpush3.bf16.xpose.msra.mxu0 %v681_v16  ;;  %2543 = vmatpush3.bf16.xpose.msra.mxu1 %v696_v14  ;;  %v418_v23 = vpop.f32.mrb[11].mxu0  ;;  %v417_v24 = vadd.f32 %v416_v20, %v3666_v42  ;;  %v500_v27 = vmul.f32 0.35355338, %v413_v21  ;;  %v694_v14 = vmul.bf16 %v3771_v7, %v3681_v56  ;;  %v3781_v16 = vld [vmem:[#allocation10 + $0x30] sm:$0xff]   ;;  %v695_v20 = vmul.bf16 %v3783_v17, %v3681_v56 }
 0x1b5   :  { %2528 = vmatprep.subr.bf16.mxu0 %v690_v18  ;;  %2544 = vmatprep.subr.bf16.mxu1 %v705_v19  ;;  %v419_v25 = vadd.f32 %v418_v23, %v3671_v44  ;;  %v686_v18 = vmul.bf16 %v3781_v16, %v3681_v56  ;;  %v701_v19 = vmul.bf16 %v3769_v6, %v3700_v10 }
 0x1b6   :  { %v501_v29 = vmul.f32 0.35355338, %v417_v24  ;;  %v710_v21 = vmul.bf16 %v3771_v7, %v3700_v10 }
 0x1b7   :  { %v3725_v30 = vpack.c.bf16 %v419_v25, %v415_v22  ;;  %v3793_v22 = vld [vmem:[#allocation10 + $0x38] sm:$0xff]   ;;  %v702_v25 = vmul.bf16 %v3781_v16, %v3700_v10 }
 0x1b8   :  { %v3727_v31 = vpack.c.bf16 %v501_v29, %v500_v27  ;;  %v687_v24 = vmul.bf16 %v3793_v22, %v3681_v56  ;;  %v711_v27 = vmul.bf16 %v3783_v17, %v3700_v10  ;;  %v703_v29 = vmul.bf16 %v3793_v22, %v3700_v10 }
 0x1b9   :  { %v422_v32 = vpop.f32.mrb[12].mxu0  ;;  %v720_v23 = vmul.bf16 %v3677_v52, %v3725_v30  ;;  %v721_v56 = vmul.bf16 %v3683_v57, %v3725_v30 }
 0x1ba   :  { %v423_v35 = vadd.f32 %v422_v32, %v3666_v42  ;;  %v424_v36 = vpop.f32.mrb[13].mxu0  ;;  %v712_v32 = vmul.bf16 %v3679_v53, %v3725_v30 }
 0x1bb   :  { %v425_v45 = vadd.f32 %v424_v36, %v3671_v44  ;;  %v426_v46 = vpop.f32.mrb[14].mxu0  ;;  %v225_v36 = vsub.s32 2, %v3657_v38 }
 0x1bc   :  { %2529 = vmatpush3.bf16.xpose.msra.mxu0 %v682_v33  ;;  %2545 = vmatpush3.bf16.xpose.msra.mxu1 %v697_v34  ;;  %v502_v47 = vmul.f32 0.35355338, %v423_v35  ;;  %v427_v48 = vadd.f32 %v426_v46, %v3666_v42  ;;  %v428_v49 = vpop.f32.mrb[15].mxu0  ;;  %v698_v42 = vmul.bf16 %v3721_v26, %v3700_v10 }
 0x1bd   :  { %2530 = vmatprep.subr.bf16.mxu0 %v691_v37  ;;  %2546 = vmatprep.subr.bf16.mxu1 %v706_v43  ;;  %v429_v50 = vadd.f32 %v428_v49, %v3671_v44  ;;  %v707_v44 = vmul.bf16 %v3723_v28, %v3700_v10  ;;  %v713_v10 = vmul.bf16 %v3698_v9, %v3725_v30 }
 0x1be   :  { %v503_v54 = vmul.f32 0.35355338, %v427_v48  ;;  %v3825_v37 = vrot.slane %v3660_v40, %v225_v36 }
 0x1bf   :  { %v3745_v59 = vpack.c.bf16 %v429_v50, %v425_v45  ;;  %v723_v45 = vmul.bf16 %v3723_v28, %v3725_v30 }
 0x1c0   :  { %v3747_v60 = vpack.c.bf16 %v503_v54, %v502_v47  ;;  %v2810_v47 = vpop.f32.mrb[0].mxu1 }
 0x1c1   :  { %v736_v33 = vmul.bf16 %v3677_v52, %v3745_v59  ;;  %v728_v34 = vmul.bf16 %v3679_v53, %v3745_v59  ;;  %v737_v35 = vmul.bf16 %v3683_v57, %v3745_v59  ;;  %v729_v43 = vmul.bf16 %v3698_v9, %v3745_v59  ;;  %v465_v48 = vpop.f32.mrb[1].mxu1 }
 0x1c2   :  { %v738_v46 = vmul.bf16 %v3702_v11, %v3745_v59  ;;  %v474_v40 = vadd.f32 %v2810_v47, %v3825_v37  ;;  %v466_v49 = vadd.f32 %v465_v48, %v3825_v37  ;;  %v2811_v50 = vpop.f32.mrb[2].mxu1  ;;  %v549_v47 = vld [vmem:[%s4418_s6 + $0x8] sm:$0xff] }
 0x1c3   :  { %v477_v54 = vadd.f32 %v2811_v50, %v3825_v37  ;;  %v581_v48 = vld [vmem:[#allocation11 + $0x8] sm:$0xff] }
 0x1c4   :  { %2531 = vmatpush3.bf16.xpose.msra.mxu0 %v683_v61  ;;  %2547 = vmatpush3.bf16.xpose.msra.mxu1 %v698_v42  ;;  %v468_v61 = vpop.f32.mrb[3].mxu1 }
 0x1c5   :  { %2532 = vmatprep.subr.bf16.mxu0 %v692_v62  ;;  %2548 = vmatprep.subr.bf16.mxu1 %v707_v44  ;;  %v469_v42 = vadd.f32 %v468_v61, %v3825_v37  ;;  %v3839_v62 = vpack.c.bf16 %v477_v54, %v474_v40  ;;  %v715_v44 = vmul.bf16 %v3741_v51, %v3725_v30  ;;  %v567_v40 = vld [vmem:[%s4418_s6 + $0x98] sm:$0xff]  ;;  %v550_v61 = vld [vmem:[%s4418_s6 + $0x10] sm:$0xff] }
 0x1cc   :  { %2533 = vmatpush3.bf16.xpose.msra.mxu0 %v684_v2  ;;  %2549 = vmatpush3.bf16.xpose.msra.mxu1 %v699_v3  ;;  %v730_v2 = vmul.bf16 %v3721_v26, %v3745_v59  ;;  %v3845_v3 = vpack.c.bf16 %v469_v42, %v466_v49  ;;  %v583_v49 = vld [vmem:[#allocation11 + $0x18] sm:$0xff] }
 0x1cd   :  { %2534 = vmatprep.subr.bf16.mxu0 %v693_v4  ;;  %2550 = vmatprep.subr.bf16.mxu1 %v708_v5  ;;  %v724_v4 = vmul.bf16 %v3743_v55, %v3725_v30  ;;  %v739_v5 = vmul.bf16 %v3723_v28, %v3745_v59  ;;  %v551_v42 = vld [vmem:[%s4418_s6 + $0x18] sm:$0xff] }
 0x1d4   :  { %2535 = vmatpush3.bf16.xpose.msra.mxu0 %v685_v8  ;;  %2551 = vmatpush3.bf16.xpose.msra.mxu1 %v700_v13  ;;  %v2814_v8 = vpop.f32.mrb[4].mxu1 }
 0x1d5   :  { %2536 = vmatprep.subr.bf16.mxu0 %v694_v14  ;;  %2552 = vmatprep.subr.bf16.mxu1 %v709_v15  ;;  %v490_v13 = vadd.f32 %v2814_v8, %v3825_v37  ;;  %v3852_v14 = vpop.f32.mrb[5].mxu1  ;;  %v2846_v8 = vpack.c.bf16 %v551_v42, %v550_v61  ;;  %v578_v61 = vld [vmem:[%s4418_s6 + $0xf0] sm:$0xff]  ;;  %v579_v42 = vld [vmem:[%s4418_s6 + $0xf8] sm:$0xff] }
 0x1d6   :  { %v2815_v15 = vpop.f32.mrb[6].mxu1 }
 0x1dc   :  { %2537 = vmatpush3.bf16.xpose.msra.mxu0 %v686_v18  ;;  %2553 = vmatpush3.bf16.xpose.msra.mxu1 %v701_v19  ;;  %v493_v18 = vadd.f32 %v2815_v15, %v3825_v37 }
 0x1dd   :  { %2538 = vmatprep.subr.bf16.mxu0 %v695_v20  ;;  %2554 = vmatprep.subr.bf16.mxu1 %v710_v21  ;;  %v716_v20 = vmul.bf16 %v3757_v63, %v3725_v30  ;;  %v731_v21 = vmul.bf16 %v3741_v51, %v3745_v59 }
 0x1de   :  { %v3855_v19 = vpack.c.bf16 %v493_v18, %v490_v13  ;;  %v552_v13 = vld [vmem:[%s4418_s6 + $0x20] sm:$0xff] }
 0x1df   :  { %v580_v18 = vld [vmem:[#allocation11] sm:$0xff] }
 0x1e4   :  { %2539 = vmatpush3.bf16.xpose.msra.mxu0 %v687_v24  ;;  %2555 = vmatpush3.bf16.xpose.msra.mxu1 %v702_v25  ;;  %v740_v24 = vmul.bf16 %v3743_v55, %v3745_v59  ;;  %v717_v25 = vmul.bf16 %v3769_v6, %v3725_v30 }
 0x1e5   :  { %2556 = vmatprep.subr.bf16.mxu1 %v711_v27  ;;  %2560 = vmatprep.subr.bf16.mxu0 %v720_v23  ;;  %v725_v23 = vmul.bf16 %v3759_v1, %v3725_v30  ;;  %v732_v27 = vmul.bf16 %v3757_v63, %v3745_v59 }
 0x1eb   :  { %2541 = vmatmul.mubr.bf16.vlgmr.msra.gmra.mrb[16].mxu0 %v3685_v58  ;;  %v722_v58 = vmul.bf16 %v3702_v11, %v3725_v30 }
 0x1ec   :  { %2557 = vmatpush3.bf16.xpose.msra.mxu1 %v703_v29  ;;  %2561 = vmatpush3.bf16.xpose.msra.mxu0 %v712_v32  ;;  %v726_v29 = vmul.bf16 %v3771_v7, %v3725_v30  ;;  %v741_v32 = vmul.bf16 %v3759_v1, %v3745_v59 }
 0x1ed   :  { %2576 = vmatprep.mubr.bf16.mxu0 %v3727_v31  ;;  %2562 = vmatprep.subr.bf16.mxu0 %v721_v56  ;;  %v733_v56 = vmul.bf16 %v3769_v6, %v3745_v59 }
 0x1ee   :  { %2578 = vmatprep.subr.bf16.mxu1 %v736_v33  ;;  %v718_v33 = vmul.bf16 %v3781_v16, %v3725_v30 }
 0x1f3   :  { %2559 = vmatmul.mubr.bf16.vlgmr.msra.gmra.mrb[8].mxu1 %v3704_v12  ;;  %v714_v12 = vmul.bf16 %v3721_v26, %v3725_v30 }
 0x1f4   :  { %2563 = vmatpush3.bf16.xpose.msra.mxu0 %v713_v10  ;;  %2579 = vmatpush3.bf16.xpose.msra.mxu1 %v728_v34  ;;  %v727_v10 = vmul.bf16 %v3783_v17, %v3725_v30  ;;  %v742_v34 = vmul.bf16 %v3771_v7, %v3745_v59 }
 0x1f5   :  { %2594 = vmatprep.mubr.bf16.mxu1 %v3747_v60  ;;  %2564 = vmatprep.subr.bf16.mxu0 %v722_v58  ;;  %v564_v58 = vld [vmem:[%s4418_s6 + $0x80] sm:$0xff] }
 0x1f6   :  { %2580 = vmatprep.subr.bf16.mxu1 %v737_v35  ;;  %v565_v35 = vld [vmem:[%s4418_s6 + $0x88] sm:$0xff] }
 0x1f7   :  { %v2840_v36 = vpack.c.bf16 %v565_v35, %v564_v58  ;;  %v556_v58 = vld [vmem:[%s4418_s6 + $0x40] sm:$0xff]  ;;  %v557_v35 = vld [vmem:[%s4418_s6 + $0x48] sm:$0xff] }
 0x1fc   :  { %2565 = vmatpush3.bf16.xpose.msra.mxu0 %v714_v12  ;;  %2581 = vmatpush3.bf16.xpose.msra.mxu1 %v729_v43  ;;  %v719_v12 = vmul.bf16 %v3793_v22, %v3725_v30  ;;  %v734_v43 = vmul.bf16 %v3781_v16, %v3745_v59  ;;  %v566_v30 = vld [vmem:[%s4418_s6 + $0x90] sm:$0xff] }
 0x1fd   :  { %2566 = vmatprep.subr.bf16.mxu0 %v723_v45  ;;  %2582 = vmatprep.subr.bf16.mxu1 %v738_v46  ;;  %v743_v45 = vmul.bf16 %v3783_v17, %v3745_v59  ;;  %v548_v46 = vld [vmem:[%s4418_s6] sm:$0xff]  ;;  %v2844_v54 = vpack.c.bf16 %v567_v40, %v566_v30  ;;  %v577_v30 = vld [vmem:[%s4418_s6 + $0xe8] sm:$0xff] }
 0x1fe   :  { %v2842_v50 = vpack.c.bf16 %v549_v47, %v548_v46  ;;  %v559_v46 = vld [vmem:[%s4418_s6 + $0x58] sm:$0xff]  ;;  %v576_v47 = vld [vmem:[%s4418_s6 + $0xe0] sm:$0xff] }
 0x204   :  { %2567 = vmatpush3.bf16.xpose.msra.mxu0 %v715_v44  ;;  %2583 = vmatpush3.bf16.xpose.msra.mxu1 %v730_v2  ;;  %v2872_v44 = vpack.c.bf16 %v583_v49, %v581_v48  ;;  %v735_v2 = vmul.bf16 %v3793_v22, %v3745_v59  ;;  %v553_v59 = vld [vmem:[%s4418_s6 + $0x28] sm:$0xff]  ;;  %v2864_v48 = vpack.c.bf16 %v577_v30, %v576_v47  ;;  %v560_v49 = vld [vmem:[%s4418_s6 + $0x60] sm:$0xff] }
 0x205   :  { %2568 = vmatprep.subr.bf16.mxu0 %v724_v4  ;;  %2584 = vmatprep.subr.bf16.mxu1 %v739_v5  ;;  %v568_v4 = vld [vmem:[%s4418_s6 + $0xa0] sm:$0xff]  ;;  %v569_v5 = vld [vmem:[%s4418_s6 + $0xa8] sm:$0xff] }
 0x206   :  { %v2848_v15 = vpack.c.bf16 %v569_v5, %v568_v4  ;;  %v2868_v5 = vpack.c.bf16 %v579_v42, %v578_v61 }
 0x20c   :  { %2569 = vmatpush3.bf16.xpose.msra.mxu0 %v716_v20  ;;  %2585 = vmatpush3.bf16.xpose.msra.mxu1 %v731_v21  ;;  %v582_v20 = vld [vmem:[#allocation11 + $0x10] sm:$0xff] }
 0x20d   :  { %2570 = vmatprep.subr.bf16.mxu0 %v725_v23  ;;  %2586 = vmatprep.subr.bf16.mxu1 %v740_v24  ;;  %v571_v21 = vld [vmem:[%s4418_s6 + $0xb8] sm:$0xff]  ;;  %v2850_v23 = vpack.c.bf16 %v553_v59, %v552_v13  ;;  %v2874_v24 = vpack.c.bf16 %v582_v20, %v580_v18 }
 0x214   :  { %2571 = vmatpush3.bf16.xpose.msra.mxu0 %v717_v25  ;;  %2587 = vmatpush3.bf16.xpose.msra.mxu1 %v732_v27  ;;  %v554_v27 = vld [vmem:[%s4418_s6 + $0x30] sm:$0xff] }
 0x215   :  { %2572 = vmatprep.subr.bf16.mxu0 %v726_v29  ;;  %2588 = vmatprep.subr.bf16.mxu1 %v741_v32  ;;  %v555_v29 = vld [vmem:[%s4418_s6 + $0x38] sm:$0xff]  ;;  %v752_v32 = vmul.bf16 %v3677_v52, %v3845_v3 }
 0x21c   :  { %2573 = vmatpush3.bf16.xpose.msra.mxu0 %v718_v33  ;;  %2589 = vmatpush3.bf16.xpose.msra.mxu1 %v733_v56  ;;  %v572_v33 = vld [vmem:[%s4418_s6 + $0xc0] sm:$0xff]  ;;  %v573_v56 = vld [vmem:[%s4418_s6 + $0xc8] sm:$0xff] }
 0x21d   :  { %2574 = vmatprep.subr.bf16.mxu0 %v727_v10  ;;  %2590 = vmatprep.subr.bf16.mxu1 %v742_v34  ;;  %v2854_v10 = vpack.c.bf16 %v555_v29, %v554_v27  ;;  %v2856_v34 = vpack.c.bf16 %v573_v56, %v572_v33 }
 0x224   :  { %2575 = vmatpush3.bf16.xpose.msra.mxu0 %v719_v12  ;;  %2591 = vmatpush3.bf16.xpose.msra.mxu1 %v734_v43  ;;  %v2858_v12 = vpack.c.bf16 %v557_v35, %v556_v58 }
 0x225   :  { %2592 = vmatprep.subr.bf16.mxu1 %v743_v45  ;;  %2841 = vmatprep.subr.bf16.mxu0 %v2840_v36  ;;  %v574_v36 = vld [vmem:[%s4418_s6 + $0xd0] sm:$0xff] }
 0x226   :  { %v558_v45 = vld [vmem:[%s4418_s6 + $0x50] sm:$0xff] }
 0x227   :  { %v2862_v40 = vpack.c.bf16 %v559_v46, %v558_v45 }
 0x22b   :  { %2577 = vmatmul.mubr.bf16.vlgmr.msra.gmra.mrb[20].mxu0 %v3727_v31  ;;  %v570_v31 = vld [vmem:[%s4418_s6 + $0xb0] sm:$0xff] }
 0x22c   :  { %2593 = vmatpush3.bf16.xpose.msra.mxu1 %v735_v2  ;;  %2843 = vmatpush3.bf16.msra.mxu0 %v2842_v50  ;;  %v2852_v25 = vpack.c.bf16 %v571_v21, %v570_v31  ;;  %v561_v50 = vld [vmem:[%s4418_s6 + $0x68] sm:$0xff] }
 0x22d   :  { %2845 = vmatprep.subr.bf16.mxu0 %v2844_v54  ;;  %2873 = vmatprep.subr.bf16.mxu1 %v2872_v44  ;;  %v482_v54 = vadd.f32 %v3852_v14, %v3825_v37  ;;  %v484_v44 = vpop.f32.mrb[7].mxu1  ;;  %v2866_v4 = vpack.c.bf16 %v561_v50, %v560_v49  ;;  %v563_v14 = vld [vmem:[%s4418_s6 + $0x78] sm:$0xff] }
 0x22e   :  { %v485_v2 = vadd.f32 %v484_v44, %v3825_v37  ;;  %v768_v37 = vmul.bf16 %v3677_v52, %v3839_v62 }
 0x230   :  { %2847 = vmatpush3.bf16.msra.mxu0 %v2846_v8  ;;  %v562_v8 = vld [vmem:[%s4418_s6 + $0x70] sm:$0xff]  ;;  %v3992_v13 = vpack.c.bf16 %v485_v2, %v482_v54 }
 0x231   :  { %2849 = vmatprep.subr.bf16.mxu0 %v2848_v15  ;;  %v2870_v15 = vpack.c.bf16 %v563_v14, %v562_v8 }
 0x233   :  { %2595 = vmatmul.mubr.bf16.vlgmr.msra.gmra.mrb[12].mxu1 %v3747_v60  ;;  %v575_v60 = vld [vmem:[%s4418_s6 + $0xd8] sm:$0xff] }
 0x234   :  { %2851 = vmatpush3.bf16.msra.mxu0 %v2850_v23  ;;  %2875 = vmatpush1.bf16.msra.mxu1 %v2874_v24  ;;  %v2860_v43 = vpack.c.bf16 %v575_v60, %v574_v36 }
 0x235   :  { %2853 = vmatprep.subr.bf16.mxu0 %v2852_v25  ;;  %2652 = vmatprep.subr.bf16.mxu1 %v752_v32 }
 0x238   :  { %2855 = vmatpush3.bf16.msra.mxu0 %v2854_v10 }
 0x239   :  { %2857 = vmatprep.subr.bf16.mxu0 %v2856_v34 }
 0x23c   :  { %2859 = vmatpush3.bf16.msra.mxu0 %v2858_v12 }
 0x23d   :  { %2861 = vmatprep.subr.bf16.mxu0 %v2860_v43 }
 0x240   :  { %2863 = vmatpush3.bf16.msra.mxu0 %v2862_v40 }
 0x241   :  { %2865 = vmatprep.subr.bf16.mxu0 %v2864_v48 }
 0x244   :  { %2867 = vmatpush3.bf16.msra.mxu0 %v2866_v4 }
 0x245   :  { %2869 = vmatprep.subr.bf16.mxu0 %v2868_v5 }
 0x248   :  { %2871 = vmatpush3.bf16.msra.mxu0 %v2870_v15 }
 0x249   :  { %2674 = vmatprep.subr.bf16.mxu0 %v768_v37 }
 0x2be   :  { %v842_v59 = vpop.f32.mrb[16].mxu0 }
 0x2bf   :  { %v844_v18 = vpop.f32.mrb[17].mxu0 }
 0x2c0   :  { %v846_v20 = vpop.f32.mrb[18].mxu0  ;;  %v980_v31 = vmax.f32 %v842_v59, %v844_v18 }
 0x2c1   :  { %v848_v21 = vpop.f32.mrb[19].mxu0 }
 0x2c2   :  { %981 = vmax.xlane.f32.xlu0 %v980_v31  ;;  %v983_v23 = vmax.f32 %v846_v20, %v848_v21 }
 0x2c6   :  { %v885_v24 = vpop.f32.mrb[8].mxu1  ;;  %984 = vmax.xlane.f32.xlu0 %v983_v23 }
 0x2c7   :  { %v887_v25 = vpop.f32.mrb[9].mxu1 }
 0x2c8   :  { %v889_v27 = vpop.f32.mrb[10].mxu1  ;;  %v986_v29 = vmax.f32 %v885_v24, %v887_v25 }
 0x2c9   :  { %v891_v32 = vpop.f32.mrb[11].mxu1 }
 0x2ca   :  { %987 = vmax.xlane.f32.xlu1 %v986_v29  ;;  %v989_v33 = vmax.f32 %v889_v27, %v891_v32 }
 0x2ce   :  { %990 = vmax.xlane.f32.xlu1 %v989_v33  ;;  %v770_v33 = vmul.bf16 %v3702_v11, %v3839_v62 }
 0x2fe   :  { %v3996_v56 = vpop.f32.mrb[20].mxu0 }
 0x2ff   :  { %v3998_v10 = vpop.f32.mrb[21].mxu0 }
 0x300   :  { %v4000_v34 = vpop.f32.mrb[22].mxu0  ;;  %v992_v58 = vmax.f32 %v3996_v56, %v3998_v10 }
 0x301   :  { %v4004_v35 = vpop.f32.mrb[23].mxu0 }
 0x302   :  { %993 = vmax.xlane.f32.xlu0 %v992_v58  ;;  %v995_v36 = vmax.f32 %v4000_v34, %v4004_v35 }
 0x304   :  { %996 = vmax.xlane.f32.xlu1 %v995_v36 }
 0x306   :  { %v4008_v60 = vpop.f32.mrb[12].mxu1 }
 0x307   :  { %v4010_v12 = vpop.f32.mrb[13].mxu1 }
 0x308   :  { %v4012_v43 = vpop.f32.mrb[14].mxu1  ;;  %v998_v45 = vmax.f32 %v4008_v60, %v4010_v12 }
 0x309   :  { %v4016_v46 = vpop.f32.mrb[15].mxu1 }
 0x30a   :  { %999 = vmax.xlane.f32.xlu0 %v998_v45  ;;  %v1001_v47 = vmax.f32 %v4012_v43, %v4016_v46  ;;  %v762_v45 = vmul.bf16 %v3721_v26, %v3839_v62 }
 0x30c   :  { %1002 = vmax.xlane.f32.xlu1 %v1001_v47  ;;  %v771_v47 = vmul.bf16 %v3723_v28, %v3839_v62 }
 0x34f   :  { %v982_v30 = vpop.xlane.xlu0 %981 }
 0x350   :  { %v1004_v40 = vsub.f32 %v842_v59, %v982_v30  ;;  %v1005_v48 = vsub.f32 %v844_v18, %v982_v30 }
 0x352   :  { %v1020_v49 = vmul.f32 1.442695, %v1004_v40  ;;  %v1022_v50 = vmul.f32 1.442695, %v1005_v48  ;;  %v763_v48 = vmul.bf16 %v3741_v51, %v3839_v62 }
 0x353   :  { %v985_v54 = vpop.xlane.xlu0 %984 }
 0x354   :  { %2990 = vpow2.f32 %v1020_v49  ;;  %v1006_v61 = vsub.f32 %v846_v20, %v985_v54  ;;  %v1007_v42 = vsub.f32 %v848_v21, %v985_v54  ;;  %v772_v49 = vmul.bf16 %v3743_v55, %v3839_v62 }
 0x355   :  { %2992 = vpow2.f32 %v1022_v50  ;;  %v764_v50 = vmul.bf16 %v3757_v63, %v3839_v62  ;;  %v773_v54 = vmul.bf16 %v3759_v1, %v3839_v62 }
 0x356   :  { %v1024_v44 = vmul.f32 1.442695, %v1006_v61  ;;  %v1026_v2 = vmul.f32 1.442695, %v1007_v42  ;;  %v765_v61 = vmul.bf16 %v3769_v6, %v3839_v62  ;;  %v774_v42 = vmul.bf16 %v3771_v7, %v3839_v62 }
 0x357   :  { %v988_v4 = vpop.xlane.xlu1 %987 }
 0x358   :  { %2994 = vpow2.f32 %v1024_v44  ;;  %v1008_v5 = vsub.f32 %v885_v24, %v988_v4  ;;  %v1009_v8 = vsub.f32 %v887_v25, %v988_v4  ;;  %v760_v24 = vmul.bf16 %v3679_v53, %v3839_v62 }
 0x359   :  { %2996 = vpow2.f32 %v1026_v2  ;;  %v769_v25 = vmul.bf16 %v3683_v57, %v3839_v62  ;;  %v766_v44 = vmul.bf16 %v3781_v16, %v3839_v62  ;;  %v775_v2 = vmul.bf16 %v3783_v17, %v3839_v62 }
 0x35a   :  { %v1028_v14 = vmul.f32 1.442695, %v1008_v5  ;;  %v1030_v15 = vmul.f32 1.442695, %v1009_v8  ;;  %v767_v4 = vmul.bf16 %v3793_v22, %v3839_v62  ;;  %v800_v5 = vmul.bf16 %v3677_v52, %v3855_v19 }
 0x35b   :  { %v991_v37 = vpop.xlane.xlu1 %990 }
 0x35c   :  { %2998 = vpow2.f32 %v1028_v14  ;;  %v1010_v59 = vsub.f32 %v889_v27, %v991_v37  ;;  %v1011_v18 = vsub.f32 %v891_v32, %v991_v37  ;;  %v761_v32 = vmul.bf16 %v3698_v9, %v3839_v62 }
 0x35d   :  { %3000 = vpow2.f32 %v1030_v15 }
 0x35e   :  { %v4020_v31 = vpop.eup %2990  ;;  %v1032_v23 = vmul.f32 1.442695, %v1010_v59  ;;  %v1034_v20 = vmul.f32 1.442695, %v1011_v18 }
 0x35f   :  { %v4022_v21 = vpop.eup %2992 }
 0x360   :  { %3002 = vpow2.f32 %v1032_v23  ;;  %1116 = vmatprep.mubr.f32.mxu0 %v4022_v21 }
 0x361   :  { %3004 = vpow2.f32 %v1034_v20  ;;  %1117 = vmatmul.mubr.f32.vlgmr.msra.gmra.mrb[24].mxu0 %v4020_v31 }
 0x362   :  { %v4030_v27 = vpop.eup %2994  ;;  %2675 = vmatpush3.bf16.msra.mxu0 %v760_v24 }
 0x363   :  { %v4032_v29 = vpop.eup %2996  ;;  %2676 = vmatprep.subr.bf16.mxu0 %v769_v25 }
 0x364   :  { %1121 = vmatprep.mubr.f32.mxu0 %v4032_v29 }
 0x365   :  { %1122 = vmatmul.mubr.f32.gmra.mrb[26].mxu0 %v4030_v27 }
 0x366   :  { %v4040_v58 = vpop.eup %2998  ;;  %2677 = vmatpush3.bf16.msra.mxu0 %v761_v32 }
 0x367   :  { %v4042_v36 = vpop.eup %3000  ;;  %2678 = vmatprep.subr.bf16.mxu0 %v770_v33 }
 0x368   :  { %1126 = vmatprep.mubr.f32.mxu0 %v4042_v36 }
 0x369   :  { %1127 = vmatmul.mubr.f32.gmra.mrb[28].mxu0 %v4040_v58 }
 0x36a   :  { %v4050_v30 = vpop.eup %3002  ;;  %2679 = vmatpush3.bf16.msra.mxu0 %v762_v45 }
 0x36b   :  { %v4052_v40 = vpop.eup %3004  ;;  %2680 = vmatprep.subr.bf16.mxu0 %v771_v47 }
 0x36c   :  { %1131 = vmatprep.mubr.f32.mxu0 %v4052_v40 }
 0x36d   :  { %1132 = vmatmul.mubr.f32.gmra.mrb[30].mxu0 %v4050_v30 }
 0x36e   :  { %2681 = vmatpush3.bf16.msra.mxu0 %v763_v48 }
 0x36f   :  { %2682 = vmatprep.subr.bf16.mxu0 %v772_v49 }
 0x372   :  { %2683 = vmatpush3.bf16.msra.mxu0 %v764_v50 }
 0x373   :  { %2684 = vmatprep.subr.bf16.mxu0 %v773_v54 }
 0x376   :  { %2685 = vmatpush3.bf16.msra.mxu0 %v765_v61  ;;  %v3374_v61 = vmov 0.0  }
 0x377   :  { %2686 = vmatprep.subr.bf16.mxu0 %v774_v42  ;;  %1286 = vmatprep.mubr.f32.mxu1 %v3374_v61 }
 0x37a   :  { %2687 = vmatpush3.bf16.msra.mxu0 %v766_v44 }
 0x37b   :  { %2688 = vmatprep.subr.bf16.mxu0 %v775_v2 }
 0x37e   :  { %2689 = vmatpush3.bf16.msra.mxu0 %v767_v4 }
 0x37f   :  { %2718 = vmatprep.subr.bf16.mxu0 %v800_v5 }
 0x38f   :  { %v994_v8 = vpop.xlane.xlu0 %993 }
 0x390   :  { %v1012_v14 = vsub.f32 %v3996_v56, %v994_v8  ;;  %v1013_v15 = vsub.f32 %v3998_v10, %v994_v8 }
 0x391   :  { %v997_v37 = vpop.xlane.xlu1 %996 }
 0x392   :  { %v1036_v59 = vmul.f32 1.442695, %v1012_v14  ;;  %v1038_v18 = vmul.f32 1.442695, %v1013_v15  ;;  %v1014_v23 = vsub.f32 %v4000_v34, %v997_v37  ;;  %v1015_v20 = vsub.f32 %v4004_v35, %v997_v37 }
 0x394   :  { %3006 = vpow2.f32 %v1036_v59  ;;  %v1042_v24 = vmul.f32 1.442695, %v1015_v20  ;;  %v1040_v62 = vmul.f32 1.442695, %v1014_v23 }
 0x395   :  { %3008 = vpow2.f32 %v1038_v18 }
 0x396   :  { %3010 = vpow2.f32 %v1042_v24 }
 0x397   :  { %v1000_v52 = vpop.xlane.xlu0 %999  ;;  %3012 = vpow2.f32 %v1040_v62 }
 0x398   :  { %v1016_v25 = vsub.f32 %v4008_v60, %v1000_v52  ;;  %v1017_v32 = vsub.f32 %v4010_v12, %v1000_v52 }
 0x399   :  { %v1003_v56 = vpop.xlane.xlu1 %1002 }
 0x39a   :  { %v1044_v10 = vmul.f32 1.442695, %v1016_v25  ;;  %v1046_v33 = vmul.f32 1.442695, %v1017_v32  ;;  %v1018_v45 = vsub.f32 %v4012_v43, %v1003_v56  ;;  %v1019_v34 = vsub.f32 %v4016_v46, %v1003_v56 }
 0x39c   :  { %3014 = vpow2.f32 %v1044_v10  ;;  %v1050_v35 = vmul.f32 1.442695, %v1019_v34  ;;  %v1048_v48 = vmul.f32 1.442695, %v1018_v45  ;;  %v744_v34 = vmul.bf16 %v3679_v53, %v3845_v3 }
 0x39d   :  { %3016 = vpow2.f32 %v1046_v33  ;;  %v754_v53 = vmul.bf16 %v3702_v11, %v3845_v3 }
 0x39e   :  { %v4084_v47 = vpop.eup %3006  ;;  %3018 = vpow2.f32 %v1050_v35 }
 0x39f   :  { %v4086_v49 = vpop.eup %3008  ;;  %3020 = vpow2.f32 %v1048_v48  ;;  %v753_v48 = vmul.bf16 %v3683_v57, %v3845_v3 }
 0x3a0   :  { %1136 = vmatprep.mubr.f32.mxu0 %v4086_v49  ;;  %v4089_v60 = vpop.eup %3010 }
 0x3a1   :  { %1137 = vmatmul.mubr.f32.gmra.mrb[32].mxu0 %v4084_v47  ;;  %v4093_v12 = vpop.eup %3012 }
 0x3a2   :  { %1141 = vmatprep.mubr.f32.mxu0 %v4089_v60 }
 0x3a5   :  { %1142 = vmatmul.mubr.f32.gmra.mrb[34].mxu0 %v4093_v12 }
 0x3a6   :  { %v4096_v43 = vpop.eup %3014 }
 0x3a7   :  { %v4098_v46 = vpop.eup %3016 }
 0x3a8   :  { %1146 = vmatprep.mubr.f32.mxu0 %v4098_v46  ;;  %v4101_v50 = vpop.eup %3018 }
 0x3a9   :  { %1147 = vmatmul.mubr.f32.gmra.mrb[36].mxu0 %v4096_v43  ;;  %v4105_v54 = vpop.eup %3020 }
 0x3aa   :  { %1151 = vmatprep.mubr.f32.mxu0 %v4101_v50 }
 0x3ad   :  { %1152 = vmatmul.mubr.f32.gmra.mrb[38].mxu0 %v4105_v54 }
 0x434   :  { %v2628_v42 = vpop.f32.mrb[24].mxu0 }
 0x435   :  { %v2629_v44 = vpop.f32.mrb[25].mxu0 }
 0x436   :  { %v2630_v2 = vadd.f32 %v2629_v44, %v2628_v42 }
 0x438   :  { %v1157_v4 = vmax.f32 %v2630_v2, 1e-30  ;;  %v2631_v5 = vpop.f32.mrb[26].mxu0 }
 0x439   :  { %v2632_v8 = vpop.f32.mrb[27].mxu0 }
 0x43a   :  { %3022 = vrcp.f32 %v1157_v4  ;;  %v2633_v14 = vadd.f32 %v2632_v8, %v2631_v5 }
 0x43c   :  { %v1158_v15 = vmax.f32 %v2633_v14, 1e-30  ;;  %v2634_v37 = vpop.f32.mrb[28].mxu0 }
 0x43d   :  { %v2635_v59 = vpop.f32.mrb[29].mxu0 }
 0x43e   :  { %3024 = vrcp.f32 %v1158_v15  ;;  %v2636_v18 = vadd.f32 %v2635_v59, %v2634_v37  ;;  %v747_v59 = vmul.bf16 %v3741_v51, %v3845_v3  ;;  %v749_v51 = vmul.bf16 %v3769_v6, %v3845_v3 }
 0x440   :  { %v1159_v23 = vmax.f32 %v2636_v18, 1e-30  ;;  %v2637_v20 = vpop.f32.mrb[30].mxu0  ;;  %v756_v18 = vmul.bf16 %v3743_v55, %v3845_v3  ;;  %v750_v55 = vmul.bf16 %v3781_v16, %v3845_v3 }
 0x441   :  { %v2638_v24 = vpop.f32.mrb[31].mxu0 }
 0x442   :  { %3026 = vrcp.f32 %v1159_v23  ;;  %v2639_v62 = vadd.f32 %v2638_v24, %v2637_v20  ;;  %v759_v20 = vmul.bf16 %v3783_v17, %v3845_v3 }
 0x444   :  { %v3023_v52 = vpop.eup %3022  ;;  %v1160_v25 = vmax.f32 %v2639_v62, 1e-30 }
 0x445   :  { %v1173_v32 = vmul.f32 %v3023_v52, %v1157_v4  ;;  %v745_v4 = vmul.bf16 %v3698_v9, %v3845_v3  ;;  %v755_v9 = vmul.bf16 %v3723_v28, %v3845_v3  ;;  %v757_v28 = vmul.bf16 %v3759_v1, %v3845_v3  ;;  %v3102_v1 = vld [vmem:[#allocation10 + $0x40] sm:$0xff]  }
 0x446   :  { %3028 = vrcp.f32 %v1160_v25  ;;  %v784_v24 = vmul.bf16 %v3102_v1, %v3992_v13 }
 0x447   :  { %v1181_v56 = vsub.f32 2.0, %v1173_v32 }
 0x448   :  { %v3025_v10 = vpop.eup %3024 }
 0x449   :  { %v1189_v33 = vmul.f32 %v3023_v52, %v1181_v56  ;;  %v1174_v45 = vmul.f32 %v3025_v10, %v1158_v15  ;;  %v746_v15 = vmul.bf16 %v3721_v26, %v3845_v3  ;;  %v748_v26 = vmul.bf16 %v3757_v63, %v3845_v3 }
 0x44a   :  { %v751_v63 = vmul.bf16 %v3793_v22, %v3845_v3 }
 0x44b   :  { %v1182_v35 = vsub.f32 2.0, %v1174_v45  ;;  %2458 = vmatmul.mubr.msk.f32.vlgmr.msra.gmra.mrb[16].mxu1 %vm1197_vm0, %v1189_v33 }
 0x44c   :  { %v3027_v42 = vpop.eup %3026  ;;  %2653 = vmatpush3.bf16.msra.mxu1 %v744_v34  ;;  %1292 = vmatprep.mubr.f32.mxu1 %v3374_v61 }
 0x44d   :  { %v1190_v44 = vmul.f32 %v3025_v10, %v1182_v35  ;;  %v1175_v2 = vmul.f32 %v3027_v42, %v1159_v23  ;;  %2654 = vmatprep.subr.bf16.mxu1 %v753_v48  ;;  %v758_v23 = vmul.bf16 %v3771_v7, %v3845_v3 }
 0x44f   :  { %v1183_v5 = vsub.f32 2.0, %v1175_v2  ;;  %2459 = vmatmul.mubr.msk.f32.gmra.mrb[18].mxu1 %vm1197_vm0, %v1190_v44 }
 0x450   :  { %v3029_v8 = vpop.eup %3028  ;;  %2655 = vmatpush3.bf16.msra.mxu1 %v745_v4  ;;  %1298 = vmatprep.mubr.f32.mxu1 %v3374_v61 }
 0x451   :  { %v1191_v57 = vmul.f32 %v3027_v42, %v1183_v5  ;;  %v1176_v14 = vmul.f32 %v3029_v8, %v1160_v25  ;;  %2656 = vmatprep.subr.bf16.mxu1 %v754_v53 }
 0x453   :  { %v1184_v37 = vsub.f32 2.0, %v1176_v14  ;;  %2460 = vmatmul.mubr.msk.f32.gmra.mrb[20].mxu1 %vm1197_vm0, %v1191_v57 }
 0x454   :  { %2657 = vmatpush3.bf16.msra.mxu1 %v746_v15  ;;  %1304 = vmatprep.mubr.f32.mxu1 %v3374_v61 }
 0x455   :  { %v1192_v11 = vmul.f32 %v3029_v8, %v1184_v37  ;;  %2658 = vmatprep.subr.bf16.mxu1 %v755_v9 }
 0x457   :  { %2461 = vmatmul.mubr.msk.f32.gmra.mrb[22].mxu1 %vm1197_vm0, %v1192_v11 }
 0x458   :  { %2659 = vmatpush3.bf16.msra.mxu1 %v747_v59  ;;  %1310 = vmatprep.mubr.f32.mxu1 %v3374_v61 }
 0x459   :  { %2660 = vmatprep.subr.bf16.mxu1 %v756_v18 }
 0x45c   :  { %2661 = vmatpush3.bf16.msra.mxu1 %v748_v26 }
 0x45d   :  { %2662 = vmatprep.subr.bf16.mxu1 %v757_v28 }
 0x460   :  { %2663 = vmatpush3.bf16.msra.mxu1 %v749_v51 }
 0x461   :  { %2664 = vmatprep.subr.bf16.mxu1 %v758_v23 }
 0x464   :  { %2665 = vmatpush3.bf16.msra.mxu1 %v750_v55 }
 0x465   :  { %2666 = vmatprep.subr.bf16.mxu1 %v759_v20 }
 0x468   :  { %2667 = vmatpush3.bf16.msra.mxu1 %v751_v63 }
 0x469   :  { %2696 = vmatprep.subr.bf16.mxu1 %v784_v24 }
 0x474   :  { %v2640_v6 = vpop.f32.mrb[32].mxu0 }
 0x475   :  { %v2641_v7 = vpop.f32.mrb[33].mxu0 }
 0x476   :  { %v2642_v62 = vadd.f32 %v2641_v7, %v2640_v6 }
 0x478   :  { %v1161_v52 = vmax.f32 %v2642_v62, 1e-30  ;;  %v2643_v25 = vpop.f32.mrb[34].mxu0 }
 0x479   :  { %v2644_v32 = vpop.f32.mrb[35].mxu0 }
 0x47a   :  { %3030 = vrcp.f32 %v1161_v52  ;;  %v2645_v16 = vadd.f32 %v2644_v32, %v2643_v25  ;;  %v3104_v25 = vld [vmem:[#allocation10 + $0x48] sm:$0xff]  }
 0x47b   :  { %v785_v32 = vmul.bf16 %v3104_v25, %v3992_v13 }
 0x47c   :  { %v1162_v56 = vmax.f32 %v2645_v16, 1e-30  ;;  %v2646_v17 = vpop.f32.mrb[36].mxu0 }
 0x47d   :  { %v2647_v10 = vpop.f32.mrb[37].mxu0 }
 0x47e   :  { %3032 = vrcp.f32 %v1162_v56  ;;  %v2648_v33 = vadd.f32 %v2647_v10, %v2646_v17  ;;  %v3105_v17 = vld [vmem:[#allocation10 + $0x8] sm:$0xff]  }
 0x47f   :  { %v777_v10 = vmul.bf16 %v3105_v17, %v3992_v13 }
 0x480   :  { %v1163_v45 = vmax.f32 %v2648_v33, 1e-30  ;;  %v2649_v22 = vpop.f32.mrb[38].mxu0 }
 0x481   :  { %v2650_v3 = vpop.f32.mrb[39].mxu0 }
 0x482   :  { %3034 = vrcp.f32 %v1163_v45  ;;  %v2651_v34 = vadd.f32 %v2650_v3, %v2649_v22 }
 0x484   :  { %v3031_v35 = vpop.eup %3030  ;;  %v1164_v48 = vmax.f32 %v2651_v34, 1e-30 }
 0x485   :  { %v1177_v42 = vmul.f32 %v3031_v35, %v1161_v52 }
 0x486   :  { %3036 = vrcp.f32 %v1164_v48 }
 0x487   :  { %v1185_v44 = vsub.f32 2.0, %v1177_v42 }
 0x488   :  { %v3033_v2 = vpop.eup %3032 }
 0x489   :  { %v1193_v4 = vmul.f32 %v3031_v35, %v1185_v44  ;;  %v1178_v5 = vmul.f32 %v3033_v2, %v1162_v56  ;;  %v801_v35 = vmul.bf16 %v3104_v25, %v3855_v19  ;;  %v793_v44 = vmul.bf16 %v3105_v17, %v3855_v19 }
 0x48b   :  { %v1186_v53 = vsub.f32 2.0, %v1178_v5  ;;  %2462 = vmatmul.mubr.msk.f32.gmra.mrb[24].mxu1 %vm1197_vm0, %v1193_v4 }
 0x48c   :  { %v3035_v8 = vpop.eup %3034  ;;  %1316 = vmatprep.mubr.f32.mxu1 %v3374_v61 }
 0x48d   :  { %v1194_v57 = vmul.f32 %v3033_v2, %v1186_v53  ;;  %v1179_v14 = vmul.f32 %v3035_v8, %v1163_v45  ;;  %v3106_v45 = vld [vmem:[#allocation10 + $0x50] sm:$0xff]   ;;  %v3110_v2 = vld [vmem:[#allocation10 + $0x60] sm:$0xff]  }
 0x48e   :  { %v786_v22 = vmul.bf16 %v3106_v45, %v3992_v13  ;;  %v788_v4 = vmul.bf16 %v3110_v2, %v3992_v13  ;;  %v802_v5 = vmul.bf16 %v3106_v45, %v3855_v19  ;;  %v3111_v53 = vld [vmem:[#allocation10 + $0x20] sm:$0xff]  }
 0x48f   :  { %v1187_v15 = vsub.f32 2.0, %v1179_v14  ;;  %2463 = vmatmul.mubr.msk.f32.gmra.mrb[26].mxu1 %vm1197_vm0, %v1194_v57  ;;  %v3112_v14 = vld [vmem:[#allocation10 + $0x68] sm:$0xff]  }
 0x490   :  { %v3037_v37 = vpop.eup %3036  ;;  %1322 = vmatprep.mubr.f32.mxu1 %v3374_v61 }
 0x491   :  { %v1195_v9 = vmul.f32 %v3035_v8, %v1187_v15  ;;  %v1180_v11 = vmul.f32 %v3037_v37, %v1164_v48  ;;  %v3109_v48 = vld [vmem:[#allocation10 + $0x18] sm:$0xff]   ;;  %v780_v8 = vmul.bf16 %v3111_v53, %v3992_v13  ;;  %v789_v15 = vmul.bf16 %v3112_v14, %v3992_v13 }
 0x492   :  { %v779_v42 = vmul.bf16 %v3109_v48, %v3992_v13 }
 0x493   :  { %v1188_v59 = vsub.f32 2.0, %v1180_v11  ;;  %2464 = vmatmul.mubr.msk.f32.gmra.mrb[28].mxu1 %vm1197_vm0, %v1195_v9  ;;  %v3113_v9 = vld [vmem:[#allocation10 + $0x28] sm:$0xff]  }
 0x494   :  { %1328 = vmatprep.mubr.f32.mxu1 %v3374_v61  ;;  %v3103_v61 = vld [vmem:[#allocation10] sm:$0xff]   ;;  %v781_v11 = vmul.bf16 %v3113_v9, %v3992_v13 }
 0x495   :  { %v1196_v18 = vmul.f32 %v3037_v37, %v1188_v59  ;;  %v776_v52 = vmul.bf16 %v3103_v61, %v3992_v13  ;;  %v792_v34 = vmul.bf16 %v3103_v61, %v3855_v19  ;;  %v795_v59 = vmul.bf16 %v3109_v48, %v3855_v19 }
 0x497   :  { %2465 = vmatmul.mubr.msk.f32.gmra.mrb[30].mxu1 %vm1197_vm0, %v1196_v18  ;;  %v3114_v18 = vld [vmem:[#allocation10 + $0x70] sm:$0xff]  }
 0x498   :  { %v806_v61 = vmul.bf16 %v3114_v18, %v3855_v19 }
 0x51e   :  { %v1288_v26 = vpop.f32.mrb[16].mxu1 }
 0x51f   :  { %v1290_v28 = vpop.f32.mrb[17].mxu1  ;;  %v1335_v23 = vmul.f32 %v4020_v31, %v1288_v26  ;;  %v790_v26 = vmul.bf16 %v3114_v18, %v3992_v13 }
 0x520   :  { %v1336_v63 = vmul.f32 %v4022_v21, %v1290_v28  ;;  %v804_v28 = vmul.bf16 %v3110_v2, %v3855_v19 }
 0x522   :  { %v1294_v51 = vpop.f32.mrb[18].mxu1 }
 0x523   :  { %v1337_v55 = vmul.f32 %v4030_v27, %v1294_v51  ;;  %v1296_v20 = vpop.f32.mrb[19].mxu1  ;;  %v3115_v51 = vld [vmem:[#allocation10 + $0x30] sm:$0xff]  }
 0x524   :  { %v1338_v1 = vmul.f32 %v4032_v29, %v1296_v20  ;;  %v3116_v20 = vld [vmem:[#allocation10 + $0x78] sm:$0xff]  }
 0x525   :  { %v1351_v24 = vpack.c.bf16 %v1337_v55, %v1335_v23  ;;  %v782_v23 = vmul.bf16 %v3115_v51, %v3992_v13  ;;  %v796_v55 = vmul.bf16 %v3111_v53, %v3855_v19  ;;  %v807_v25 = vmul.bf16 %v3116_v20, %v3855_v19 }
 0x526   :  { %v1352_v6 = vpack.c.bf16 %v1338_v1, %v1336_v63  ;;  %v1300_v7 = vpop.f32.mrb[20].mxu1  ;;  %v791_v63 = vmul.bf16 %v3116_v20, %v3992_v13  ;;  %v805_v1 = vmul.bf16 %v3112_v14, %v3855_v19 }
 0x527   :  { %v1302_v62 = vpop.f32.mrb[21].mxu1  ;;  %v1339_v27 = vmul.f32 %v4040_v58, %v1300_v7  ;;  %v3107_v58 = vld [vmem:[#allocation10 + $0x10] sm:$0xff]  }
 0x528   :  { %1391 = vmatprep.mubr.bf16.mxu1 %v1352_v6  ;;  %v1340_v16 = vmul.f32 %v4042_v36, %v1302_v62  ;;  %v3108_v36 = vld [vmem:[#allocation10 + $0x58] sm:$0xff]   ;;  %v794_v57 = vmul.bf16 %v3107_v58, %v3855_v19  ;;  %v797_v62 = vmul.bf16 %v3113_v9, %v3855_v19 }
 0x529   :  { %1392 = vmatmul.mubr.bf16.vlgmr.msra.gmra.mrb[32].mxu1 %v1351_v24  ;;  %v803_v37 = vmul.bf16 %v3108_v36, %v3855_v19  ;;  %v2942_v24 = vld [vmem:[#allocation7] sm:$0xff]  }
 0x52a   :  { %2697 = vmatpush3.bf16.msra.mxu1 %v776_v52  ;;  %v1306_v31 = vpop.f32.mrb[22].mxu1  ;;  %v3117_v6 = vld [vmem:[#allocation10 + $0x38] sm:$0xff]   ;;  %v798_v52 = vmul.bf16 %v3115_v51, %v3855_v19 }
 0x52b   :  { %v1341_v21 = vmul.f32 %v4050_v30, %v1306_v31  ;;  %2698 = vmatprep.subr.bf16.mxu1 %v785_v32  ;;  %v1308_v29 = vpop.f32.mrb[23].mxu1  ;;  %v778_v30 = vmul.bf16 %v3107_v58, %v3992_v13  ;;  %v783_v7 = vmul.bf16 %v3117_v6, %v3992_v13  ;;  %v799_v32 = vmul.bf16 %v3117_v6, %v3855_v19 }
 0x52c   :  { %v1342_v56 = vmul.f32 %v4052_v40, %v1308_v29  ;;  %v787_v40 = vmul.bf16 %v3108_v36, %v3992_v13 }
 0x52d   :  { %v1353_v33 = vpack.c.bf16 %v1341_v21, %v1339_v27 }
 0x52e   :  { %v1354_v3 = vpack.c.bf16 %v1342_v56, %v1340_v16  ;;  %2699 = vmatpush3.bf16.msra.mxu1 %v777_v10 }
 0x52f   :  { %2700 = vmatprep.subr.bf16.mxu1 %v786_v22 }
 0x530   :  { %1432 = vmatprep.mubr.bf16.mxu0 %v1354_v3  ;;  %v2943_v3 = vld [vmem:[#allocation7 + $0x8] sm:$0xff]  }
 0x531   :  { %1433 = vmatmul.mubr.bf16.vlgmr.msra.gmra.mrb[40].mxu0 %v1353_v33 }
 0x532   :  { %2701 = vmatpush3.bf16.msra.mxu1 %v778_v30  ;;  %2719 = vmatpush3.bf16.msra.mxu0 %v792_v34 }
 0x533   :  { %2702 = vmatprep.subr.bf16.mxu1 %v787_v40  ;;  %2720 = vmatprep.subr.bf16.mxu0 %v801_v35  ;;  %v2945_v40 = vld [vmem:[#allocation7 + $0x18] sm:$0xff]  }
 0x536   :  { %2703 = vmatpush3.bf16.msra.mxu1 %v779_v42  ;;  %2721 = vmatpush3.bf16.msra.mxu0 %v793_v44 }
 0x537   :  { %2704 = vmatprep.subr.bf16.mxu1 %v788_v4  ;;  %2722 = vmatprep.subr.bf16.mxu0 %v802_v5 }
 0x53a   :  { %2705 = vmatpush3.bf16.msra.mxu1 %v780_v8  ;;  %2723 = vmatpush3.bf16.msra.mxu0 %v794_v57 }
 0x53b   :  { %2706 = vmatprep.subr.bf16.mxu1 %v789_v15  ;;  %2724 = vmatprep.subr.bf16.mxu0 %v803_v37 }
 0x53e   :  { %2707 = vmatpush3.bf16.msra.mxu1 %v781_v11  ;;  %2725 = vmatpush3.bf16.msra.mxu0 %v795_v59 }
 0x53f   :  { %2708 = vmatprep.subr.bf16.mxu1 %v790_v26  ;;  %2726 = vmatprep.subr.bf16.mxu0 %v804_v28 }
 0x542   :  { %2709 = vmatpush3.bf16.msra.mxu1 %v782_v23  ;;  %2727 = vmatpush3.bf16.msra.mxu0 %v796_v55 }
 0x543   :  { %2710 = vmatprep.subr.bf16.mxu1 %v791_v63  ;;  %2728 = vmatprep.subr.bf16.mxu0 %v805_v1 }
 0x546   :  { %2711 = vmatpush3.bf16.msra.mxu1 %v783_v7  ;;  %2729 = vmatpush3.bf16.msra.mxu0 %v797_v62  ;;  %v2466_v62 = vld [vmem:[#allocation8] ss:$0 sm:$0xff] }
 0x547   :  { %2730 = vmatprep.subr.bf16.mxu0 %v806_v61  ;;  %2816 = vmatprep.subr.bf16.mxu1 %v2942_v24 }
 0x54a   :  { %2731 = vmatpush3.bf16.msra.mxu0 %v798_v52 }
 0x54b   :  { %2732 = vmatprep.subr.bf16.mxu0 %v807_v25 }
 0x54e   :  { %2733 = vmatpush3.bf16.msra.mxu0 %v799_v32 }
 0x55e   :  { %v1312_v31 = vpop.f32.mrb[24].mxu1 }
 0x55f   :  { %v1314_v27 = vpop.f32.mrb[25].mxu1  ;;  %v1343_v21 = vmul.f32 %v4084_v47, %v1312_v31 }
 0x560   :  { %v1344_v56 = vmul.f32 %v4086_v49, %v1314_v27 }
 0x562   :  { %v1318_v13 = vpop.f32.mrb[26].mxu1 }
 0x563   :  { %v1345_v29 = vmul.f32 %v4093_v12, %v1318_v13  ;;  %v1320_v16 = vpop.f32.mrb[27].mxu1  ;;  %v2944_v12 = vld [vmem:[#allocation7 + $0x10] sm:$0xff]  }
 0x564   :  { %v1346_v17 = vmul.f32 %v4089_v60, %v1320_v16 }
 0x565   :  { %v1355_v10 = vpack.c.bf16 %v1345_v29, %v1343_v21  ;;  %v3118_v21 = vld [vmem:[#allocation2] sm:$0xff] }
 0x566   :  { %v1356_v33 = vpack.c.bf16 %v1346_v17, %v1344_v56  ;;  %v1324_v45 = vpop.f32.mrb[28].mxu1  ;;  %v3119_v56 = vld [vmem:[#allocation2 + $0x8] sm:$0xff] }
 0x567   :  { %v1326_v22 = vpop.f32.mrb[29].mxu1  ;;  %v1347_v58 = vmul.f32 %v4096_v43, %v1324_v45  ;;  %v2946_v43 = vld [vmem:[#allocation7 + $0x20] sm:$0xff]   ;;  %v3121_v45 = vld [vmem:[#allocation2 + $0x18] sm:$0xff] }
 0x568   :  { %1473 = vmatprep.mubr.bf16.mxu1 %v1356_v33  ;;  %v1348_v49 = vmul.f32 %v4098_v46, %v1326_v22  ;;  %v2948_v46 = vld [vmem:[#allocation7 + $0x30] sm:$0xff]  }
 0x569   :  { %1474 = vmatmul.mubr.bf16.vlgmr.msra.gmra.mrb[36].mxu1 %v1355_v10  ;;  %v3120_v10 = vld [vmem:[#allocation2 + $0x10] sm:$0xff] }
 0x56a   :  { %v1330_v19 = vpop.f32.mrb[30].mxu1  ;;  %2817 = vmatpush3.bf16.msra.mxu1 %v2942_v24 }
 0x56b   :  { %v1349_v47 = vmul.f32 %v4105_v54, %v1330_v19  ;;  %v1332_v30 = vpop.f32.mrb[31].mxu1  ;;  %2818 = vmatprep.subr.bf16.mxu1 %v2943_v3  ;;  %v2947_v54 = vld [vmem:[#allocation7 + $0x28] sm:$0xff]  }
 0x56c   :  { %v1350_v60 = vmul.f32 %v4101_v50, %v1332_v30  ;;  %v2949_v50 = vld [vmem:[#allocation7 + $0x38] sm:$0xff]  }
 0x56d   :  { %v1357_v34 = vpack.c.bf16 %v1349_v47, %v1347_v58 }
 0x56e   :  { %v1358_v36 = vpack.c.bf16 %v1350_v60, %v1348_v49  ;;  %2819 = vmatpush3.bf16.msra.mxu1 %v2943_v3  ;;  %v3122_v60 = vld [vmem:[#allocation2 + $0x20] sm:$0xff] }
 0x56f   :  { %2820 = vmatprep.subr.bf16.mxu1 %v2944_v12 }
 0x570   :  { %1514 = vmatprep.mubr.bf16.mxu0 %v1358_v36 }
 0x571   :  { %1515 = vmatmul.mubr.bf16.vlgmr.msra.gmra.mrb[44].mxu0 %v1357_v34 }
 0x572   :  { %2821 = vmatpush3.bf16.msra.mxu1 %v2944_v12  ;;  %1934 = vmatprep.mubr.bf16.mxu0 %v3373_v0 }
 0x573   :  { %2822 = vmatprep.subr.bf16.mxu1 %v2945_v40 }
 0x576   :  { %2823 = vmatpush3.bf16.msra.mxu1 %v2945_v40  ;;  %v3123_v40 = vld [vmem:[#allocation2 + $0x28] sm:$0xff] }
 0x577   :  { %2824 = vmatprep.subr.bf16.mxu1 %v2946_v43 }
 0x57a   :  { %2825 = vmatpush3.bf16.msra.mxu1 %v2946_v43 }
 0x57b   :  { %2826 = vmatprep.subr.bf16.mxu1 %v2947_v54 }
 0x57e   :  { %2827 = vmatpush3.bf16.msra.mxu1 %v2947_v54  ;;  %v3124_v54 = vld [vmem:[#allocation2 + $0x30] sm:$0xff] }
 0x57f   :  { %2828 = vmatprep.subr.bf16.mxu1 %v2948_v46 }
 0x582   :  { %2829 = vmatpush3.bf16.msra.mxu1 %v2948_v46 }
 0x583   :  { %2830 = vmatprep.subr.bf16.mxu1 %v2949_v50 }
 0x586   :  { %2831 = vmatpush3.bf16.msra.mxu1 %v2949_v50  ;;  %v3125_v50 = vld [vmem:[#allocation2 + $0x38] sm:$0xff] }
 0x5fc   :  { %v2668_v35 = vpop.f32.mrb[32].mxu1 }
 0x5fd   :  { %v2669_v48 = vpop.f32.mrb[33].mxu1 }
 0x5fe   :  { %v2670_v42 = vadd.f32 %v2669_v48, %v2668_v35  ;;  %v2671_v44 = vpop.f32.mrb[34].mxu1  ;;  %v2950_v48 = vld [vmem:[%s4424_s12] ss:$8 sps:$4 sm:$0xff]  }
 0x5ff   :  { %v2672_v2 = vpop.f32.mrb[35].mxu1 }
 0x600   :  { %v2673_v4 = vadd.f32 %v2672_v2, %v2671_v44  ;;  %v2955_v44 = vld [vmem:[%s4424_s12 + $0x14] ss:$8 sps:$4 sm:$0xff]   ;;  %v2953_v2 = vld [vmem:[%s4424_s12 + $0x10] ss:$8 sps:$4 sm:$0xff]  }
 0x602   :  { %v1523_v5 = vpack.c.bf16 %v2673_v4, %v2670_v42  ;;  %v2952_v42 = vld [vmem:[%s4424_s12 + $0x4] ss:$8 sps:$4 sm:$0xff]  }
 0x603   :  { %1902 = vmatprep.subr.bf16.mxu0 %v2952_v42 }
 0x604   :  { %v2690_v53 = vpop.f32.mrb[40].mxu0  ;;  %2832 = vmatprep.mubr.bf16.mxu1 %v1523_v5  ;;  %1903 = vmatpush1.bf16.msra.mxu0 %v2950_v48 }
 0x605   :  { %v2691_v8 = vpop.f32.mrb[41].mxu0  ;;  %1904 = vmatprep.subr.bf16.mxu0 %v2955_v44 }
 0x606   :  { %v2692_v57 = vadd.f32 %v2691_v8, %v2690_v53  ;;  %v2693_v14 = vpop.f32.mrb[42].mxu0 }
 0x607   :  { %v2694_v15 = vpop.f32.mrb[43].mxu0 }
 0x608   :  { %v2695_v37 = vadd.f32 %v2694_v15, %v2693_v14  ;;  %1905 = vmatpush1.bf16.msra.mxu0 %v2953_v2 }
 0x60a   :  { %v1524_v9 = vpack.c.bf16 %v2695_v37, %v2692_v57 }
 0x60c   :  { %2833 = vmatmul.mubr.bf16.vlgmr.msra.gmra.mrb[40].mxu1 %v1524_v9 }
 0x63c   :  { %v2712_v11 = vpop.f32.mrb[36].mxu1 }
 0x63d   :  { %v2713_v59 = vpop.f32.mrb[37].mxu1 }
 0x63e   :  { %v2714_v18 = vadd.f32 %v2713_v59, %v2712_v11  ;;  %v2715_v26 = vpop.f32.mrb[38].mxu1 }
 0x63f   :  { %v2716_v28 = vpop.f32.mrb[39].mxu1 }
 0x640   :  { %v2717_v51 = vadd.f32 %v2716_v28, %v2715_v26 }
 0x642   :  { %v1525_v23 = vpack.c.bf16 %v2717_v51, %v2714_v18 }
 0x644   :  { %v2734_v55 = vpop.f32.mrb[44].mxu0  ;;  %2836 = vmatprep.mubr.bf16.mxu1 %v1525_v23 }
 0x645   :  { %v2735_v20 = vpop.f32.mrb[45].mxu0 }
 0x646   :  { %v2736_v63 = vadd.f32 %v2735_v20, %v2734_v55  ;;  %v2737_v1 = vpop.f32.mrb[46].mxu0  ;;  %v2958_v55 = vld [vmem:[%s4424_s12 + $0x24] ss:$8 sps:$4 sm:$0xff]   ;;  %v2956_v20 = vld [vmem:[%s4424_s12 + $0x20] ss:$8 sps:$4 sm:$0xff]  }
 0x647   :  { %v2738_v24 = vpop.f32.mrb[47].mxu0  ;;  %1906 = vmatprep.subr.bf16.mxu0 %v2958_v55 }
 0x648   :  { %v2739_v6 = vadd.f32 %v2738_v24, %v2737_v1  ;;  %1907 = vmatpush1.bf16.msra.mxu0 %v2956_v20  ;;  %v2959_v1 = vld [vmem:[%s4424_s12 + $0x30] ss:$8 sps:$4 sm:$0xff]   ;;  %v2964_v24 = vld [vmem:[%s4424_s12 + $0x44] ss:$8 sps:$4 sm:$0xff]  }
 0x64a   :  { %v1526_v7 = vpack.c.bf16 %v2739_v6, %v2736_v63  ;;  %v2961_v63 = vld [vmem:[%s4424_s12 + $0x34] ss:$8 sps:$4 sm:$0xff]   ;;  %v2962_v6 = vld [vmem:[%s4424_s12 + $0x40] ss:$8 sps:$4 sm:$0xff]  }
 0x64b   :  { %1908 = vmatprep.subr.bf16.mxu0 %v2961_v63 }
 0x64c   :  { %2837 = vmatmul.mubr.bf16.gmra.mrb[44].mxu1 %v1526_v7  ;;  %1909 = vmatpush1.bf16.msra.mxu0 %v2959_v1  ;;  %v2967_v7 = vld [vmem:[%s4424_s12 + $0x54] ss:$8 sps:$4 sm:$0xff]  }
 0x64d   :  { %1910 = vmatprep.subr.bf16.mxu0 %v2964_v24 }
 0x650   :  { %1911 = vmatpush1.bf16.msra.mxu0 %v2962_v6 }
 0x651   :  { %1912 = vmatprep.subr.bf16.mxu0 %v2967_v7 }
 0x6df   :  { %v2834_v61 = vpop.f32.mrb[40].mxu1 }
 0x6e0   :  { %v1632_v52 = vpop.f32.mrb[41].mxu1  ;;  %v1641_v27 = vadd.f32 %v2834_v61, %v2466_v62  ;;  %v2970_v61 = vld [vmem:[%s4424_s12 + $0x64] ss:$8 sps:$4 sm:$0xff]  }
 0x6e1   :  { %v1633_v25 = vadd.f32 %v2466_v62, %v1632_v52  ;;  %v2835_v32 = vpop.f32.mrb[42].mxu1  ;;  %v2968_v52 = vld [vmem:[%s4424_s12 + $0x60] ss:$8 sps:$4 sm:$0xff]  }
 0x6e2   :  { %v1635_v31 = vpop.f32.mrb[43].mxu1  ;;  %v1644_v16 = vadd.f32 %v2835_v32, %v2466_v62  ;;  %v1665_v33 = vadd.f32 %v3120_v10, %v1641_v27  ;;  %v2971_v32 = vld [vmem:[%s4424_s12 + $0x70] ss:$8 sps:$4 sm:$0xff]  }
 0x6e3   :  { %v1636_v13 = vadd.f32 %v2466_v62, %v1635_v31  ;;  %v1663_v29 = vadd.f32 %v3118_v21, %v1633_v25  ;;  %v2973_v25 = vld [vmem:[%s4424_s12 + $0x74] ss:$8 sps:$4 sm:$0xff]  }
 0x6e4   :  { %v1666_v22 = vadd.f32 %v3121_v45, %v1644_v16 }
 0x6e5   :  { %1671 = vadd.xlane.f32.xlu0 %v1663_v29  ;;  %v1664_v17 = vadd.f32 %v3119_v56, %v1636_v13 }
 0x6e7   :  { %1673 = vadd.xlane.f32.xlu1 %v1664_v17 }
 0x6e9   :  { %1675 = vadd.xlane.f32.xlu0 %v1665_v33 }
 0x6eb   :  { %1677 = vadd.xlane.f32.xlu1 %v1666_v22 }
 0x71f   :  { %v2838_v3 = vpop.f32.mrb[44].mxu1 }
 0x720   :  { %v1648_v19 = vpop.f32.mrb[45].mxu1  ;;  %v1657_v12 = vadd.f32 %v2838_v3, %v2466_v62 }
 0x721   :  { %v1649_v58 = vadd.f32 %v2466_v62, %v1648_v19  ;;  %v2839_v47 = vpop.f32.mrb[46].mxu1 }
 0x722   :  { %v1651_v30 = vpop.f32.mrb[47].mxu1  ;;  %v1660_v36 = vadd.f32 %v2839_v47, %v2466_v62  ;;  %v4208_v46 = vadd.f32 %v3124_v54, %v1657_v12  ;;  %v2975_v12 = vld [vmem:[#allocation16] sm:$0xff]  }
 0x723   :  { %v1652_v49 = vadd.f32 %v2466_v62, %v1651_v30  ;;  %v4202_v34 = vadd.f32 %v3122_v60, %v1649_v58  ;;  %v2965_v62 = vld [vmem:[%s4424_s12 + $0x50] ss:$8 sps:$4 sm:$0xff]  }
 0x724   :  { %v4211_v35 = vadd.f32 %v3125_v50, %v1660_v36  ;;  %1913 = vmatpush1.bf16.msra.mxu0 %v2965_v62  ;;  %v2974_v30 = vld [vmem:[#allocation16 + $0x40] sm:$0xff]   ;;  %v2977_v60 = vld [vmem:[#allocation16 + $0x8] sm:$0xff]  }
 0x725   :  { %1679 = vadd.xlane.f32.xlu0 %v4202_v34  ;;  %v4205_v43 = vadd.f32 %v3123_v40, %v1652_v49  ;;  %1914 = vmatprep.subr.bf16.mxu0 %v2970_v61  ;;  %v2976_v49 = vld [vmem:[#allocation16 + $0x48] sm:$0xff]  }
 0x726   :  { %2752 = vmatprep.subr.bf16.mxu1 %v2974_v30 }
 0x727   :  { %1681 = vadd.xlane.f32.xlu1 %v4205_v43  ;;  %2753 = vmatpush3.bf16.msra.mxu1 %v2975_v12 }
 0x728   :  { %1915 = vmatpush1.bf16.msra.mxu0 %v2968_v52  ;;  %2754 = vmatprep.subr.bf16.mxu1 %v2976_v49 }
 0x729   :  { %1683 = vadd.xlane.f32.xlu0 %v4208_v46  ;;  %1916 = vmatprep.subr.bf16.mxu0 %v2973_v25 }
 0x72b   :  { %1685 = vadd.xlane.f32.xlu1 %v4211_v35  ;;  %2755 = vmatpush3.bf16.msra.mxu1 %v2977_v60 }
 0x72c   :  { %1917 = vmatpush1.bf16.msra.mxu0 %v2971_v32 }
 0x772   :  { %v1672_v4 = vpop.xlane.xlu0 %1671 }
 0x773   :  { %v1688_v5 = vmul.f32 0.0078125, %v1672_v4 }
 0x774   :  { %v1674_v53 = vpop.xlane.xlu1 %1673 }
 0x775   :  { %v4226_v8 = vsub.f32 %v1663_v29, %v1688_v5  ;;  %v1689_v57 = vmul.f32 0.0078125, %v1674_v53  ;;  %v2475_v5 = vld [vmem:[#allocation13] ss:$0 sm:$0xff] }
 0x776   :  { %v1676_v14 = vpop.xlane.xlu0 %1675 }
 0x777   :  { %v4228_v15 = vsub.f32 %v1664_v17, %v1689_v57  ;;  %v1690_v37 = vmul.f32 0.0078125, %v1676_v14  ;;  %v1704_v9 = vmul.f32 %v4226_v8, %v4226_v8 }
 0x778   :  { %v1678_v11 = vpop.xlane.xlu1 %1677 }
 0x779   :  { %v4232_v59 = vsub.f32 %v1665_v33, %v1690_v37  ;;  %v1691_v18 = vmul.f32 0.0078125, %v1678_v11  ;;  %1712 = vadd.xlane.f32.xlu0 %v1704_v9  ;;  %v1705_v26 = vmul.f32 %v4228_v15, %v4228_v15  ;;  %v2476_v11 = vld [vmem:[#allocation14] ss:$0 sm:$0xff] }
 0x77b   :  { %v4236_v28 = vsub.f32 %v1666_v22, %v1691_v18  ;;  %1714 = vadd.xlane.f32.xlu1 %v1705_v26  ;;  %v1706_v51 = vmul.f32 %v4232_v59, %v4232_v59 }
 0x77d   :  { %1716 = vadd.xlane.f32.xlu0 %v1706_v51  ;;  %v1707_v23 = vmul.f32 %v4236_v28, %v4236_v28 }
 0x77f   :  { %1718 = vadd.xlane.f32.xlu1 %v1707_v23 }
 0x7b2   :  { %v1680_v31 = vpop.xlane.xlu0 %1679 }
 0x7b3   :  { %v1692_v27 = vmul.f32 0.0078125, %v1680_v31 }
 0x7b4   :  { %v1682_v13 = vpop.xlane.xlu1 %1681 }
 0x7b5   :  { %v4279_v21 = vsub.f32 %v4202_v34, %v1692_v27  ;;  %v1693_v29 = vmul.f32 0.0078125, %v1682_v13 }
 0x7b6   :  { %v1684_v16 = vpop.xlane.xlu0 %1683 }
 0x7b7   :  { %v4282_v56 = vsub.f32 %v4205_v43, %v1693_v29  ;;  %v1694_v17 = vmul.f32 0.0078125, %v1684_v16  ;;  %v1708_v10 = vmul.f32 %v4279_v21, %v4279_v21 }
 0x7b8   :  { %v1686_v33 = vpop.xlane.xlu1 %1685 }
 0x7b9   :  { %v4287_v45 = vsub.f32 %v4208_v46, %v1694_v17  ;;  %v1695_v22 = vmul.f32 0.0078125, %v1686_v33  ;;  %1720 = vadd.xlane.f32.xlu0 %v1708_v10  ;;  %v1709_v3 = vmul.f32 %v4282_v56, %v4282_v56 }
 0x7bb   :  { %v4292_v19 = vsub.f32 %v4211_v35, %v1695_v22  ;;  %1722 = vadd.xlane.f32.xlu1 %v1709_v3  ;;  %v1710_v58 = vmul.f32 %v4287_v45, %v4287_v45 }
 0x7bd   :  { %1724 = vadd.xlane.f32.xlu0 %v1710_v58  ;;  %v1711_v47 = vmul.f32 %v4292_v19, %v4292_v19 }
 0x7bf   :  { %1726 = vadd.xlane.f32.xlu1 %v1711_v47 }
 0x806   :  { %v1713_v34 = vpop.xlane.xlu0 %1712 }
 0x807   :  { %v1728_v36 = vmul.f32 0.0078125, %v1713_v34 }
 0x808   :  { %v1715_v40 = vpop.xlane.xlu1 %1714 }
 0x809   :  { %v1736_v43 = vadd.f32 1e-12, %v1728_v36  ;;  %v1729_v54 = vmul.f32 0.0078125, %v1715_v40 }
 0x80a   :  { %v1717_v46 = vpop.xlane.xlu0 %1716 }
 0x80b   :  { %3038 = vrsqrt.f32 %v1736_v43  ;;  %v1737_v50 = vadd.f32 1e-12, %v1729_v54  ;;  %v1730_v35 = vmul.f32 0.0078125, %v1717_v46  ;;  %v2978_v54 = vld [vmem:[#allocation16 + $0x50] sm:$0xff]   ;;  %v2981_v46 = vld [vmem:[#allocation16 + $0x18] sm:$0xff]  }
 0x80c   :  { %v1719_v48 = vpop.xlane.xlu1 %1718  ;;  %2756 = vmatprep.subr.bf16.mxu1 %v2978_v54 }
 0x80d   :  { %3040 = vrsqrt.f32 %v1737_v50  ;;  %v1738_v42 = vadd.f32 1e-12, %v1730_v35  ;;  %v1731_v44 = vmul.f32 0.0078125, %v1719_v48  ;;  %v2982_v50 = vld [vmem:[#allocation16 + $0x60] sm:$0xff]   ;;  %v2985_v48 = vld [vmem:[#allocation16 + $0x28] sm:$0xff]  }
 0x80e   :  { %v2983_v35 = vld [vmem:[#allocation16 + $0x20] sm:$0xff]  }
 0x80f   :  { %3042 = vrsqrt.f32 %v1738_v42  ;;  %v1739_v2 = vadd.f32 1e-12, %v1731_v44  ;;  %v2986_v42 = vld [vmem:[#allocation16 + $0x70] sm:$0xff]  }
 0x810   :  { %v2987_v44 = vld [vmem:[#allocation16 + $0x30] sm:$0xff]  }
 0x811   :  { %3044 = vrsqrt.f32 %v1739_v2  ;;  %v2988_v2 = vld [vmem:[#allocation16 + $0x78] sm:$0xff]  }
 0x815   :  { %v3039_v4 = vpop.eup %3038 }
 0x816   :  { %v1752_v53 = vmul.f32 %v3039_v4, %v4226_v8  ;;  %v2989_v4 = vld [vmem:[#allocation16 + $0x38] sm:$0xff]  }
 0x817   :  { %v3041_v57 = vpop.eup %3040 }
 0x818   :  { %v1753_v14 = vmul.f32 %v3041_v57, %v4228_v15  ;;  %v1767_v37 = vmul.f32 %v2475_v5, %v1752_v53 }
 0x819   :  { %v3043_v9 = vpop.eup %3042 }
 0x81a   :  { %v1768_v18 = vmul.f32 %v2475_v5, %v1753_v14  ;;  %v4300_v51 = vadd.f32 %v2476_v11, %v1767_v37  ;;  %v1754_v55 = vmul.f32 %v3043_v9, %v4232_v59 }
 0x81b   :  { %v3045_v26 = vpop.eup %3044 }
 0x81c   :  { %v4302_v23 = vadd.f32 %v2476_v11, %v1768_v18  ;;  %v1755_v20 = vmul.f32 %v3045_v26, %v4236_v28  ;;  %v1769_v1 = vmul.f32 %v2475_v5, %v1754_v55 }
 0x81e   :  { %v1790_v63 = vpack.c.bf16 %v4302_v23, %v4300_v51  ;;  %v1770_v8 = vmul.f32 %v2475_v5, %v1755_v20  ;;  %v4311_v24 = vadd.f32 %v2476_v11, %v1769_v1 }
 0x820   :  { %1935 = vmatmul.mubr.bf16.vlgmr.msra.gmra.mrb[48].mxu0 %v1790_v63  ;;  %v4309_v15 = vadd.f32 %v2476_v11, %v1770_v8 }
 0x821   :  { %1944 = vmatprep.mubr.bf16.mxu0 %v3373_v0 }
 0x822   :  { %v1791_v6 = vpack.c.bf16 %v4309_v15, %v4311_v24 }
 0x828   :  { %1945 = vmatmul.mubr.bf16.gmra.mrb[52].mxu0 %v1791_v6 }
 0x829   :  { %1954 = vmatprep.mubr.bf16.mxu0 %v3373_v0 }
 0x846   :  { %v1721_v59 = vpop.xlane.xlu0 %1720 }
 0x847   :  { %v1732_v28 = vmul.f32 0.0078125, %v1721_v59 }
 0x848   :  { %v1723_v7 = vpop.xlane.xlu1 %1722 }
 0x849   :  { %v1740_v62 = vadd.f32 1e-12, %v1732_v28  ;;  %v1733_v61 = vmul.f32 0.0078125, %v1723_v7 }
 0x84a   :  { %v1725_v52 = vpop.xlane.xlu0 %1724 }
 0x84b   :  { %3046 = vrsqrt.f32 %v1740_v62  ;;  %v1741_v25 = vadd.f32 1e-12, %v1733_v61  ;;  %v1734_v32 = vmul.f32 0.0078125, %v1725_v52 }
 0x84c   :  { %v1727_v31 = vpop.xlane.xlu1 %1726 }
 0x84d   :  { %3048 = vrsqrt.f32 %v1741_v25  ;;  %v1742_v27 = vadd.f32 1e-12, %v1734_v32  ;;  %v1735_v13 = vmul.f32 0.0078125, %v1727_v31 }
 0x84f   :  { %3050 = vrsqrt.f32 %v1742_v27  ;;  %v1743_v29 = vadd.f32 1e-12, %v1735_v13 }
 0x851   :  { %3052 = vrsqrt.f32 %v1743_v29 }
 0x855   :  { %v3047_v16 = vpop.eup %3046 }
 0x856   :  { %v1756_v17 = vmul.f32 %v3047_v16, %v4279_v21 }
 0x857   :  { %v3049_v10 = vpop.eup %3048 }
 0x858   :  { %v1757_v33 = vmul.f32 %v3049_v10, %v4282_v56  ;;  %v1771_v22 = vmul.f32 %v2475_v5, %v1756_v17 }
 0x859   :  { %v3051_v3 = vpop.eup %3050 }
 0x85a   :  { %v1772_v58 = vmul.f32 %v2475_v5, %v1757_v33  ;;  %v4318_v30 = vadd.f32 %v2476_v11, %v1771_v22  ;;  %v1758_v49 = vmul.f32 %v3051_v3, %v4287_v45  ;;  %v2979_v45 = vld [vmem:[#allocation16 + $0x10] sm:$0xff]  }
 0x85b   :  { %v3053_v47 = vpop.eup %3052  ;;  %2757 = vmatpush3.bf16.msra.mxu1 %v2979_v45 }
 0x85c   :  { %v4320_v12 = vadd.f32 %v2476_v11, %v1772_v58  ;;  %v1759_v60 = vmul.f32 %v3053_v47, %v4292_v19  ;;  %v1773_v21 = vmul.f32 %v2475_v5, %v1758_v49  ;;  %v2980_v19 = vld [vmem:[#allocation16 + $0x58] sm:$0xff]  }
 0x85d   :  { %2758 = vmatprep.subr.bf16.mxu1 %v2980_v19 }
 0x85e   :  { %v1792_v34 = vpack.c.bf16 %v4320_v12, %v4318_v30  ;;  %v1774_v36 = vmul.f32 %v2475_v5, %v1759_v60  ;;  %v4329_v40 = vadd.f32 %v2476_v11, %v1773_v21  ;;  %v1810_v5 = vld [vmem:[%s4425_s13] sm:$0x3] }
 0x85f   :  { %2759 = vmatpush3.bf16.msra.mxu1 %v2981_v46  ;;  %v4338_v53 = vrot.slane %v1810_v5, %v217_v39  ;;  %v4342_v57 = vrot.slane %v1810_v5, %v221_v41 }
 0x860   :  { %1955 = vmatmul.mubr.bf16.gmra.mrb[56].mxu0 %v1792_v34  ;;  %v4327_v56 = vadd.f32 %v2476_v11, %v1774_v36  ;;  %2760 = vmatprep.subr.bf16.mxu1 %v2982_v50 }
 0x861   :  { %1964 = vmatprep.mubr.bf16.mxu0 %v3373_v0  ;;  %v2984_v0 = vld [vmem:[#allocation16 + $0x68] sm:$0xff]  }
 0x862   :  { %v1793_v43 = vpack.c.bf16 %v4327_v56, %v4329_v40 }
 0x863   :  { %2761 = vmatpush3.bf16.msra.mxu1 %v2983_v35 }
 0x864   :  { %2762 = vmatprep.subr.bf16.mxu1 %v2984_v0 }
 0x867   :  { %2763 = vmatpush3.bf16.msra.mxu1 %v2985_v48 }
 0x868   :  { %1965 = vmatmul.mubr.bf16.gmra.mrb[60].mxu0 %v1793_v43  ;;  %2764 = vmatprep.subr.bf16.mxu1 %v2986_v42 }
 0x86b   :  { %2765 = vmatpush3.bf16.msra.mxu1 %v2987_v44 }
 0x86c   :  { %2766 = vmatprep.subr.bf16.mxu1 %v2988_v2 }
 0x86f   :  { %2767 = vmatpush3.bf16.msra.mxu1 %v2989_v4 }
 0x8f3   :  { %v1936_v14 = vpop.f32.mrb[48].mxu0 }
 0x8f4   :  { %v1937_v37 = vadd.f32 %v1936_v14, %v4338_v53  ;;  %v1938_v9 = vpop.f32.mrb[49].mxu0 }
 0x8f5   :  { %v1939_v11 = vadd.f32 %v1938_v9, %v4342_v57  ;;  %v1940_v18 = vpop.f32.mrb[50].mxu0 }
 0x8f6   :  { %v1991_v26 = vmul.f32 0.70710677, %v1937_v37  ;;  %v1941_v55 = vadd.f32 %v1940_v18, %v4338_v53  ;;  %v1942_v20 = vpop.f32.mrb[51].mxu0  ;;  %v1975_v33 = vmul.f32 0.5, %v1937_v37 }
 0x8f7   :  { %v1992_v63 = vmul.f32 0.70710677, %v1939_v11  ;;  %v1943_v8 = vadd.f32 %v1942_v20, %v4342_v57  ;;  %v1976_v58 = vmul.f32 0.5, %v1939_v11 }
 0x8f8   :  { %3054 = verf.f32 %v1991_v26  ;;  %v1993_v39 = vmul.f32 0.70710677, %v1941_v55  ;;  %v1977_v22 = vmul.f32 0.5, %v1941_v55 }
 0x8f9   :  { %3056 = verf.f32 %v1992_v63  ;;  %v1994_v38 = vmul.f32 0.70710677, %v1943_v8  ;;  %v1978_v47 = vmul.f32 0.5, %v1943_v8 }
 0x8fa   :  { %3058 = verf.f32 %v1993_v39 }
 0x8fb   :  { %3060 = verf.f32 %v1994_v38  ;;  %v1946_v41 = vpop.f32.mrb[52].mxu0 }
 0x8fc   :  { %v1947_v1 = vadd.f32 %v1946_v41, %v4338_v53  ;;  %v1948_v6 = vpop.f32.mrb[53].mxu0 }
 0x8fd   :  { %v1949_v59 = vadd.f32 %v1948_v6, %v4342_v57  ;;  %v1950_v28 = vpop.f32.mrb[54].mxu0 }
 0x8fe   :  { %v1995_v7 = vmul.f32 0.70710677, %v1947_v1  ;;  %v1951_v62 = vadd.f32 %v1950_v28, %v4338_v53  ;;  %v1952_v61 = vpop.f32.mrb[55].mxu0  ;;  %v1979_v48 = vmul.f32 0.5, %v1947_v1 }
 0x8ff   :  { %v1996_v52 = vmul.f32 0.70710677, %v1949_v59  ;;  %v1953_v25 = vadd.f32 %v1952_v61, %v4342_v57  ;;  %v1980_v2 = vmul.f32 0.5, %v1949_v59 }
 0x900   :  { %3062 = verf.f32 %v1995_v7  ;;  %v1997_v32 = vmul.f32 0.70710677, %v1951_v62  ;;  %v1981_v42 = vmul.f32 0.5, %v1951_v62 }
 0x901   :  { %3064 = verf.f32 %v1996_v52  ;;  %v1998_v31 = vmul.f32 0.70710677, %v1953_v25  ;;  %v1982_v4 = vmul.f32 0.5, %v1953_v25 }
 0x902   :  { %v3055_v27 = vpop.eup %3054  ;;  %3066 = verf.f32 %v1997_v32 }
 0x903   :  { %v3057_v13 = vpop.eup %3056  ;;  %v2023_v29 = vadd.f32 1.0, %v3055_v27  ;;  %3068 = verf.f32 %v1998_v31 }
 0x904   :  { %v3059_v16 = vpop.eup %3058  ;;  %v2024_v17 = vadd.f32 1.0, %v3057_v13 }
 0x905   :  { %v3061_v10 = vpop.eup %3060  ;;  %v2025_v3 = vadd.f32 1.0, %v3059_v16  ;;  %v2039_v60 = vmul.f32 %v2023_v29, %v1975_v33 }
 0x906   :  { %v2026_v49 = vadd.f32 1.0, %v3061_v10  ;;  %v2040_v36 = vmul.f32 %v2024_v17, %v1976_v58 }
 0x907   :  { %v2041_v34 = vmul.f32 %v2025_v3, %v1977_v22 }
 0x908   :  { %v2042_v21 = vmul.f32 %v2026_v49, %v1978_v47 }
 0x909   :  { %v2055_v43 = vpack.c.bf16 %v2041_v34, %v2039_v60 }
 0x90a   :  { %v3063_v54 = vpop.eup %3062  ;;  %v2056_v45 = vpack.c.bf16 %v2042_v21, %v2040_v36 }
 0x90b   :  { %v3065_v19 = vpop.eup %3064  ;;  %v2027_v46 = vadd.f32 1.0, %v3063_v54 }
 0x90c   :  { %v3067_v50 = vpop.eup %3066  ;;  %v2028_v35 = vadd.f32 1.0, %v3065_v19  ;;  %2230 = vmatprep.mubr.bf16.mxu1 %v2056_v45 }
 0x90d   :  { %v3069_v0 = vpop.eup %3068  ;;  %v2029_v44 = vadd.f32 1.0, %v3067_v50  ;;  %2231 = vmatmul.mubr.bf16.vlgmr.msra.gmra.mrb[48].mxu1 %v2055_v43  ;;  %v2043_v14 = vmul.f32 %v2027_v46, %v1979_v48 }
 0x90e   :  { %v2030_v5 = vadd.f32 1.0, %v3069_v0  ;;  %v2044_v9 = vmul.f32 %v2028_v35, %v1980_v2 }
 0x90f   :  { %v2045_v37 = vmul.f32 %v2029_v44, %v1981_v42 }
 0x910   :  { %v2046_v11 = vmul.f32 %v2030_v5, %v1982_v4 }
 0x911   :  { %v2057_v18 = vpack.c.bf16 %v2045_v37, %v2043_v14 }
 0x912   :  { %v2058_v26 = vpack.c.bf16 %v2046_v11, %v2044_v9 }
 0x914   :  { %2238 = vmatprep.mubr.bf16.mxu1 %v2058_v26 }
 0x915   :  { %2239 = vmatmul.mubr.bf16.gmra.mrb[52].mxu1 %v2057_v18 }
 0x933   :  { %v1956_v55 = vpop.f32.mrb[56].mxu0 }
 0x934   :  { %v1957_v20 = vadd.f32 %v1956_v55, %v4338_v53  ;;  %v1958_v63 = vpop.f32.mrb[57].mxu0 }
 0x935   :  { %v1959_v8 = vadd.f32 %v1958_v63, %v4342_v57  ;;  %v1960_v39 = vpop.f32.mrb[58].mxu0 }
 0x936   :  { %v1999_v38 = vmul.f32 0.70710677, %v1957_v20  ;;  %v1961_v41 = vadd.f32 %v1960_v39, %v4338_v53  ;;  %v1962_v1 = vpop.f32.mrb[59].mxu0  ;;  %v1983_v60 = vmul.f32 0.5, %v1957_v20 }
 0x937   :  { %v2000_v6 = vmul.f32 0.70710677, %v1959_v8  ;;  %v1963_v59 = vadd.f32 %v1962_v1, %v4342_v57 }
 0x938   :  { %3070 = verf.f32 %v1999_v38  ;;  %v2001_v28 = vmul.f32 0.70710677, %v1961_v41  ;;  %v1985_v34 = vmul.f32 0.5, %v1961_v41  ;;  %v2493_v38 = vld [vmem:[%s4427_s15] ss:$0 sm:$0xff] }
 0x939   :  { %3072 = verf.f32 %v2000_v6  ;;  %v2002_v7 = vmul.f32 0.70710677, %v1963_v59  ;;  %v1986_v21 = vmul.f32 0.5, %v1963_v59 }
 0x93a   :  { %3074 = verf.f32 %v2001_v28 }
 0x93b   :  { %3076 = verf.f32 %v2002_v7  ;;  %v1966_v62 = vpop.f32.mrb[60].mxu0 }
 0x93c   :  { %v1967_v61 = vadd.f32 %v1966_v62, %v4338_v53  ;;  %v1968_v52 = vpop.f32.mrb[61].mxu0 }
 0x93d   :  { %v1969_v25 = vadd.f32 %v1968_v52, %v4342_v57  ;;  %v1970_v32 = vpop.f32.mrb[62].mxu0 }
 0x93e   :  { %v2003_v31 = vmul.f32 0.70710677, %v1967_v61  ;;  %v1971_v27 = vadd.f32 %v1970_v32, %v4338_v53  ;;  %v1972_v13 = vpop.f32.mrb[63].mxu0  ;;  %v1984_v53 = vmul.f32 0.5, %v1959_v8  ;;  %v1987_v4 = vmul.f32 0.5, %v1967_v61 }
 0x93f   :  { %v2004_v29 = vmul.f32 0.70710677, %v1969_v25  ;;  %v1973_v16 = vadd.f32 %v1972_v13, %v4342_v57  ;;  %v1988_v37 = vmul.f32 0.5, %v1969_v25 }
 0x940   :  { %3078 = verf.f32 %v2003_v31  ;;  %v2005_v17 = vmul.f32 0.70710677, %v1971_v27  ;;  %v1989_v5 = vmul.f32 0.5, %v1971_v27 }
 0x941   :  { %3080 = verf.f32 %v2004_v29  ;;  %v2006_v10 = vmul.f32 0.70710677, %v1973_v16  ;;  %v1990_v9 = vmul.f32 0.5, %v1973_v16 }
 0x942   :  { %v3071_v33 = vpop.eup %3070  ;;  %3082 = verf.f32 %v2005_v17 }
 0x943   :  { %v3073_v22 = vpop.eup %3072  ;;  %v2031_v3 = vadd.f32 1.0, %v3071_v33  ;;  %3084 = verf.f32 %v2006_v10 }
 0x944   :  { %v3075_v58 = vpop.eup %3074  ;;  %v2032_v47 = vadd.f32 1.0, %v3073_v22 }
 0x945   :  { %v3077_v49 = vpop.eup %3076  ;;  %v2033_v36 = vadd.f32 1.0, %v3075_v58  ;;  %v2047_v54 = vmul.f32 %v2031_v3, %v1983_v60 }
 0x946   :  { %v2034_v43 = vadd.f32 1.0, %v3077_v49  ;;  %v2048_v45 = vmul.f32 %v2032_v47, %v1984_v53 }
 0x947   :  { %v2049_v57 = vmul.f32 %v2033_v36, %v1985_v34 }
 0x948   :  { %v2050_v19 = vmul.f32 %v2034_v43, %v1986_v21 }
 0x949   :  { %v2059_v46 = vpack.c.bf16 %v2049_v57, %v2047_v54 }
 0x94a   :  { %v3079_v50 = vpop.eup %3078  ;;  %v2060_v35 = vpack.c.bf16 %v2050_v19, %v2048_v45 }
 0x94b   :  { %v3081_v0 = vpop.eup %3080  ;;  %v2035_v48 = vadd.f32 1.0, %v3079_v50 }
 0x94c   :  { %v3083_v42 = vpop.eup %3082  ;;  %v2036_v44 = vadd.f32 1.0, %v3081_v0  ;;  %2246 = vmatprep.mubr.bf16.mxu1 %v2060_v35 }
 0x94d   :  { %v3085_v2 = vpop.eup %3084  ;;  %v2037_v14 = vadd.f32 1.0, %v3083_v42  ;;  %2247 = vmatmul.mubr.bf16.gmra.mrb[56].mxu1 %v2059_v46  ;;  %v2051_v18 = vmul.f32 %v2035_v48, %v1987_v4 }
 0x94e   :  { %v2038_v11 = vadd.f32 1.0, %v3085_v2  ;;  %v2052_v55 = vmul.f32 %v2036_v44, %v1988_v37 }
 0x94f   :  { %v2053_v26 = vmul.f32 %v2037_v14, %v1989_v5 }
 0x950   :  { %v2054_v20 = vmul.f32 %v2038_v11, %v1990_v9 }
 0x951   :  { %v2061_v63 = vpack.c.bf16 %v2053_v26, %v2051_v18 }
 0x952   :  { %v2062_v8 = vpack.c.bf16 %v2054_v20, %v2052_v55 }
 0x954   :  { %2254 = vmatprep.mubr.bf16.mxu1 %v2062_v8 }
 0x955   :  { %2255 = vmatmul.mubr.bf16.gmra.mrb[60].mxu1 %v2061_v63 }
 0x9e0   :  { %v2768_v39 = vpop.f32.mrb[48].mxu1 }
 0x9e1   :  { %v2769_v41 = vpop.f32.mrb[49].mxu1 }
 0x9e2   :  { %v2770_v1 = vadd.f32 %v2769_v41, %v2768_v39  ;;  %v2771_v6 = vpop.f32.mrb[50].mxu1 }
 0x9e3   :  { %v2772_v59 = vpop.f32.mrb[51].mxu1 }
 0x9e4   :  { %v2233_v28 = vadd.f32 %v2770_v1, %v2493_v38  ;;  %v2773_v7 = vadd.f32 %v2772_v59, %v2771_v6 }
 0x9e6   :  { %v2236_v62 = vadd.f32 %v2773_v7, %v2493_v38  ;;  %v2263_v61 = vadd.f32 %v2233_v28, %v4300_v51 }
 0x9e8   :  { %2271 = vadd.xlane.f32.xlu0 %v2263_v61  ;;  %v2774_v52 = vpop.f32.mrb[52].mxu1  ;;  %v2264_v25 = vadd.f32 %v2236_v62, %v4302_v23 }
 0x9e9   :  { %v2775_v32 = vpop.f32.mrb[53].mxu1 }
 0x9ea   :  { %v2776_v31 = vadd.f32 %v2775_v32, %v2774_v52  ;;  %2273 = vadd.xlane.f32.xlu1 %v2264_v25  ;;  %v2777_v27 = vpop.f32.mrb[54].mxu1 }
 0x9eb   :  { %v2778_v13 = vpop.f32.mrb[55].mxu1 }
 0x9ec   :  { %v2241_v29 = vadd.f32 %v2776_v31, %v2493_v38  ;;  %v2779_v16 = vadd.f32 %v2778_v13, %v2777_v27 }
 0x9ee   :  { %v2244_v17 = vadd.f32 %v2779_v16, %v2493_v38  ;;  %v2265_v10 = vadd.f32 %v2241_v29, %v4311_v24 }
 0x9f0   :  { %2275 = vadd.xlane.f32.xlu0 %v2265_v10  ;;  %v2266_v33 = vadd.f32 %v2244_v17, %v4309_v15 }
 0x9f2   :  { %2277 = vadd.xlane.f32.xlu1 %v2266_v33 }
 0xa20   :  { %v2780_v22 = vpop.f32.mrb[56].mxu1 }
 0xa21   :  { %v2781_v51 = vpop.f32.mrb[57].mxu1 }
 0xa22   :  { %v2782_v3 = vadd.f32 %v2781_v51, %v2780_v22  ;;  %v2783_v58 = vpop.f32.mrb[58].mxu1  ;;  %v2510_v51 = vld [vmem:[%s4422_s10] ss:$0 sm:$0xff]  ;;  %s3375_s10 = smov [#allocation17]  }
 0xa23   :  { %v2784_v47 = vpop.f32.mrb[59].mxu1 }
 0xa24   :  { %v2249_v23 = vadd.f32 %v2782_v3, %v2493_v38  ;;  %v2785_v49 = vadd.f32 %v2784_v47, %v2783_v58  ;;  %v2511_v47 = vld [vmem:[%s4423_s11] ss:$0 sm:$0xff]  ;;  %s2402_s11 = sshll.u32 %s3375_s10, 4  ;;  %s2403_s11 = int_to_ptr.vmem [resolvable:$true] %s2402_s11 }
 0xa25   :  { %s3324_s23 = scalar_lea.vmem %s2403_s11, 1024  ;;  %p3329_p3 = scmp.lt.s32.totalorder %s2403_s11, %s2403_s11 }
 0xa26   :  { %v2252_v60 = vadd.f32 %v2785_v49, %v2493_v38  ;;  %v2267_v34 = vadd.f32 %v2249_v23, %v4318_v30  ;;  %p3325_p2 = scmp.ne.s32.totalorder %s2403_s11, %s3324_s23  ;;  %p3330_p4 = scmp.lt.s32.totalorder %s3324_s23, %s3324_s23 }
 0xa28   :  { %2279 = vadd.xlane.f32.xlu0 %v2267_v34  ;;  %v2786_v36 = vpop.f32.mrb[60].mxu1  ;;  %v2268_v53 = vadd.f32 %v2252_v60, %v4320_v12  ;;  %p3331_p5 = por %p3330_p4, %p3329_p3 }
 0xa29   :  { %v2787_v21 = vpop.f32.mrb[61].mxu1 }
 0xa2a   :  { %v2788_v24 = vadd.f32 %v2787_v21, %v2786_v36  ;;  %2281 = vadd.xlane.f32.xlu1 %v2268_v53  ;;  %v2789_v43 = vpop.f32.mrb[62].mxu1  ;;  %p3332_p6 = pnand %p3331_p5, %p3325_p2 }
 0xa2b   :  { %v2790_v15 = vpop.f32.mrb[63].mxu1 }
 0xa2c   :  { %v2257_v54 = vadd.f32 %v2788_v24, %v2493_v38  ;;  %v2791_v57 = vadd.f32 %v2790_v15, %v2789_v43 }
 0xa2e   :  { %v2260_v45 = vadd.f32 %v2791_v57, %v2493_v38  ;;  %v2269_v19 = vadd.f32 %v2257_v54, %v4329_v40 }
 0xa30   :  { %2283 = vadd.xlane.f32.xlu0 %v2269_v19  ;;  %v2270_v46 = vadd.f32 %v2260_v45, %v4327_v56 }
 0xa32   :  { %2285 = vadd.xlane.f32.xlu1 %v2270_v46 }
 0xa75   :  { %v2272_v50 = vpop.xlane.xlu0 %2271 }
 0xa76   :  { %v2287_v30 = vmul.f32 0.0078125, %v2272_v50 }
 0xa77   :  { %v2274_v35 = vpop.xlane.xlu1 %2273 }
 0xa78   :  { %v2295_v0 = vsub.f32 %v2263_v61, %v2287_v30  ;;  %v2288_v48 = vmul.f32 0.0078125, %v2274_v35 }
 0xa7a   :  { %v2296_v12 = vsub.f32 %v2264_v25, %v2288_v48  ;;  %v2303_v42 = vmul.f32 %v2295_v0, %v2295_v0 }
 0xa7c   :  { %2311 = vadd.xlane.f32.xlu0 %v2303_v42  ;;  %v2304_v44 = vmul.f32 %v2296_v12, %v2296_v12 }
 0xa7d   :  { %v2276_v2 = vpop.xlane.xlu0 %2275 }
 0xa7e   :  { %v2289_v4 = vmul.f32 0.0078125, %v2276_v2  ;;  %2313 = vadd.xlane.f32.xlu1 %v2304_v44 }
 0xa7f   :  { %v2278_v5 = vpop.xlane.xlu1 %2277 }
 0xa80   :  { %v2297_v14 = vsub.f32 %v2265_v10, %v2289_v4  ;;  %v2290_v37 = vmul.f32 0.0078125, %v2278_v5 }
 0xa82   :  { %v2298_v40 = vsub.f32 %v2266_v33, %v2290_v37  ;;  %v2305_v9 = vmul.f32 %v2297_v14, %v2297_v14 }
 0xa84   :  { %2315 = vadd.xlane.f32.xlu0 %v2305_v9  ;;  %v2306_v56 = vmul.f32 %v2298_v40, %v2298_v40 }
 0xa86   :  { %2317 = vadd.xlane.f32.xlu1 %v2306_v56 }
 0xab5   :  { %v2280_v11 = vpop.xlane.xlu0 %2279 }
 0xab6   :  { %v2291_v18 = vmul.f32 0.0078125, %v2280_v11 }
 0xab7   :  { %v2282_v26 = vpop.xlane.xlu1 %2281 }
 0xab8   :  { %v4371_v55 = vsub.f32 %v2267_v34, %v2291_v18  ;;  %v2292_v20 = vmul.f32 0.0078125, %v2282_v26 }
 0xaba   :  { %v4373_v63 = vsub.f32 %v2268_v53, %v2292_v20  ;;  %v2307_v8 = vmul.f32 %v4371_v55, %v4371_v55 }
 0xabc   :  { %2319 = vadd.xlane.f32.xlu0 %v2307_v8  ;;  %v2308_v39 = vmul.f32 %v4373_v63, %v4373_v63 }
 0xabd   :  { %v2284_v38 = vpop.xlane.xlu0 %2283 }
 0xabe   :  { %v2293_v41 = vmul.f32 0.0078125, %v2284_v38  ;;  %2321 = vadd.xlane.f32.xlu1 %v2308_v39 }
 0xabf   :  { %v2286_v1 = vpop.xlane.xlu1 %2285 }
 0xac0   :  { %v4379_v6 = vsub.f32 %v2269_v19, %v2293_v41  ;;  %v2294_v59 = vmul.f32 0.0078125, %v2286_v1 }
 0xac2   :  { %v4381_v28 = vsub.f32 %v2270_v46, %v2294_v59  ;;  %v2309_v7 = vmul.f32 %v4379_v6, %v4379_v6 }
 0xac4   :  { %2323 = vadd.xlane.f32.xlu0 %v2309_v7  ;;  %v2310_v62 = vmul.f32 %v4381_v28, %v4381_v28 }
 0xac6   :  { %2325 = vadd.xlane.f32.xlu1 %v2310_v62 }
 0xb09   :  { %v2312_v61 = vpop.xlane.xlu0 %2311 }
 0xb0a   :  { %v2327_v52 = vmul.f32 0.0078125, %v2312_v61 }
 0xb0b   :  { %v2314_v25 = vpop.xlane.xlu1 %2313 }
 0xb0c   :  { %v2335_v32 = vadd.f32 1e-12, %v2327_v52  ;;  %v2328_v31 = vmul.f32 0.0078125, %v2314_v25 }
 0xb0e   :  { %3086 = vrsqrt.f32 %v2335_v32  ;;  %v2336_v27 = vadd.f32 1e-12, %v2328_v31 }
 0xb10   :  { %3088 = vrsqrt.f32 %v2336_v27 }
 0xb11   :  { %v2316_v13 = vpop.xlane.xlu0 %2315 }
 0xb12   :  { %v2329_v29 = vmul.f32 0.0078125, %v2316_v13 }
 0xb13   :  { %v2318_v16 = vpop.xlane.xlu1 %2317 }
 0xb14   :  { %v2337_v17 = vadd.f32 1e-12, %v2329_v29  ;;  %v2330_v10 = vmul.f32 0.0078125, %v2318_v16 }
 0xb16   :  { %3090 = vrsqrt.f32 %v2337_v17  ;;  %v2338_v33 = vadd.f32 1e-12, %v2330_v10 }
 0xb18   :  { %v3087_v22 = vpop.eup %3086  ;;  %3092 = vrsqrt.f32 %v2338_v33 }
 0xb19   :  { %v2351_v3 = vmul.f32 %v3087_v22, %v2295_v0 }
 0xb1a   :  { %v3089_v58 = vpop.eup %3088 }
 0xb1b   :  { %v2366_v23 = vmul.f32 %v2510_v51, %v2351_v3  ;;  %v2352_v49 = vmul.f32 %v3089_v58, %v2296_v12 }
 0xb1d   :  { %v2381_v60 = vadd.f32 %v2511_v47, %v2366_v23  ;;  %v2367_v34 = vmul.f32 %v2510_v51, %v2352_v49 }
 0xb1f   :  { %2389 = vst [vmem:[#allocation17] sm:$0xff] %v2381_v60  ;;  %v2382_v36 = vadd.f32 %v2511_v47, %v2367_v34 }
 0xb20   :  { %v3091_v53 = vpop.eup %3090 }
 0xb21   :  { %2390 = vst [vmem:[#allocation17 + $0x8] sm:$0xff] %v2382_v36  ;;  %v2353_v21 = vmul.f32 %v3091_v53, %v2297_v14 }
 0xb22   :  { %v3093_v24 = vpop.eup %3092 }
 0xb23   :  { %v2368_v43 = vmul.f32 %v2510_v51, %v2353_v21  ;;  %v2354_v15 = vmul.f32 %v3093_v24, %v2298_v40 }
 0xb25   :  { %v2383_v54 = vadd.f32 %v2511_v47, %v2368_v43  ;;  %v2369_v57 = vmul.f32 %v2510_v51, %v2354_v15 }
 0xb27   :  { %2391 = vst [vmem:[#allocation17 + $0x10] sm:$0xff] %v2383_v54  ;;  %v2384_v45 = vadd.f32 %v2511_v47, %v2369_v57 }
 0xb29   :  { %2392 = vst [vmem:[#allocation17 + $0x18] sm:$0xff] %v2384_v45 }
 0xb49   :  { %v2320_v19 = vpop.xlane.xlu0 %2319 }
 0xb4a   :  { %v2331_v46 = vmul.f32 0.0078125, %v2320_v19 }
 0xb4b   :  { %v2322_v50 = vpop.xlane.xlu1 %2321 }
 0xb4c   :  { %v2339_v30 = vadd.f32 1e-12, %v2331_v46  ;;  %v2332_v35 = vmul.f32 0.0078125, %v2322_v50 }
 0xb4e   :  { %3094 = vrsqrt.f32 %v2339_v30  ;;  %v2340_v0 = vadd.f32 1e-12, %v2332_v35 }
 0xb50   :  { %3096 = vrsqrt.f32 %v2340_v0 }
 0xb51   :  { %v2324_v48 = vpop.xlane.xlu0 %2323 }
 0xb52   :  { %v2333_v12 = vmul.f32 0.0078125, %v2324_v48 }
 0xb53   :  { %v2326_v42 = vpop.xlane.xlu1 %2325 }
 0xb54   :  { %v2341_v44 = vadd.f32 1e-12, %v2333_v12  ;;  %v2334_v2 = vmul.f32 0.0078125, %v2326_v42 }
 0xb56   :  { %3098 = vrsqrt.f32 %v2341_v44  ;;  %v2342_v4 = vadd.f32 1e-12, %v2334_v2 }
 0xb58   :  { %v3095_v5 = vpop.eup %3094  ;;  %3100 = vrsqrt.f32 %v2342_v4 }
 0xb59   :  { %v2355_v14 = vmul.f32 %v3095_v5, %v4371_v55 }
 0xb5a   :  { %v3097_v37 = vpop.eup %3096 }
 0xb5b   :  { %v2370_v40 = vmul.f32 %v2510_v51, %v2355_v14  ;;  %v2356_v9 = vmul.f32 %v3097_v37, %v4373_v63 }
 0xb5d   :  { %v2385_v56 = vadd.f32 %v2511_v47, %v2370_v40  ;;  %v2371_v11 = vmul.f32 %v2510_v51, %v2356_v9 }
 0xb5f   :  { %2393 = vst [vmem:[#allocation17 + $0x20] sm:$0xff] %v2385_v56  ;;  %v2386_v18 = vadd.f32 %v2511_v47, %v2371_v11 }
 0xb60   :  { %v3099_v26 = vpop.eup %3098 }
 0xb61   :  { %2394 = vst [vmem:[#allocation17 + $0x28] sm:$0xff] %v2386_v18  ;;  %v2357_v20 = vmul.f32 %v3099_v26, %v4379_v6 }
 0xb62   :  { %v3101_v8 = vpop.eup %3100 }
 0xb63   :  { %v2372_v39 = vmul.f32 %v2510_v51, %v2357_v20  ;;  %v2358_v38 = vmul.f32 %v3101_v8, %v4381_v28 }
 0xb65   :  { %v2387_v41 = vadd.f32 %v2511_v47, %v2372_v39  ;;  %v2373_v55 = vmul.f32 %v2510_v51, %v2358_v38 }
 0xb67   :  { %2395 = vst [vmem:[#allocation17 + $0x30] sm:$0xff] %v2387_v41  ;;  %v2388_v1 = vadd.f32 %v2511_v47, %v2373_v55 }
 0xb69   :  { %2396 = vst [vmem:[#allocation17 + $0x38] sm:$0xff] %v2388_v1 }
 0xb6a   :  { %3335 = shalt.err (!%p3332_p6)
}
 0xb6b   :  { %s3336_s8 = scalar_lea.hbm %s4428_s16, 1024 }
 0xb6c   :  { %p3337_p7 = scmp.ne.s32.totalorder %s4428_s16, %s3336_s8  ;;  %p3340_p8 = scmp.lt.u32.totalorder %s3336_s8, %s4428_s16 }
 0xb6e   :  { %p3342_p9 = pnand %p3340_p8, %p3337_p7 }
 0xb70   :  { %3345 = shalt.err (!%p3342_p9)
}
 0xb71   :  { %2408 = dma.vmem_to_hbm [thread:$0]  %s2403_s11, 1024, %s4428_s16, [#allocation4], %s3365_s9, %s3365_s9, %s3366_s2  }
 0xb72   :  { %3356 = dma.done.wait [#allocation4], 1024  }
 0xb73   :  { %3357 = vsyncadd [#allocation4], 4294966272 }
 0xb74   :  { %2412 = vsyncpa [#allocation3], 1 }
 0xb75   :  { %2413 = vsyncpa [#allocation6], 1 }
 0xb76   :  { %2414 = vsyncpa [#allocation9], 1 }
 0xb77   :  { %2415 = vsyncpa [#allocation12], 1 }
 0xb78   :  { %2416 = vsyncpa [#allocation15], 1 }
 0xb79   :  { %2417 = vsyncpa [#allocation4], 1 }

</bundles_post_ra>
